<compile_context>
chip_gen: v5e
topology: v5e:2x2
jax: 0.10.0
libtpu: 0.0.40
codegen_flags: <defaults>
</compile_context>

<pallas_src>
import math
import functools

import jax
import jax.numpy as jnp
from jax.experimental import pallas as pl
from jax.experimental.pallas import tpu as pltpu


_VMEM_LIMIT = 32 * 1024 * 1024  # fits every generation; >> actual working sets


def _pick_tile(dim: int, target: int, align: int) -> int:
    """Largest multiple of `align` <= `target` that divides `dim`; else `dim` (full)."""
    if dim <= target:
        return dim
    t = (target // align) * align
    while t >= align:
        if dim % t == 0:
            return t
        t -= align
    return dim


def _heads_per_block(num_heads: int, head_dim: int) -> int:
    """How many heads to pack into one attention grid step (head group width <= 128 lanes)."""
    if head_dim >= 128 or (128 % head_dim) != 0:
        hb = 1
    else:
        hb = min(num_heads, 128 // head_dim)
    while hb > 1 and num_heads % hb != 0:
        hb -= 1
    return max(hb, 1)


# --------------------------- Conv1D (tiled GEMM, K untiled) -------------------

def _linear_kernel(x_ref, w_ref, b_ref, o_ref):
    # y = x @ W + b  (W is [in, out], HF Conv1D convention); f32 accumulation.
    acc = jnp.dot(x_ref[...], w_ref[...], preferred_element_type=jnp.float32)
    o_ref[...] = (acc + b_ref[...].astype(jnp.float32)).astype(o_ref.dtype)


def pallas_linear(x, w, b, *, tm=512, tn=512):
    """HF Conv1D: y = x @ W + b.  x: [M, K], w: [K, N], b: [N] -> [M, N]."""
    M, K = x.shape
    K2, N = w.shape
    assert K == K2
    tm = _pick_tile(M, tm, 8)
    tn = _pick_tile(N, tn, 128)
    grid = (M // tm, N // tn)
    return pl.pallas_call(
        _linear_kernel,
        out_shape=jax.ShapeDtypeStruct((M, N), x.dtype),
        grid_spec=pltpu.PrefetchScalarGridSpec(
            num_scalar_prefetch=0,
            grid=grid,
            in_specs=[
                pl.BlockSpec((tm, K), lambda i, j: (i, 0)),
                pl.BlockSpec((K, tn), lambda i, j: (0, j)),
                pl.BlockSpec((1, tn), lambda i, j: (0, j)),
            ],
            out_specs=pl.BlockSpec((tm, tn), lambda i, j: (i, j)),
        ),
        compiler_params=pltpu.CompilerParams(
            dimension_semantics=("parallel", "parallel"),
            vmem_limit_bytes=_VMEM_LIMIT,
        ),
    )(x, w, b.reshape(1, N))


# ------------------------ causal flash attention -----------------------------

def _flash_attn_kernel(q_ref, k_ref, v_ref, o_ref, m_sc, l_sc, acc_sc,
                       *, tq, tkv, heads, scale):
    # q_ref/o_ref: (tq, HB, D)   k_ref/v_ref: (tkv, HB, D)
    i = pl.program_id(2)
    j = pl.program_id(3)

    @pl.when(j == 0)
    def _init():
        m_sc[...] = jnp.full(m_sc.shape, -jnp.inf, dtype=m_sc.dtype)
        l_sc[...] = jnp.zeros(l_sc.shape, dtype=l_sc.dtype)
        acc_sc[...] = jnp.zeros(acc_sc.shape, dtype=acc_sc.dtype)

    q_start = i * tq
    k_start = j * tkv
    contributes = k_start <= q_start + (tq - 1)        # block has >= 1 visible key
    crosses_diag = (k_start + (tkv - 1)) > q_start     # block needs the causal mask

    def _update(apply_mask):
        q_all = q_ref[...]
        k_all = k_ref[...]
        v_all = v_ref[...]
        if apply_mask:
            rows = q_start + jax.lax.broadcasted_iota(jnp.int32, (tq, tkv), 0)
            cols = k_start + jax.lax.broadcasted_iota(jnp.int32, (tq, tkv), 1)
            allow = cols <= rows
        for h in range(heads):                          # static unroll over packed heads
            q = q_all[:, h, :] * scale                  # fold 1/sqrt(D) into Q tile
            k = k_all[:, h, :]
            v = v_all[:, h, :]
            # Q K^T without materializing K^T: contract the D axis of both operands.
            s = jax.lax.dot_general(q, k, (((1,), (1,)), ((), ())),
                                    preferred_element_type=jnp.float32)   # (tq, tkv)
            if apply_mask:
                s = jnp.where(allow, s, jnp.finfo(jnp.float32).min)
            m_prev = m_sc[h]
            m_new = jnp.maximum(m_prev, jnp.max(s, axis=-1, keepdims=True))
            alpha = jnp.exp(m_prev - m_new)
            p = jnp.exp(s - m_new)
            l_sc[h] = alpha * l_sc[h] + jnp.sum(p, axis=-1, keepdims=True)
            acc_sc[h] = alpha * acc_sc[h] + jnp.dot(
                p.astype(v.dtype), v, preferred_element_type=jnp.float32)
            m_sc[h] = m_new

    @pl.when(jnp.logical_and(contributes, crosses_diag))
    def _masked():
        _update(True)

    @pl.when(jnp.logical_and(contributes, jnp.logical_not(crosses_diag)))
    def _unmasked():
        _update(False)

    @pl.when(j == pl.num_programs(3) - 1)
    def _finalize():
        for h in range(heads):
            inv_l = pl.reciprocal(l_sc[h], approx=True)   # EUP slot, ~free
            o_ref[:, h, :] = (acc_sc[h] * inv_l).astype(o_ref.dtype)


def pallas_causal_attention(qkv, *, num_groups, heads_per_group, head_dim,
                            tq=256, tkv=256):
    """qkv: [B, T, 3*HG, HB, D] (q groups, then k groups, then v groups along axis 2).

    Returns [B, T, HG, HB, D] (reshapes freely to [B, T, C] for c_proj)."""
    B, T, G3, HB, D = qkv.shape
    HG = num_groups
    assert G3 == 3 * HG and HB == heads_per_group and D == head_dim
    tq = _pick_tile(T, tq, 128)
    tkv = _pick_tile(T, tkv, 128)
    scale = 1.0 / math.sqrt(D)
    grid = (B, HG, T // tq, T // tkv)

    def q_idx(b, g, i, j):
        return (b, i, g, 0, 0)

    def kv_idx(offset):
        def idx(b, g, i, j):
            # Clamp to the last causally-visible KV block: trailing fully-masked
            # blocks map to an already-resident index => their DMA is skipped.
            j_eff = jnp.minimum(j, ((i + 1) * tq - 1) // tkv)
            return (b, j_eff, offset + g, 0, 0)
        return idx

    q_spec = pl.BlockSpec((None, tq, None, HB, D), q_idx)
    k_spec = pl.BlockSpec((None, tkv, None, HB, D), kv_idx(HG))
    v_spec = pl.BlockSpec((None, tkv, None, HB, D), kv_idx(2 * HG))
    o_spec = pl.BlockSpec((None, tq, None, HB, D), q_idx)

    kernel = functools.partial(_flash_attn_kernel, tq=tq, tkv=tkv,
                               heads=HB, scale=scale)

    return pl.pallas_call(
        kernel,
        out_shape=jax.ShapeDtypeStruct((B, T, HG, HB, D), qkv.dtype),
        grid_spec=pltpu.PrefetchScalarGridSpec(
            num_scalar_prefetch=0,
            grid=grid,
            in_specs=[q_spec, k_spec, v_spec],
            out_specs=o_spec,
            scratch_shapes=[
                pltpu.VMEM((HB, tq, 1), jnp.float32),   # running max   m
                pltpu.VMEM((HB, tq, 1), jnp.float32),   # running sum   l
                pltpu.VMEM((HB, tq, D), jnp.float32),   # running numerator
            ],
        ),
        compiler_params=pltpu.CompilerParams(
            dimension_semantics=("parallel", "parallel", "parallel", "arbitrary"),
            vmem_limit_bytes=_VMEM_LIMIT,
        ),
    )(qkv, qkv, qkv)


# ------------------------------ module wrapper --------------------------------

def gpt2_attention_forward(hidden_states, params, num_heads):
    """GPT2Attention.forward (self-attn, no past, no extra masks, eval mode)."""
    B, T, C = hidden_states.shape
    head_dim = C // num_heads
    HB = _heads_per_block(num_heads, head_dim)      # heads packed per attention step
    HG = num_heads // HB

    x2d = hidden_states.reshape(B * T, C)

    # c_attn: Conv1D(3C, C)
    qkv = pallas_linear(x2d, params["c_attn_w"], params["c_attn_b"])      # [B*T, 3C]
    # Contiguous (free) reshape: q groups at [0, HG), k at [HG, 2HG), v at [2HG, 3HG)
    # along axis 2 -- no XLA transposes, attention indexes this layout directly.
    qkv = qkv.reshape(B, T, 3 * HG, HB, head_dim)

    attn = pallas_causal_attention(qkv, num_groups=HG, heads_per_group=HB,
                                   head_dim=head_dim)                     # [B,T,HG,HB,D]
    attn = attn.reshape(B * T, C)                                         # free reshape

    # c_proj: Conv1D(C, C)
    out = pallas_linear(attn, params["c_proj_w"], params["c_proj_b"])
    out = out.reshape(B, T, C)

    # attn_dropout / resid_dropout: identity in eval mode.
    # TODO(synk): layer_past / use_cache, cross-attention (q_attn), attention_mask,
    # head_mask, output_attentions, scale_attn_by_inverse_layer_idx and
    # reorder_and_upcast_attn paths are not implemented (defaults off / eval mode).
    present = None   # use_cache=False
    return out, present


# --------------------------------- reference -----------------------------------

def reference_forward(hidden_states, params, num_heads):
    B, T, C = hidden_states.shape
    D = C // num_heads
    hp = jax.lax.Precision.HIGHEST
    x = hidden_states.reshape(B * T, C)
    qkv = jnp.dot(x, params["c_attn_w"], precision=hp) + params["c_attn_b"]
    qkv = qkv.reshape(B, T, 3 * C)
    q, k, v = jnp.split(qkv, 3, axis=-1)
    q = q.reshape(B, T, num_heads, D).transpose(0, 2, 1, 3)
    k = k.reshape(B, T, num_heads, D).transpose(0, 2, 1, 3)
    v = v.reshape(B, T, num_heads, D).transpose(0, 2, 1, 3)
    s = jnp.einsum("bhqd,bhkd->bhqk", q, k, precision=hp) / math.sqrt(D)
    mask = jnp.tril(jnp.ones((T, T), dtype=bool))
    s = jnp.where(mask[None, None], s, jnp.finfo(s.dtype).min)
    p = jax.nn.softmax(s, axis=-1)
    o = jnp.einsum("bhqk,bhkd->bhqd", p, v, precision=hp)
    o = o.transpose(0, 2, 1, 3).reshape(B * T, C)
    o = jnp.dot(o, params["c_proj_w"], precision=hp) + params["c_proj_b"]
    return o.reshape(B, T, C)


# ----------------------------------- main ---------------------------------------

if __name__ == "__main__":
    # Small GPT-2-like config with the real head_dim=64: hidden=256, heads=4,
    # seq=512, batch=2 -> exercises multi-block GEMM grids, 2 heads per attention
    # step, causal block skipping and the clamped KV index_map.
    B, T, C, H = 2, 512, 256, 4

    key = jax.random.PRNGKey(0)
    k_x, k_w1, k_b1, k_w2, k_b2 = jax.random.split(key, 5)

    hidden_states = jax.random.normal(k_x, (B, T, C), dtype=jnp.float32)

    params = {
        # Conv1D weights are [in_features, out_features] (HF convention)
        "c_attn_w": 0.02 * jax.random.normal(k_w1, (C, 3 * C), dtype=jnp.float32),
        "c_attn_b": 0.01 * jax.random.normal(k_b1, (3 * C,), dtype=jnp.float32),
        "c_proj_w": 0.02 * jax.random.normal(k_w2, (C, C), dtype=jnp.float32),
        "c_proj_b": 0.01 * jax.random.normal(k_b2, (C,), dtype=jnp.float32),
    }

    out, present = gpt2_attention_forward(hidden_states, params, num_heads=H)
    out = jax.block_until_ready(out)

    ref = jax.block_until_ready(reference_forward(hidden_states, params, num_heads=H))

    assert out.shape == (B, T, C)
    assert present is None
    max_err = float(jnp.max(jnp.abs(out - ref)))
    assert jnp.allclose(out, ref, atol=5e-3, rtol=1e-2), f"mismatch vs reference (max abs err {max_err})"

    print("KERNEL_OK")
</pallas_src>

<mosaic_0001>
module attributes {stable_mosaic.version = 11 : i64} {
  func.func @_linear_kernel(%arg0: i32, %arg1: i32, %arg2: memref<512x256xf32, #tpu.memory_space<vmem>>, %arg3: memref<256x384xf32, #tpu.memory_space<vmem>>, %arg4: memref<1x384xf32, #tpu.memory_space<vmem>>, %arg5: memref<512x384xf32, #tpu.memory_space<vmem>>) attributes {dimension_semantics = [#tpu.dimension_semantics<parallel>, #tpu.dimension_semantics<parallel>], iteration_bounds = array<i64: 2, 2>, scalar_prefetch = 0 : i64, scratch_operands = 0 : i64, tpu.core_type = #tpu.core_type<tc>, window_params = [{transform_indices = @transform_0, window_bounds = array<i64: 512, 256>}, {transform_indices = @transform_1, window_bounds = array<i64: 256, 384>}, {transform_indices = @transform_2, window_bounds = array<i64: 1, 384>}, {transform_indices = @transform_3, window_bounds = array<i64: 512, 384>}]} {
    %c0 = arith.constant 0 : index
    %c0_0 = arith.constant 0 : index
    %0 = vector.load %arg2[%c0, %c0_0] : memref<512x256xf32, #tpu.memory_space<vmem>>, vector<512x256xf32>
    %c0_1 = arith.constant 0 : index
    %c0_2 = arith.constant 0 : index
    %1 = vector.load %arg3[%c0_1, %c0_2] : memref<256x384xf32, #tpu.memory_space<vmem>>, vector<256x384xf32>
    %cst = arith.constant dense<0.000000e+00> : vector<512x384xf32>
    %2 = tpu.matmul %0, %1, %cst {dimension_numbers = #tpu.dot_dimension_numbers<[1], [0], [0], [1], [0, 0, 1, 1], [], []>} : vector<512x256xf32>, vector<256x384xf32>, vector<512x384xf32> -> vector<512x384xf32>
    %c0_3 = arith.constant 0 : index
    %c0_4 = arith.constant 0 : index
    %3 = vector.load %arg4[%c0_3, %c0_4] : memref<1x384xf32, #tpu.memory_space<vmem>>, vector<1x384xf32>
    %4 = vector.broadcast %3 : vector<1x384xf32> to vector<512x384xf32>
    %5 = arith.addf %2, %4 : vector<512x384xf32>
    %c0_5 = arith.constant 0 : index
    %c0_6 = arith.constant 0 : index
    %6 = vector.load %arg5[%c0_5, %c0_6] : memref<512x384xf32, #tpu.memory_space<vmem>>, vector<512x384xf32>
    tpu.vector_store %arg5[%c0_5, %c0_6], %5 {strides = array<i32>} : memref<512x384xf32, #tpu.memory_space<vmem>>, vector<512x384xf32>,
    return
  }
  func.func @transform_0(%arg0: i32, %arg1: i32) -> (i32, i32) {
    %c0_i32 = arith.constant 0 : i32
    %c0_i32_0 = arith.constant 0 : i32
    return %arg0, %c0_i32 : i32, i32
  }
  func.func @transform_1(%arg0: i32, %arg1: i32) -> (i32, i32) {
    %c0_i32 = arith.constant 0 : i32
    %c0_i32_0 = arith.constant 0 : i32
    return %c0_i32, %arg1 : i32, i32
  }
  func.func @transform_2(%arg0: i32, %arg1: i32) -> (i32, i32) {
    %c0_i32 = arith.constant 0 : i32
    %c0_i32_0 = arith.constant 0 : i32
    return %c0_i32, %arg1 : i32, i32
  }
  func.func @transform_3(%arg0: i32, %arg1: i32) -> (i32, i32) {
    %c0_i32 = arith.constant 0 : i32
    return %arg0, %arg1 : i32, i32
  }
}

</mosaic_0001>

<bundles_post_ra>
// kernel: tpu_custom_call.1
= control target key start
LH: loop header
LB: loop body
LE: loop exit
PB: predicated region body
PF: predicated region fallthrough
CT: control target
= control target key end

     0   :  { %s3809_s0 = inlined_call_operand.hbm [shape: f32[1024,256], index: 0, kind: input, shape index: {}]   ;;  %s3810_s1 = inlined_call_operand.hbm [shape: f32[256,768], index: 1, kind: input, shape index: {}]   ;;  %s3811_s2 = inlined_call_operand.hbm [shape: f32[1,768], index: 2, kind: input, shape index: {}]   ;;  %s3812_s3 = inlined_call_operand.hbm [shape: f32[1024,768], index: 3, kind: output, shape index: {}]  }
   0x1   :  { %3824 = sst [smem:[#allocation24_spill]] %s3809_s0 }
   0x2   :  { %3825 = sst [smem:[#allocation25_spill]] %s3810_s1 }
   0x3   :  { %3826 = sst [smem:[#allocation26_spill]] %s3812_s3 }
   0x4   :  { %8 = vsyncpa [#allocation3], 0 }
   0x5   :  { %10 = vsyncpa [#allocation3 + $0x1], 0 }
   0x6   :  { %11 = vsyncpa [#allocation6], 0 }
   0x7   :  { %13 = vsyncpa [#allocation6 + $0x1], 0 }
   0x8   :  { %14 = vsyncpa [#allocation4], 0 }
   0x9   :  { %16 = vsyncpa [#allocation4 + $0x1], 0  ;;  %s2699_s12 = smov 0   ;;  %s2701_s13 = smov 0  }
   0xa   :  { %s2703_s14 = smov 0   ;;  %s2705_s15 = smov 0  }
   0xb   :  { %s2707_s16 = smov 0   ;;  %s2709_s17 = smov 0  }
   0xc   :  { %s2711_s18 = smov 0   ;;  %s2713_s19 = smov 0  }
   0xd   :  { %s2715_s20 = smov 0   ;;  %s2717_s21 = smov 0  }
   0xe   :  { %s2719_s22 = smov 0   ;;  %s2721_s23 = smov 0  }
   0xf   :  { %s2723_s24 = smov 0   ;;  %s2725_s25 = smov 0  }
  0x10 LB: > { %3827 = sst [smem:[#allocation12_spill]] %s2617_s12  ;;  %s31_s26 = sadd.s32 1, %s2661_s23  ;;  %s2669_s25 = sphi %s2725_s25, %s22_s25   ;;  %s2665_s24 = sphi %s2723_s24, %s3863_s24   ;;  %s2661_s23 = sphi %s2721_s23, %s3872_s23   ;;  %s2657_s22 = sphi %s2719_s22, %s3861_s22   ;;  %s2653_s21 = sphi %s2717_s21, %s3871_s21   ;;  %s2649_s20 = sphi %s2715_s20, %s3860_s20   ;;  %s2645_s19 = sphi %s2713_s19, %s3870_s19   ;;  %s2641_s18 = sphi %s2711_s18, %s3869_s18   ;;  %s2637_s17 = sphi %s2709_s17, %s3868_s17   ;;  %s2633_s16 = sphi %s2707_s16, %s3867_s16   ;;  %s2629_s15 = sphi %s2705_s15, %s3866_s15   ;;  %s2625_s14 = sphi %s2703_s14, %s3857_s14   ;;  %s2621_s13 = sphi %s2701_s13, %s3865_s13   ;;  %s2617_s12 = sphi %s2699_s12, %s3864_s12  }
  0x11   : > { %3828 = sst [smem:[#allocation13_spill]] %s2625_s14  ;;  %p49_p0 = scmp.eq.s32.totalorder %s2669_s25, 0 }
  0x12   : > { %3829 = sst [smem:[#allocation14_spill]] %s2649_s20  ;;  %p74_p1 = scmp.ne.s32.totalorder %s2637_s17, %s2633_s16 }
  0x13   : > { %3830 = sst [smem:[#allocation15_spill]] %s2657_s22  ;;  %p80_p2 = scmp.ne.s32.totalorder %s2633_s16, %s2629_s15 }
  0x14   : > { %3831 = sst [smem:[#allocation16_spill]] %s2665_s24  ;;  %p76_p3 = por %p74_p1, %p49_p0 }
  0x15   : > { %p2195_p4 = scmp.lt.s32.totalorder %s2669_s25, 4  ;;  %s181_s28 = sand.u32 1, %s2669_s25  }
  0x16   : > { %s3813_s29 = sand.u32 1, %s2637_s17   ;;  %s2134_s4 = smul.u32 24, %s2661_s23 }
  0x17   : > { %s2167_s30 = smul.u32 768, %s3813_s29  ;;  %p2786_p5 = pnand %p2195_p4, %p76_p3 }
  0x18   : > { %s3833_s1 = sld [smem:[#allocation25_spill]]  ;;  %s2793_s29 = scalar_lea.sflag [#allocation6], %s181_s28 }
  0x19   : > { %s185_s9 = scalar_lea.vmem [#allocation5], %s2167_s30  ;;  %s2671_s6 = smov 768  }
  0x1a   : > { %s193_s10 = sshll.u32 %s185_s9, 4  ;;  %s2672_s7 = smov 384   ;;  %s194_s10 = int_to_ptr.vmem [resolvable:$true] %s193_s10 }
  0x1b   : > { %p2125_p6 = scmp.ge.s32.totalorder %s2669_s25, 1  ;;  %p220_p7 = scmp.lt.s32.totalorder %s2669_s25, 5 }
  0x1c   : > { %s2117_s28 = sadd.s32 4294967294, %s2669_s25   ;;  %p32_p9 = scmp.ge.s32.totalorder %s31_s26, 2 }
  0x1d   : > { %p2800_p8 = pnand %p2125_p6, %p220_p7  ;;  %s34_s9 = sadd.s32 1, %s2665_s24 }
  0x1e   : > { %s190_s8 = scalar_lea.hbm %s3833_s1, %s2134_s4  ;;  %s2673_s4 = smov 24  }
  0x1f   : > { %s191_s11 = sshll.u32 %s190_s8, 4  ;;  %s2805_s8 = sadd.s32 4294967295, %s2669_s25   ;;  %s192_s11 = int_to_ptr.hbm [resolvable:$true] %s191_s11 }
  0x20   : > { %2187 = dma.hbm_to_vmem [thread:$0]  (!%p2786_p5), %s192_s11, 12288, %s194_s10, %s2793_s29, %s2671_s6, %s2672_s7, %s2673_s4  }
  0x21   : > { %s41_s27 = sadd.s32 1, %s2649_s20  ;;  %s3874_s26 = smov (%p32_p9, %s31_s26), 0 }
  0x22   : > { %3835 = sst [smem:[#allocation17_spill]] %s3874_s26  ;;  %s3876_s9 = smov (!%p32_p9, %s34_s9), %s2665_s24 }
  0x23   : > { %p48_p10 = scmp.ne.s32.totalorder %s2649_s20, %s2645_s19  ;;  %p54_p11 = scmp.ne.s32.totalorder %s2645_s19, %s2641_s18 }
  0x24   : > { %p36_p12 = scmp.ge.s32.totalorder %s3876_s9, 2  ;;  %p55_p13 = scmp.eq.s32.totalorder %s2805_s8, 0 }
  0x25   : > { %p2824_p1 = por %p49_p0, %p48_p10  ;;  %s64_s11 = ssub.s32 %s2661_s23, %s3874_s26 }
  0x26   : > { %s3878_s9 = smov (%p36_p12, %s3876_s9), 0  ;;  %p2832_p3 = por %p55_p13, %p54_p11 }
  0x27   : > { %3837 = sst [smem:[#allocation18_spill]] %s3878_s9  ;;  %p65_p6 = scmp.eq.s32.totalorder %s64_s11, 0 }
  0x28   : > { %s38_s18 = ssub.s32 %s2665_s24, %s3878_s9  ;;  %p2841_p7 = por %p80_p2, %p55_p13 }
  0x29   : > { %p39_p0 = scmp.eq.s32.totalorder %s38_s18, 0  ;;  %s118_s4 = sor.u32 %s64_s11, %s38_s18 }
  0x2a   : > { %s3840_s1 = sadd.s32 1, %s2637_s17  ;;  %p119_p9 = scmp.eq.s32.totalorder %s118_s4, 0 }
  0x2b   : > { %s2848_s26 = scalar_select %p65_p6, %s2637_s17, %s3840_s1  }
  0x2c   : > { %s2851_s3 = scalar_select %p39_p0, %s2649_s20, %s41_s27  }
  0x2d   : > { %3841 = sst [smem:[#allocation19_spill]] %s2848_s26  ;;  %s121_s22 = sadd.s32 1, %s2625_s14 }
  0x2e   : > { %3842 = sst [smem:[#allocation20_spill]] %s2851_s3  ;;  %p131_p10 = scmp.ne.s32.totalorder %s2625_s14, %s2621_s13 }
  0x2f   : > { %p132_p11 = scmp.eq.s32.totalorder %s2805_s8, 3  ;;  %p137_p12 = scmp.ne.s32.totalorder %s2621_s13, %s2617_s12 }
  0x30   : > { %s2858_s9 = scalar_select %p119_p9, %s2625_s14, %s121_s22  }
  0x31   : > { %p2860_p2 = por %p132_p11, %p131_p10  ;;  %p138_p13 = scmp.eq.s32.totalorder %s2117_s28, 3 }
  0x32   : > { %3843 = sst [smem:[#allocation21_spill]] %s2858_s9  ;;  %s158_s11 = sand.u32 1, %s2649_s20  }
  0x33   : > { %s3844_s15 = scalar_select %p2860_p2, 1, 0 }
  0x34   : > { %s2120_s1 = sshll.u32 %s158_s11, 10  ;;  %p2867_p6 = por %p138_p13, %p137_p12 }
  0x35   : > { %3845 = sst [smem:[#allocation22_spill]] %s3844_s15  ;;  %s2133_s18 = sshll.u32 %s2665_s24, 10 }
  0x36   : > { %s3846_s27 = scalar_select %p2867_p6, 1, 0 }
  0x37   : > { %s162_s4 = scalar_lea.vmem [#allocation2], %s2120_s1  ;;  %s3848_s0 = sld [smem:[#allocation24_spill]] }
  0x38   : > { %3847 = sst [smem:[#allocation23_spill]] %s3846_s27  ;;  %s171_s3 = sshll.u32 %s162_s4, 4  ;;  %s172_s3 = int_to_ptr.vmem [resolvable:$true] %s171_s3 }
  0x39   : > { %p2182_p0 = pnand %p2195_p4, %p2824_p1  ;;  %s159_s28 = scalar_lea.sflag [#allocation3], %s158_s11 }
  0x3a   : > { %s2674_s20 = smov 256   ;;  %s2675_s12 = smov 16  }
  0x3b   : > { %s3849_s27 = sand.u32 1, %s2637_s17   ;;  %s208_s1 = smul.u32 3, %s2661_s23 }
  0x3c   : > { %s2168_s24 = smul.u32 3, %s3849_s27 }
  0x3d   : > { %s168_s9 = scalar_lea.hbm %s3848_s0, %s2133_s18  ;;  %s211_s26 = scalar_lea.hbm %s3811_s2, %s208_s1 }
  0x3e   : > { %s169_s14 = sshll.u32 %s168_s9, 4  ;;  %s207_s18 = scalar_lea.vmem [#allocation7], %s2168_s24  ;;  %s170_s14 = int_to_ptr.hbm [resolvable:$true] %s169_s14 }
  0x3f   : > { %2184 = dma.hbm_to_vmem [thread:$0]  (!%p2182_p0), %s170_s14, 16384, %s172_s3, %s159_s28, %s2674_s20, %s2674_s20, %s2675_s12  }
  0x40   : > { %s215_s22 = sshll.u32 %s207_s18, 4  ;;  %s213_s0 = sshll.u32 %s211_s26, 4  ;;  %s216_s22 = int_to_ptr.vmem [resolvable:$true] %s215_s22  ;;  %s214_s0 = int_to_ptr.hbm [resolvable:$true] %s213_s0 }
  0x41   : > { %2190 = dma.hbm_to_vmem [thread:$0]  (!%p2786_p5), %s214_s0, 48, %s216_s22, %s2793_s29  }
  0x42   : > { %224 = sbr.rel (%p2800_p8) target bundleno = 1010 (0x3f2), region = 32  ;;  %s226_s3 = sand.u32 (!%p2800_p8), 1, %s2645_s19  }
  0x43   : > { %s2126_s12 = sshll.u32 (!%p2800_p8), %s226_s3, 10  ;;  %s227_s14 = scalar_lea.sflag (!%p2800_p8), [#allocation3], %s226_s3 }
  0x44   : > { %s2891_s20 = scalar_lea.vmem (!%p2800_p8), [#allocation2], %s2126_s12 }
  0x47   : > { %2604 = dma.done.wait (%p2832_p3), %s227_s14, 16384  }
  0x48   : > { %2606 = vsyncadd (%p2832_p3), %s227_s14, 4294950912  ;;  %s236_s0 = sand.u32 1, %s2805_s8   ;;  %s238_s24 = sand.u32 1, %s2633_s16  }
  0x49   : > { %s2169_s29 = smul.u32 768, %s238_s24  ;;  %s237_s5 = scalar_lea.sflag [#allocation6], %s236_s0 }
  0x4b   : > { %s2901_s30 = scalar_lea.vmem [#allocation5], %s2169_s29 }
  0x4c   : > { %2608 = dma.done.wait (%p2841_p7), %s237_s5, 12336  }
  0x4d   : > { %2610 = vsyncadd (%p2841_p7), %s237_s5, 4294954960  ;;  %v462_v0 = vld [vmem:[%s2901_s30 + $0x168] sm:$0xff]  ;;  %v459_v1 = vld [vmem:[%s2901_s30 + $0x150] sm:$0xff]  ;;  %s3039_s8 = smul.u32 3, %s238_s24  ;;  %s281_s10 = sand.u32 1, %s2621_s13  }
  0x4e   : > { %v510_v2 = vld [vmem:[%s2901_s30 + $0x2e8] sm:$0xff]  ;;  %2135 = vmatpush.msra.mxu2 %v462_v0  ;;  %v507_v3 = vld [vmem:[%s2901_s30 + $0x2d0] sm:$0xff]  ;;  %v456_v4 = vld [vmem:[%s2901_s30 + $0x138] sm:$0xff]  ;;  %521 = vmatpush.msra.mxu0 %v462_v0  ;;  %s2171_s6 = smul.u32 1536, %s281_s10  ;;  %s3850_s15 = sld [smem:[#allocation15_spill]] }
  0x4f   : > { %2151 = vmatpush.msra.mxu3 %v510_v2  ;;  %v504_v5 = vld [vmem:[%s2901_s30 + $0x2b8] sm:$0xff]  ;;  %730 = vmatpush.msra.mxu1 %v510_v2  ;;  %v453_v6 = vld [vmem:[%s2901_s30 + $0x120] sm:$0xff]  ;;  %v450_v8 = vld [vmem:[%s2901_s30 + $0x108] sm:$0xff]  ;;  %s250_s9 = scalar_lea.vmem [#allocation7], %s3039_s8  ;;  %s1976_s11 = smul.u32 3, %s2653_s21 }
  0x50   : > { %2136 = vmatpush.msra.mxu2 %v459_v1  ;;  %522 = vmatpush.msra.mxu0 %v459_v1  ;;  %v501_v7 = vld [vmem:[%s2901_s30 + $0x2a0] sm:$0xff]  ;;  %v498_v9 = vld [vmem:[%s2901_s30 + $0x288] sm:$0xff]  ;;  %v447_v10 = vld [vmem:[%s2901_s30 + $0xf0] sm:$0xff]  ;;  %s3063_s7 = scalar_lea.vmem [#allocation8], %s2171_s6  ;;  %s3851_s26 = sld [smem:[#allocation26_spill]] }
  0x51   : > { %2152 = vmatpush.msra.mxu3 %v507_v3  ;;  %731 = vmatpush.msra.mxu1 %v507_v3  ;;  %v495_v11 = vld [vmem:[%s2901_s30 + $0x270] sm:$0xff]  ;;  %v444_v12 = vld [vmem:[%s2901_s30 + $0xd8] sm:$0xff]  ;;  %v441_v14 = vld [vmem:[%s2901_s30 + $0xc0] sm:$0xff]  ;;  %s1983_s22 = sshll.u32 %s3063_s7, 4  ;;  %s1968_s14 = scalar_lea.sflag [#allocation4], %s281_s10  ;;  %s1984_s22 = int_to_ptr.vmem [resolvable:$true] %s1983_s22 }
  0x52   : > { %2137 = vmatpush.msra.mxu2 %v456_v4  ;;  %523 = vmatpush.msra.mxu0 %v456_v4  ;;  %v492_v13 = vld [vmem:[%s2901_s30 + $0x258] sm:$0xff]  ;;  %v489_v15 = vld [vmem:[%s2901_s30 + $0x240] sm:$0xff]  ;;  %v438_v16 = vld [vmem:[%s2901_s30 + $0xa8] sm:$0xff] }
  0x53   : > { %2153 = vmatpush.msra.mxu3 %v504_v5  ;;  %732 = vmatpush.msra.mxu1 %v504_v5  ;;  %v486_v17 = vld [vmem:[%s2901_s30 + $0x228] sm:$0xff]  ;;  %v435_v18 = vld [vmem:[%s2901_s30 + $0x90] sm:$0xff]  ;;  %v432_v20 = vld [vmem:[%s2901_s30 + $0x78] sm:$0xff] }
  0x54   : > { %2138 = vmatpush.msra.mxu2 %v453_v6  ;;  %524 = vmatpush.msra.mxu0 %v453_v6  ;;  %v483_v19 = vld [vmem:[%s2901_s30 + $0x210] sm:$0xff]  ;;  %v480_v21 = vld [vmem:[%s2901_s30 + $0x1f8] sm:$0xff]  ;;  %v429_v22 = vld [vmem:[%s2901_s30 + $0x60] sm:$0xff]  ;;  %s2172_s27 = smul.u32 384, %s3850_s15 }
  0x55   : > { %2154 = vmatpush.msra.mxu3 %v501_v7  ;;  %733 = vmatpush.msra.mxu1 %v501_v7  ;;  %v477_v23 = vld [vmem:[%s2901_s30 + $0x1e0] sm:$0xff]  ;;  %v426_v24 = vld [vmem:[%s2901_s30 + $0x48] sm:$0xff]  ;;  %v423_v26 = vld [vmem:[%s2901_s30 + $0x30] sm:$0xff] }
  0x56   : > { %2139 = vmatpush.msra.mxu2 %v450_v8  ;;  %525 = vmatpush.msra.mxu0 %v450_v8  ;;  %v474_v25 = vld [vmem:[%s2901_s30 + $0x1c8] sm:$0xff]  ;;  %v471_v27 = vld [vmem:[%s2901_s30 + $0x1b0] sm:$0xff]  ;;  %v420_v28 = vld [vmem:[%s2901_s30 + $0x18] sm:$0xff]  ;;  %s1980_s28 = sadd.s32 %s2172_s27, %s1976_s11  ;;  %s2539_s5 = scalar_lea.hbm %s3851_s26, 6144 }
  0x57   : > { %2155 = vmatpush.msra.mxu3 %v498_v9  ;;  %734 = vmatpush.msra.mxu1 %v498_v9  ;;  %v468_v29 = vld [vmem:[%s2901_s30 + $0x198] sm:$0xff]  ;;  %v417_v30 = vld [vmem:[%s2901_s30] sm:$0xff]  ;;  %v354_v33 = vld [vmem:[%s2891_s20 + $0x208] sm:$0xff]  ;;  %s2129_s1 = sshll.u32 %s1980_s28, 3 }
  0x58   : > { %2140 = vmatpush.msra.mxu2 %v447_v10  ;;  %526 = vmatpush.msra.mxu0 %v447_v10  ;;  %v465_v31 = vld [vmem:[%s2901_s30 + $0x180] sm:$0xff]  ;;  %v463_v34 = vld [vmem:[%s2901_s30 + $0x170] sm:$0xff]  ;;  %v290_v37 = vld [vmem:[%s2891_s20 + $0x8] sm:$0xff]  ;;  %s1982_s18 = scalar_lea.hbm %s3851_s26, %s2129_s1 }
  0x59   : > { %2156 = vmatpush.msra.mxu3 %v495_v11  ;;  %735 = vmatpush.msra.mxu1 %v495_v11  ;;  %v353_v32 = vld [vmem:[%s2891_s20 + $0x200] sm:$0xff]  ;;  %v511_v35 = vld [vmem:[%s2901_s30 + $0x2f0] sm:$0xff]  ;;  %v464_v38 = vld [vmem:[%s2901_s30 + $0x178] sm:$0xff]  ;;  %s1985_s12 = sshll.u32 %s1982_s18, 4  ;;  %s1986_s12 = int_to_ptr.hbm [resolvable:$true] %s1985_s12 }
  0x5a   : > { %2141 = vmatpush.msra.mxu2 %v444_v12  ;;  %527 = vmatpush.msra.mxu0 %v444_v12  ;;  %v289_v36 = vld [vmem:[%s2891_s20] sm:$0xff]  ;;  %v512_v39 = vld [vmem:[%s2901_s30 + $0x2f8] sm:$0xff]  ;;  %v355_v46 = vld [vmem:[%s2891_s20 + $0x210] sm:$0xff] }
  0x5b   : > { %2157 = vmatpush.msra.mxu3 %v492_v13  ;;  %736 = vmatpush.msra.mxu1 %v492_v13  ;;  %v460_v40 = vld [vmem:[%s2901_s30 + $0x158] sm:$0xff]  ;;  %v461_v42 = vld [vmem:[%s2901_s30 + $0x160] sm:$0xff]  ;;  %v458_v48 = vld [vmem:[%s2901_s30 + $0x148] sm:$0xff] }
  0x5c   : > { %2142 = vmatpush.msra.mxu2 %v441_v14  ;;  %528 = vmatpush.msra.mxu0 %v441_v14  ;;  %v508_v41 = vld [vmem:[%s2901_s30 + $0x2d8] sm:$0xff]  ;;  %v509_v43 = vld [vmem:[%s2901_s30 + $0x2e0] sm:$0xff]  ;;  %v291_v49 = vld [vmem:[%s2891_s20 + $0x10] sm:$0xff] }
  0x5d   : > { %2158 = vmatpush.msra.mxu3 %v489_v15  ;;  %737 = vmatpush.msra.mxu1 %v489_v15  ;;  %v457_v44 = vld [vmem:[%s2901_s30 + $0x140] sm:$0xff]  ;;  %v356_v47 = vld [vmem:[%s2891_s20 + $0x218] sm:$0xff]  ;;  %v506_v51 = vld [vmem:[%s2901_s30 + $0x2c8] sm:$0xff] }
  0x5e   : > { %2143 = vmatpush.msra.mxu2 %v438_v16  ;;  %529 = vmatpush.msra.mxu0 %v438_v16  ;;  %v505_v45 = vld [vmem:[%s2901_s30 + $0x2c0] sm:$0xff]  ;;  %v292_v50 = vld [vmem:[%s2891_s20 + $0x18] sm:$0xff]  ;;  %v358_v53 = vld [vmem:[%s2891_s20 + $0x228] sm:$0xff] }
  0x5f   : > { %2159 = vmatpush.msra.mxu3 %v486_v17  ;;  %738 = vmatpush.msra.mxu1 %v486_v17  ;;  %v357_v52 = vld [vmem:[%s2891_s20 + $0x220] sm:$0xff]  ;;  %v294_v55 = vld [vmem:[%s2891_s20 + $0x28] sm:$0xff]  ;;  %v455_v58 = vld [vmem:[%s2901_s30 + $0x130] sm:$0xff] }
  0x60   : > { %2144 = vmatpush.msra.mxu2 %v435_v18  ;;  %530 = vmatpush.msra.mxu0 %v435_v18  ;;  %v293_v54 = vld [vmem:[%s2891_s20 + $0x20] sm:$0xff]  ;;  %v454_v56 = vld [vmem:[%s2901_s30 + $0x128] sm:$0xff]  ;;  %v359_v59 = vld [vmem:[%s2891_s20 + $0x230] sm:$0xff] }
  0x61   : > { %2160 = vmatpush.msra.mxu3 %v483_v19  ;;  %739 = vmatpush.msra.mxu1 %v483_v19  ;;  %v502_v57 = vld [vmem:[%s2901_s30 + $0x2a8] sm:$0xff]  ;;  %v360_v60 = vld [vmem:[%s2891_s20 + $0x238] sm:$0xff]  ;;  %v295_v61 = vld [vmem:[%s2891_s20 + $0x30] sm:$0xff] }
  0x62   : > { %2145 = vmatpush.msra.mxu2 %v432_v20  ;;  %531 = vmatpush.msra.mxu0 %v432_v20  ;;  %v296_v62 = vld [vmem:[%s2891_s20 + $0x38] sm:$0xff]  ;;  %v503_v63 = vld [vmem:[%s2901_s30 + $0x2b0] sm:$0xff]  ;;  %v361_v0 = vld [vmem:[%s2891_s20 + $0x240] sm:$0xff] }
  0x63   : > { %2161 = vmatpush.msra.mxu3 %v480_v21  ;;  %740 = vmatpush.msra.mxu1 %v480_v21  ;;  %v362_v1 = vld [vmem:[%s2891_s20 + $0x248] sm:$0xff]  ;;  %v297_v2 = vld [vmem:[%s2891_s20 + $0x40] sm:$0xff]  ;;  %v451_v4 = vld [vmem:[%s2901_s30 + $0x110] sm:$0xff] }
  0x64   : > { %2146 = vmatpush.msra.mxu2 %v429_v22  ;;  %532 = vmatpush.msra.mxu0 %v429_v22  ;;  %v298_v3 = vld [vmem:[%s2891_s20 + $0x48] sm:$0xff]  ;;  %v499_v5 = vld [vmem:[%s2901_s30 + $0x290] sm:$0xff]  ;;  %v452_v6 = vld [vmem:[%s2901_s30 + $0x118] sm:$0xff] }
  0x65   : > { %2162 = vmatpush.msra.mxu3 %v477_v23  ;;  %741 = vmatpush.msra.mxu1 %v477_v23  ;;  %v363_v7 = vld [vmem:[%s2891_s20 + $0x250] sm:$0xff]  ;;  %v364_v8 = vld [vmem:[%s2891_s20 + $0x258] sm:$0xff]  ;;  %v365_v12 = vld [vmem:[%s2891_s20 + $0x260] sm:$0xff] }
  0x66   : > { %2147 = vmatpush.msra.mxu2 %v426_v24  ;;  %533 = vmatpush.msra.mxu0 %v426_v24  ;;  %v299_v9 = vld [vmem:[%s2891_s20 + $0x50] sm:$0xff]  ;;  %v300_v10 = vld [vmem:[%s2891_s20 + $0x58] sm:$0xff]  ;;  %v366_v13 = vld [vmem:[%s2891_s20 + $0x268] sm:$0xff] }
  0x67   : > { %2163 = vmatpush.msra.mxu3 %v474_v25  ;;  %742 = vmatpush.msra.mxu1 %v474_v25  ;;  %v500_v11 = vld [vmem:[%s2901_s30 + $0x298] sm:$0xff]  ;;  %v301_v14 = vld [vmem:[%s2891_s20 + $0x60] sm:$0xff]  ;;  %v302_v15 = vld [vmem:[%s2891_s20 + $0x68] sm:$0xff] }
  0x68   : > { %2148 = vmatpush.msra.mxu2 %v423_v26  ;;  %534 = vmatpush.msra.mxu0 %v423_v26  ;;  %v448_v16 = vld [vmem:[%s2901_s30 + $0xf8] sm:$0xff]  ;;  %v449_v18 = vld [vmem:[%s2901_s30 + $0x100] sm:$0xff]  ;;  %v367_v19 = vld [vmem:[%s2891_s20 + $0x270] sm:$0xff] }
  0x69   : > { %2164 = vmatpush.msra.mxu3 %v471_v27  ;;  %743 = vmatpush.msra.mxu1 %v471_v27  ;;  %v496_v17 = vld [vmem:[%s2901_s30 + $0x278] sm:$0xff]  ;;  %v303_v21 = vld [vmem:[%s2891_s20 + $0x70] sm:$0xff]  ;;  %v497_v23 = vld [vmem:[%s2901_s30 + $0x280] sm:$0xff] }
  0x6a   : > { %2149 = vmatpush.msra.mxu2 %v420_v28  ;;  %535 = vmatpush.msra.mxu0 %v420_v28  ;;  %v368_v20 = vld [vmem:[%s2891_s20 + $0x278] sm:$0xff]  ;;  %v369_v24 = vld [vmem:[%s2891_s20 + $0x280] sm:$0xff]  ;;  %v370_v25 = vld [vmem:[%s2891_s20 + $0x288] sm:$0xff] }
  0x6b   : > { %2165 = vmatpush.msra.mxu3 %v468_v29  ;;  %744 = vmatpush.msra.mxu1 %v468_v29  ;;  %v304_v22 = vld [vmem:[%s2891_s20 + $0x78] sm:$0xff]  ;;  %v305_v26 = vld [vmem:[%s2891_s20 + $0x80] sm:$0xff]  ;;  %v306_v27 = vld [vmem:[%s2891_s20 + $0x88] sm:$0xff] }
  0x6c   : > { %2150 = vmatpush.msra.mxu2 %v417_v30  ;;  %536 = vmatpush.msra.mxu0 %v417_v30  ;;  %v445_v28 = vld [vmem:[%s2901_s30 + $0xe0] sm:$0xff]  ;;  %v446_v30 = vld [vmem:[%s2901_s30 + $0xe8] sm:$0xff] }
  0x6d   : > { %2166 = vmatpush.msra.mxu3 %v465_v31  ;;  %633 = vmatmul.f32.vlgmr.msra.gmra.mxu2 %v353_v32  ;;  %v493_v29 = vld [vmem:[%s2901_s30 + $0x260] sm:$0xff]  ;;  %v372_v32 = vld [vmem:[%s2891_s20 + $0x298] sm:$0xff] }
  0x6e   : > { %842 = vmatmul.f32.vlgmr.msra.gmra.mxu3 %v354_v33  ;;  %939 = vmatpush.msrb.mxu2 %v463_v34  ;;  %v307_v33 = vld [vmem:[%s2891_s20 + $0x90] sm:$0xff]  ;;  %v308_v34 = vld [vmem:[%s2891_s20 + $0x98] sm:$0xff] }
  0x6f   : > { %1148 = vmatpush.msrb.mxu3 %v511_v35  ;;  %745 = vmatpush.msra.mxu1 %v465_v31  ;;  %v371_v31 = vld [vmem:[%s2891_s20 + $0x290] sm:$0xff]  ;;  %v494_v35 = vld [vmem:[%s2901_s30 + $0x268] sm:$0xff] }
  0x70   : > { %537 = vmatmul.f32.vlgmr.msra.gmra.mxu0 %v289_v36  ;;  %746 = vmatmul.f32.vlgmr.msra.gmra.mxu1 %v290_v37  ;;  %v373_v36 = vld [vmem:[%s2891_s20 + $0x2a0] sm:$0xff]  ;;  %v374_v37 = vld [vmem:[%s2891_s20 + $0x2a8] sm:$0xff] }
  0x71   : > { %1357 = vmatpush.msrb.mxu0 %v464_v38  ;;  %1566 = vmatpush.msrb.mxu1 %v512_v39  ;;  %v309_v38 = vld [vmem:[%s2891_s20 + $0xa0] sm:$0xff]  ;;  %v310_v39 = vld [vmem:[%s2891_s20 + $0xa8] sm:$0xff] }
  0x72   : > { %940 = vmatpush.msrb.mxu2 %v460_v40  ;;  %1149 = vmatpush.msrb.mxu3 %v508_v41  ;;  %v442_v40 = vld [vmem:[%s2901_s30 + $0xc8] sm:$0xff] }
  0x73   : > { %1358 = vmatpush.msrb.mxu0 %v461_v42  ;;  %1567 = vmatpush.msrb.mxu1 %v509_v43  ;;  %v490_v41 = vld [vmem:[%s2901_s30 + $0x248] sm:$0xff]  ;;  %v443_v42 = vld [vmem:[%s2901_s30 + $0xd0] sm:$0xff] }
  0x74   : > { %941 = vmatpush.msrb.mxu2 %v457_v44  ;;  %1150 = vmatpush.msrb.mxu3 %v505_v45  ;;  %v375_v43 = vld [vmem:[%s2891_s20 + $0x2b0] sm:$0xff]  ;;  %v376_v44 = vld [vmem:[%s2891_s20 + $0x2b8] sm:$0xff] }
  0x75   : > { %636 = vmatmul.f32.gmra.mxu2 %v355_v46  ;;  %1359 = vmatpush.msrb.mxu0 %v458_v48  ;;  %v311_v45 = vld [vmem:[%s2891_s20 + $0xb0] sm:$0xff]  ;;  %v312_v46 = vld [vmem:[%s2891_s20 + $0xb8] sm:$0xff]  ;;  %v377_v48 = vld [vmem:[%s2891_s20 + $0x2c0] sm:$0xff] }
  0x76   : > { %845 = vmatmul.f32.gmra.mxu3 %v356_v47  ;;  %1568 = vmatpush.msrb.mxu1 %v506_v51  ;;  %v491_v47 = vld [vmem:[%s2901_s30 + $0x250] sm:$0xff]  ;;  %v314_v51 = vld [vmem:[%s2891_s20 + $0xc8] sm:$0xff] }
  0x77   : > { %942 = vmatpush.msrb.mxu2 %v454_v56  ;;  %1151 = vmatpush.msrb.mxu3 %v502_v57  ;;  %v315_v56 = vld [vmem:[%s2891_s20 + $0xd0] sm:$0xff]  ;;  %v316_v57 = vld [vmem:[%s2891_s20 + $0xd8] sm:$0xff] }
  0x78   : > { %540 = vmatmul.f32.gmra.mxu0 %v291_v49  ;;  %749 = vmatmul.f32.gmra.mxu1 %v292_v50  ;;  %v378_v49 = vld [vmem:[%s2891_s20 + $0x2c8] sm:$0xff]  ;;  %v313_v50 = vld [vmem:[%s2891_s20 + $0xc0] sm:$0xff] }
  0x79   : > { %1360 = vmatpush.msrb.mxu0 %v455_v58  ;;  %1569 = vmatpush.msrb.mxu1 %v503_v63  ;;  %v440_v58 = vld [vmem:[%s2901_s30 + $0xb8] sm:$0xff]  ;;  %v318_v63 = vld [vmem:[%s2891_s20 + $0xe8] sm:$0xff] }
  0x7a   : > { %943 = vmatpush.msrb.mxu2 %v451_v4  ;;  %1152 = vmatpush.msrb.mxu3 %v499_v5  ;;  %v319_v4 = vld [vmem:[%s2891_s20 + $0xf0] sm:$0xff]  ;;  %v320_v5 = vld [vmem:[%s2891_s20 + $0xf8] sm:$0xff] }
  0x7b   : > { %1361 = vmatpush.msrb.mxu0 %v452_v6  ;;  %1570 = vmatpush.msrb.mxu1 %v500_v11  ;;  %v437_v6 = vld [vmem:[%s2901_s30 + $0xa0] sm:$0xff] }
  0x7c   : > { %944 = vmatpush.msrb.mxu2 %v448_v16  ;;  %1153 = vmatpush.msrb.mxu3 %v496_v17  ;;  %v433_v16 = vld [vmem:[%s2901_s30 + $0x80] sm:$0xff] }
  0x7d   : > { %639 = vmatmul.f32.gmra.mxu2 %v357_v52  ;;  %1362 = vmatpush.msrb.mxu0 %v449_v18  ;;  %v439_v52 = vld [vmem:[%s2901_s30 + $0xb0] sm:$0xff]  ;;  %v481_v17 = vld [vmem:[%s2901_s30 + $0x200] sm:$0xff] }
  0x7e   : > { %848 = vmatmul.f32.gmra.mxu3 %v358_v53  ;;  %1571 = vmatpush.msrb.mxu1 %v497_v23  ;;  %v487_v53 = vld [vmem:[%s2901_s30 + $0x230] sm:$0xff] }
  0x7f   : > { %945 = vmatpush.msrb.mxu2 %v445_v28  ;;  %1154 = vmatpush.msrb.mxu3 %v493_v29  ;;  %v387_v23 = vld [vmem:[%s2891_s20 + $0x310] sm:$0xff]  ;;  %v324_v29 = vld [vmem:[%s2891_s20 + $0x118] sm:$0xff] }
  0x80   : > { %543 = vmatmul.f32.gmra.mxu0 %v293_v54  ;;  %752 = vmatmul.f32.gmra.mxu1 %v294_v55  ;;  %v379_v54 = vld [vmem:[%s2891_s20 + $0x2d0] sm:$0xff]  ;;  %v380_v55 = vld [vmem:[%s2891_s20 + $0x2d8] sm:$0xff] }
  0x81   : > { %1363 = vmatpush.msrb.mxu0 %v446_v30  ;;  %1572 = vmatpush.msrb.mxu1 %v494_v35  ;;  %v434_v30 = vld [vmem:[%s2901_s30 + $0x88] sm:$0xff] }
  0x82   : > { %946 = vmatpush.msrb.mxu2 %v442_v40  ;;  %1155 = vmatpush.msrb.mxu3 %v490_v41  ;;  %v325_v40 = vld [vmem:[%s2891_s20 + $0x120] sm:$0xff] }
  0x83   : > { %1364 = vmatpush.msrb.mxu0 %v443_v42  ;;  %1573 = vmatpush.msrb.mxu1 %v491_v47 }
  0x84   : > { %947 = vmatpush.msrb.mxu2 %v439_v52  ;;  %1156 = vmatpush.msrb.mxu3 %v487_v53  ;;  %v392_v52 = vld [vmem:[%s2891_s20 + $0x338] sm:$0xff] }
  0x85   : > { %642 = vmatmul.f32.gmra.mxu2 %v359_v59  ;;  %v488_v59 = vld [vmem:[%s2901_s30 + $0x238] sm:$0xff]  ;;  %1365 = vmatpush.msrb.mxu0 %v440_v58  ;;  %v431_v58 = vld [vmem:[%s2901_s30 + $0x70] sm:$0xff] }
  0x86   : > { %851 = vmatmul.f32.gmra.mxu3 %v360_v60  ;;  %1574 = vmatpush.msrb.mxu1 %v488_v59  ;;  %v381_v60 = vld [vmem:[%s2891_s20 + $0x2e0] sm:$0xff]  ;;  %v479_v59 = vld [vmem:[%s2901_s30 + $0x1f0] sm:$0xff] }
  0x87   : > { %1366 = vmatpush.msrb.mxu0 %v437_v6 }
  0x88   : > { %546 = vmatmul.f32.gmra.mxu0 %v295_v61  ;;  %755 = vmatmul.f32.gmra.mxu1 %v296_v62  ;;  %v382_v61 = vld [vmem:[%s2891_s20 + $0x2e8] sm:$0xff]  ;;  %v317_v62 = vld [vmem:[%s2891_s20 + $0xe0] sm:$0xff] }
  0x89   : > { %1367 = vmatpush.msrb.mxu0 %v434_v30  ;;  %v397_v30 = vld [vmem:[%s2891_s20 + $0x360] sm:$0xff] }
  0x8b   : > { %1368 = vmatpush.msrb.mxu0 %v431_v58  ;;  %v401_v58 = vld [vmem:[%s2891_s20 + $0x380] sm:$0xff] }
  0x8d   : > { %645 = vmatmul.f32.gmra.mxu2 %v361_v0  ;;  %v436_v0 = vld [vmem:[%s2901_s30 + $0x98] sm:$0xff] }
  0x8e   : > { %854 = vmatmul.f32.gmra.mxu3 %v362_v1  ;;  %v484_v1 = vld [vmem:[%s2901_s30 + $0x218] sm:$0xff]  ;;  %948 = vmatpush.msrb.mxu2 %v436_v0 }
  0x8f   : > { %1157 = vmatpush.msrb.mxu3 %v484_v1  ;;  %v393_v1 = vld [vmem:[%s2891_s20 + $0x340] sm:$0xff] }
  0x90   : > { %549 = vmatmul.f32.gmra.mxu0 %v297_v2  ;;  %758 = vmatmul.f32.gmra.mxu1 %v298_v3  ;;  %v383_v2 = vld [vmem:[%s2891_s20 + $0x2f0] sm:$0xff]  ;;  %v384_v3 = vld [vmem:[%s2891_s20 + $0x2f8] sm:$0xff] }
  0x91   : > { %949 = vmatpush.msrb.mxu2 %v433_v16  ;;  %1158 = vmatpush.msrb.mxu3 %v481_v17  ;;  %v395_v16 = vld [vmem:[%s2891_s20 + $0x350] sm:$0xff]  ;;  %v396_v17 = vld [vmem:[%s2891_s20 + $0x358] sm:$0xff] }
  0x95   : > { %648 = vmatmul.f32.gmra.mxu2 %v363_v7  ;;  %v485_v7 = vld [vmem:[%s2901_s30 + $0x220] sm:$0xff] }
  0x96   : > { %857 = vmatmul.f32.gmra.mxu3 %v364_v8  ;;  %1575 = vmatpush.msrb.mxu1 %v485_v7  ;;  %v513_v8 = vld [vmem:[%s250_s9] sm:$0x7]  ;;  %v330_v7 = vld [vmem:[%s2891_s20 + $0x148] sm:$0xff] }
  0x97   : > { %v3053_v11 = vperm.slane %v513_v8, 0  ;;  %v427_v8 = vld [vmem:[%s2901_s30 + $0x50] sm:$0xff] }
  0x98   : > { %552 = vmatmul.f32.gmra.mxu0 %v299_v9  ;;  %761 = vmatmul.f32.gmra.mxu1 %v300_v10  ;;  %v385_v9 = vld [vmem:[%s2891_s20 + $0x300] sm:$0xff]  ;;  %v386_v10 = vld [vmem:[%s2891_s20 + $0x308] sm:$0xff] }
  0x9d   : > { %651 = vmatmul.f32.gmra.mxu2 %v365_v12  ;;  %v321_v12 = vld [vmem:[%s2891_s20 + $0x100] sm:$0xff] }
  0x9e   : > { %860 = vmatmul.f32.gmra.mxu3 %v366_v13 }
  0xa0   : > { %555 = vmatmul.f32.gmra.mxu0 %v301_v14  ;;  %764 = vmatmul.f32.gmra.mxu1 %v302_v15  ;;  %v322_v15 = vld [vmem:[%s2891_s20 + $0x108] sm:$0xff] }
  0xa5   : > { %654 = vmatmul.f32.gmra.mxu2 %v367_v19 }
  0xa6   : > { %863 = vmatmul.f32.gmra.mxu3 %v368_v20 }
  0xa8   : > { %558 = vmatmul.f32.gmra.mxu0 %v303_v21  ;;  %767 = vmatmul.f32.gmra.mxu1 %v304_v22 }
  0xad   : > { %657 = vmatmul.f32.gmra.mxu2 %v369_v24  ;;  %v388_v24 = vld [vmem:[%s2891_s20 + $0x318] sm:$0xff] }
  0xae   : > { %866 = vmatmul.f32.gmra.mxu3 %v370_v25 }
  0xb0   : > { %561 = vmatmul.f32.gmra.mxu0 %v305_v26  ;;  %770 = vmatmul.f32.gmra.mxu1 %v306_v27  ;;  %v323_v26 = vld [vmem:[%s2891_s20 + $0x110] sm:$0xff] }
  0xb5   : > { %660 = vmatmul.f32.gmra.mxu2 %v371_v31  ;;  %v482_v31 = vld [vmem:[%s2901_s30 + $0x208] sm:$0xff] }
  0xb6   : > { %869 = vmatmul.f32.gmra.mxu3 %v372_v32  ;;  %1576 = vmatpush.msrb.mxu1 %v482_v31  ;;  %v398_v31 = vld [vmem:[%s2891_s20 + $0x368] sm:$0xff] }
  0xb8   : > { %564 = vmatmul.f32.gmra.mxu0 %v307_v33  ;;  %773 = vmatmul.f32.gmra.mxu1 %v308_v34 }
  0xb9   : > { %1577 = vmatpush.msrb.mxu1 %v479_v59  ;;  %v402_v59 = vld [vmem:[%s2891_s20 + $0x388] sm:$0xff] }
  0xbd   : > { %663 = vmatmul.f32.gmra.mxu2 %v373_v36 }
  0xbe   : > { %872 = vmatmul.f32.gmra.mxu3 %v374_v37  ;;  %v389_v37 = vld [vmem:[%s2891_s20 + $0x320] sm:$0xff] }
  0xc0   : > { %567 = vmatmul.f32.gmra.mxu0 %v309_v38  ;;  %776 = vmatmul.f32.gmra.mxu1 %v310_v39  ;;  %v390_v38 = vld [vmem:[%s2891_s20 + $0x328] sm:$0xff] }
  0xc5   : > { %666 = vmatmul.f32.gmra.mxu2 %v375_v43  ;;  %v326_v43 = vld [vmem:[%s2891_s20 + $0x128] sm:$0xff] }
  0xc6   : > { %875 = vmatmul.f32.gmra.mxu3 %v376_v44  ;;  %v430_v44 = vld [vmem:[%s2901_s30 + $0x68] sm:$0xff] }
  0xc7   : > { %950 = vmatpush.msrb.mxu2 %v430_v44  ;;  %v399_v44 = vld [vmem:[%s2891_s20 + $0x370] sm:$0xff] }
  0xc8   : > { %570 = vmatmul.f32.gmra.mxu0 %v311_v45  ;;  %779 = vmatmul.f32.gmra.mxu1 %v312_v46  ;;  %v478_v45 = vld [vmem:[%s2901_s30 + $0x1e8] sm:$0xff] }
  0xc9   : > { %1159 = vmatpush.msrb.mxu3 %v478_v45  ;;  %951 = vmatpush.msrb.mxu2 %v427_v8  ;;  %v400_v45 = vld [vmem:[%s2891_s20 + $0x378] sm:$0xff]  ;;  %v403_v8 = vld [vmem:[%s2891_s20 + $0x390] sm:$0xff] }
  0xcd   : > { %669 = vmatmul.f32.gmra.mxu2 %v377_v48 }
  0xce   : > { %878 = vmatmul.f32.gmra.mxu3 %v378_v49 }
  0xd0   : > { %573 = vmatmul.f32.gmra.mxu0 %v313_v50  ;;  %782 = vmatmul.f32.gmra.mxu1 %v314_v51  ;;  %v391_v51 = vld [vmem:[%s2891_s20 + $0x330] sm:$0xff] }
  0xd5   : > { %672 = vmatmul.f32.gmra.mxu2 %v379_v54  ;;  %v327_v54 = vld [vmem:[%s2891_s20 + $0x130] sm:$0xff] }
  0xd6   : > { %881 = vmatmul.f32.gmra.mxu3 %v380_v55 }
  0xd8   : > { %576 = vmatmul.f32.gmra.mxu0 %v315_v56  ;;  %785 = vmatmul.f32.gmra.mxu1 %v316_v57  ;;  %v328_v57 = vld [vmem:[%s2891_s20 + $0x138] sm:$0xff] }
  0xdd   : > { %675 = vmatmul.f32.gmra.mxu2 %v381_v60 }
  0xde   : > { %884 = vmatmul.f32.gmra.mxu3 %v382_v61 }
  0xe0   : > { %579 = vmatmul.f32.gmra.mxu0 %v317_v62  ;;  %788 = vmatmul.f32.gmra.mxu1 %v318_v63 }
  0xe5   : > { %678 = vmatmul.f32.gmra.mxu2 %v383_v2  ;;  %v394_v2 = vld [vmem:[%s2891_s20 + $0x348] sm:$0xff] }
  0xe6   : > { %887 = vmatmul.f32.gmra.mxu3 %v384_v3 }
  0xe8   : > { %582 = vmatmul.f32.gmra.mxu0 %v319_v4  ;;  %791 = vmatmul.f32.gmra.mxu1 %v320_v5  ;;  %v329_v4 = vld [vmem:[%s2891_s20 + $0x140] sm:$0xff] }
  0xed   : > { %681 = vmatmul.f32.gmra.mxu2 %v385_v9  ;;  %v538_v13 = vpop.f32.mrf.mxu0  ;;  %v747_v14 = vpop.f32.mrf.mxu1  ;;  %v475_v9 = vld [vmem:[%s2901_s30 + $0x1d0] sm:$0xff] }
  0xee   : > { %890 = vmatmul.f32.gmra.mxu3 %v386_v10  ;;  %v539_v18 = vadd.f32 %v538_v13, %v3053_v11 }
  0xef   : > { %1160 = vmatpush.msrb.mxu3 %v475_v9  ;;  %v404_v9 = vld [vmem:[%s2891_s20 + $0x398] sm:$0xff] }
  0xf0   : > { %v634_v19 = vpop.f32.mrf.mxu2  ;;  %v748_v20 = vadd.f32 %v747_v14, %v539_v18  ;;  %585 = vmatmul.f32.gmra.mxu0 %v321_v12  ;;  %794 = vmatmul.f32.gmra.mxu1 %v322_v15 }
  0xf1   : > { %v843_v21 = vpop.f32.mrf.mxu3  ;;  %v635_v22 = vadd.f32 %v634_v19, %v3053_v11  ;;  %v331_v19 = vld [vmem:[%s2891_s20 + $0x150] sm:$0xff] }
  0xf2   : > { %1775 = vst [vmem:[%s3063_s7] sm:$0xff] %v748_v20 }
  0xf3   : > { %v844_v25 = vadd.f32 %v843_v21, %v635_v22  ;;  %v332_v22 = vld [vmem:[%s2891_s20 + $0x158] sm:$0xff] }
  0xf5   : > { %1871 = vst [vmem:[%s3063_s7 + $0x300] sm:$0xff] %v844_v25  ;;  %684 = vmatmul.f32.gmra.mxu2 %v387_v23  ;;  %v541_v27 = vpop.f32.mrf.mxu0  ;;  %v750_v28 = vpop.f32.mrf.mxu1  ;;  %v428_v23 = vld [vmem:[%s2901_s30 + $0x58] sm:$0xff] }
  0xf6   : > { %893 = vmatmul.f32.gmra.mxu3 %v388_v24  ;;  %v542_v32 = vadd.f32 %v541_v27, %v3053_v11  ;;  %v476_v24 = vld [vmem:[%s2901_s30 + $0x1d8] sm:$0xff]  ;;  %1369 = vmatpush.msrb.mxu0 %v428_v23  ;;  %v405_v23 = vld [vmem:[%s2891_s20 + $0x3a0] sm:$0xff] }
  0xf7   : > { %1578 = vmatpush.msrb.mxu1 %v476_v24  ;;  %v406_v24 = vld [vmem:[%s2891_s20 + $0x3a8] sm:$0xff] }
  0xf8   : > { %v637_v33 = vpop.f32.mrf.mxu2  ;;  %v751_v34 = vadd.f32 %v750_v28, %v542_v32  ;;  %588 = vmatmul.f32.gmra.mxu0 %v323_v26  ;;  %797 = vmatmul.f32.gmra.mxu1 %v324_v29 }
  0xf9   : > { %v846_v35 = vpop.f32.mrf.mxu3  ;;  %v638_v36 = vadd.f32 %v637_v33, %v3053_v11  ;;  %v333_v33 = vld [vmem:[%s2891_s20 + $0x160] sm:$0xff] }
  0xfa   : > { %1778 = vst [vmem:[%s3063_s7 + $0x18] sm:$0xff] %v751_v34 }
  0xfb   : > { %v847_v39 = vadd.f32 %v846_v35, %v638_v36  ;;  %v3121_v36 = vld [vmem:[%s2891_s20 + $0x168] sm:$0xff] }
  0xfd   : > { %1874 = vst [vmem:[%s3063_s7 + $0x318] sm:$0xff] %v847_v39  ;;  %687 = vmatmul.f32.gmra.mxu2 %v389_v37  ;;  %v544_v41 = vpop.f32.mrf.mxu0  ;;  %v753_v42 = vpop.f32.mrf.mxu1  ;;  %v424_v37 = vld [vmem:[%s2901_s30 + $0x38] sm:$0xff] }
  0xfe   : > { %896 = vmatmul.f32.gmra.mxu3 %v390_v38  ;;  %v545_v46 = vadd.f32 %v544_v41, %v3053_v11  ;;  %v472_v38 = vld [vmem:[%s2901_s30 + $0x1b8] sm:$0xff]  ;;  %952 = vmatpush.msrb.mxu2 %v424_v37 }
  0xff   : > { %1161 = vmatpush.msrb.mxu3 %v472_v38  ;;  %v407_v38 = vld [vmem:[%s2891_s20 + $0x3b0] sm:$0xff] }
 0x100   : > { %v640_v47 = vpop.f32.mrf.mxu2  ;;  %v754_v48 = vadd.f32 %v753_v42, %v545_v46  ;;  %591 = vmatmul.f32.gmra.mxu0 %v325_v40  ;;  %800 = vmatmul.f32.gmra.mxu1 %v326_v43 }
 0x101   : > { %v849_v49 = vpop.f32.mrf.mxu3  ;;  %v641_v50 = vadd.f32 %v640_v47, %v3053_v11  ;;  %v3132_v47 = vld [vmem:[%s2891_s20 + $0x170] sm:$0xff] }
 0x102   : > { %1781 = vst [vmem:[%s3063_s7 + $0x30] sm:$0xff] %v754_v48 }
 0x103   : > { %v850_v53 = vadd.f32 %v849_v49, %v641_v50  ;;  %v3136_v50 = vld [vmem:[%s2891_s20 + $0x178] sm:$0xff] }
 0x105   : > { %1877 = vst [vmem:[%s3063_s7 + $0x330] sm:$0xff] %v850_v53  ;;  %690 = vmatmul.f32.gmra.mxu2 %v391_v51  ;;  %v547_v55 = vpop.f32.mrf.mxu0  ;;  %v756_v56 = vpop.f32.mrf.mxu1  ;;  %v425_v51 = vld [vmem:[%s2901_s30 + $0x40] sm:$0xff] }
 0x106   : > { %899 = vmatmul.f32.gmra.mxu3 %v392_v52  ;;  %v548_v60 = vadd.f32 %v547_v55, %v3053_v11  ;;  %v473_v52 = vld [vmem:[%s2901_s30 + $0x1c0] sm:$0xff]  ;;  %1370 = vmatpush.msrb.mxu0 %v425_v51 }
 0x107   : > { %1579 = vmatpush.msrb.mxu1 %v473_v52 }
 0x108   : > { %v643_v61 = vpop.f32.mrf.mxu2  ;;  %v757_v62 = vadd.f32 %v756_v56, %v548_v60  ;;  %594 = vmatmul.f32.gmra.mxu0 %v327_v54  ;;  %803 = vmatmul.f32.gmra.mxu1 %v328_v57 }
 0x109   : > { %v852_v63 = vpop.f32.mrf.mxu3  ;;  %v644_v0 = vadd.f32 %v643_v61, %v3053_v11  ;;  %v3148_v61 = vld [vmem:[%s2891_s20 + $0x180] sm:$0xff] }
 0x10a   : > { %1784 = vst [vmem:[%s3063_s7 + $0x48] sm:$0xff] %v757_v62 }
 0x10b   : > { %v853_v3 = vadd.f32 %v852_v63, %v644_v0  ;;  %v3152_v0 = vld [vmem:[%s2891_s20 + $0x188] sm:$0xff] }
 0x10d   : > { %1880 = vst [vmem:[%s3063_s7 + $0x348] sm:$0xff] %v853_v3  ;;  %693 = vmatmul.f32.gmra.mxu2 %v393_v1  ;;  %v550_v5 = vpop.f32.mrf.mxu0  ;;  %v759_v6 = vpop.f32.mrf.mxu1  ;;  %v421_v1 = vld [vmem:[%s2901_s30 + $0x20] sm:$0xff] }
 0x10e   : > { %902 = vmatmul.f32.gmra.mxu3 %v394_v2  ;;  %v551_v10 = vadd.f32 %v550_v5, %v3053_v11  ;;  %v469_v2 = vld [vmem:[%s2901_s30 + $0x1a0] sm:$0xff]  ;;  %953 = vmatpush.msrb.mxu2 %v421_v1 }
 0x10f   : > { %1162 = vmatpush.msrb.mxu3 %v469_v2 }
 0x110   : > { %v646_v12 = vpop.f32.mrf.mxu2  ;;  %v760_v13 = vadd.f32 %v759_v6, %v551_v10  ;;  %597 = vmatmul.f32.gmra.mxu0 %v329_v4  ;;  %806 = vmatmul.f32.gmra.mxu1 %v330_v7 }
 0x111   : > { %v855_v14 = vpop.f32.mrf.mxu3  ;;  %v647_v15 = vadd.f32 %v646_v12, %v3053_v11  ;;  %v3164_v12 = vld [vmem:[%s2891_s20 + $0x190] sm:$0xff] }
 0x112   : > { %1787 = vst [vmem:[%s3063_s7 + $0x60] sm:$0xff] %v760_v13 }
 0x113   : > { %v856_v18 = vadd.f32 %v855_v14, %v647_v15  ;;  %v3168_v15 = vld [vmem:[%s2891_s20 + $0x198] sm:$0xff] }
 0x115   : > { %1883 = vst [vmem:[%s3063_s7 + $0x360] sm:$0xff] %v856_v18  ;;  %696 = vmatmul.f32.gmra.mxu2 %v395_v16  ;;  %v553_v20 = vpop.f32.mrf.mxu0  ;;  %v762_v21 = vpop.f32.mrf.mxu1  ;;  %v422_v16 = vld [vmem:[%s2901_s30 + $0x28] sm:$0xff] }
 0x116   : > { %905 = vmatmul.f32.gmra.mxu3 %v396_v17  ;;  %v554_v25 = vadd.f32 %v553_v20, %v3053_v11  ;;  %v470_v17 = vld [vmem:[%s2901_s30 + $0x1a8] sm:$0xff]  ;;  %1371 = vmatpush.msrb.mxu0 %v422_v16 }
 0x117   : > { %1580 = vmatpush.msrb.mxu1 %v470_v17 }
 0x118   : > { %v649_v26 = vpop.f32.mrf.mxu2  ;;  %v763_v27 = vadd.f32 %v762_v21, %v554_v25  ;;  %600 = vmatmul.f32.gmra.mxu0 %v331_v19  ;;  %809 = vmatmul.f32.gmra.mxu1 %v332_v22 }
 0x119   : > { %v858_v28 = vpop.f32.mrf.mxu3  ;;  %v650_v29 = vadd.f32 %v649_v26, %v3053_v11  ;;  %v3180_v26 = vld [vmem:[%s2891_s20 + $0x1a0] sm:$0xff] }
 0x11a   : > { %1790 = vst [vmem:[%s3063_s7 + $0x78] sm:$0xff] %v763_v27 }
 0x11b   : > { %v859_v32 = vadd.f32 %v858_v28, %v650_v29  ;;  %v3184_v29 = vld [vmem:[%s2891_s20 + $0x1a8] sm:$0xff] }
 0x11d   : > { %1886 = vst [vmem:[%s3063_s7 + $0x378] sm:$0xff] %v859_v32  ;;  %699 = vmatmul.f32.gmra.mxu2 %v397_v30  ;;  %v556_v34 = vpop.f32.mrf.mxu0  ;;  %v765_v35 = vpop.f32.mrf.mxu1  ;;  %v418_v30 = vld [vmem:[%s2901_s30 + $0x8] sm:$0xff] }
 0x11e   : > { %908 = vmatmul.f32.gmra.mxu3 %v398_v31  ;;  %v557_v39 = vadd.f32 %v556_v34, %v3053_v11  ;;  %v466_v31 = vld [vmem:[%s2901_s30 + $0x188] sm:$0xff]  ;;  %954 = vmatpush.msrb.mxu2 %v418_v30 }
 0x11f   : > { %1163 = vmatpush.msrb.mxu3 %v466_v31 }
 0x120   : > { %v652_v40 = vpop.f32.mrf.mxu2  ;;  %v766_v41 = vadd.f32 %v765_v35, %v557_v39  ;;  %603 = vmatmul.f32.gmra.mxu0 %v333_v33  ;;  %812 = vmatmul.f32.gmra.mxu1 %v3121_v36  ;;  %v408_v39 = vld [vmem:[%s2891_s20 + $0x3b8] sm:$0xff] }
 0x121   : > { %v861_v42 = vpop.f32.mrf.mxu3  ;;  %v653_v43 = vadd.f32 %v652_v40, %v3053_v11 }
 0x122   : > { %1793 = vst [vmem:[%s3063_s7 + $0x90] sm:$0xff] %v766_v41  ;;  %v3196_v41 = vld [vmem:[%s2891_s20 + $0x1b0] sm:$0xff] }
 0x123   : > { %v862_v46 = vadd.f32 %v861_v42, %v653_v43 }
 0x125   : > { %1889 = vst [vmem:[%s3063_s7 + $0x390] sm:$0xff] %v862_v46  ;;  %702 = vmatmul.f32.gmra.mxu2 %v399_v44  ;;  %v559_v48 = vpop.f32.mrf.mxu0  ;;  %v768_v49 = vpop.f32.mrf.mxu1  ;;  %v3200_v44 = vld [vmem:[%s2891_s20 + $0x1b8] sm:$0xff]  ;;  %v467_v46 = vld [vmem:[%s2901_s30 + $0x190] sm:$0xff] }
 0x126   : > { %911 = vmatmul.f32.gmra.mxu3 %v400_v45  ;;  %v560_v53 = vadd.f32 %v559_v48, %v3053_v11  ;;  %v419_v45 = vld [vmem:[%s2901_s30 + $0x10] sm:$0xff]  ;;  %1581 = vmatpush.msrb.mxu1 %v467_v46 }
 0x127   : > { %1372 = vmatpush.msrb.mxu0 %v419_v45 }
 0x128   : > { %v655_v54 = vpop.f32.mrf.mxu2  ;;  %v769_v55 = vadd.f32 %v768_v49, %v560_v53  ;;  %606 = vmatmul.f32.gmra.mxu0 %v3132_v47  ;;  %815 = vmatmul.f32.gmra.mxu1 %v3136_v50 }
 0x129   : > { %v864_v56 = vpop.f32.mrf.mxu3  ;;  %v656_v57 = vadd.f32 %v655_v54, %v3053_v11  ;;  %v409_v54 = vld [vmem:[%s2891_s20 + $0x3c0] sm:$0xff] }
 0x12a   : > { %1796 = vst [vmem:[%s3063_s7 + $0xa8] sm:$0xff] %v769_v55  ;;  %v410_v55 = vld [vmem:[%s2891_s20 + $0x3c8] sm:$0xff] }
 0x12b   : > { %v865_v60 = vadd.f32 %v864_v56, %v656_v57 }
 0x12d   : > { %1892 = vst [vmem:[%s3063_s7 + $0x3a8] sm:$0xff] %v865_v60  ;;  %705 = vmatmul.f32.gmra.mxu2 %v401_v58  ;;  %v562_v62 = vpop.f32.mrf.mxu0  ;;  %v771_v63 = vpop.f32.mrf.mxu1  ;;  %v3216_v60 = vld [vmem:[%s2891_s20 + $0x1c8] sm:$0xff] }
 0x12e   : > { %914 = vmatmul.f32.gmra.mxu3 %v402_v59  ;;  %v563_v3 = vadd.f32 %v562_v62, %v3053_v11  ;;  %v3213_v59 = vld [vmem:[%s2891_s20 + $0x1c0] sm:$0xff] }
 0x130   : > { %v658_v4 = vpop.f32.mrf.mxu2  ;;  %v772_v5 = vadd.f32 %v771_v63, %v563_v3  ;;  %609 = vmatmul.f32.gmra.mxu0 %v3148_v61  ;;  %818 = vmatmul.f32.gmra.mxu1 %v3152_v0 }
 0x131   : > { %v867_v6 = vpop.f32.mrf.mxu3  ;;  %v659_v7 = vadd.f32 %v658_v4, %v3053_v11  ;;  %v411_v4 = vld [vmem:[%s2891_s20 + $0x3d0] sm:$0xff] }
 0x132   : > { %1799 = vst [vmem:[%s3063_s7 + $0xc0] sm:$0xff] %v772_v5  ;;  %v412_v5 = vld [vmem:[%s2891_s20 + $0x3d8] sm:$0xff] }
 0x133   : > { %v868_v10 = vadd.f32 %v867_v6, %v659_v7 }
 0x135   : > { %1895 = vst [vmem:[%s3063_s7 + $0x3c0] sm:$0xff] %v868_v10  ;;  %708 = vmatmul.f32.gmra.mxu2 %v403_v8  ;;  %v565_v13 = vpop.f32.mrf.mxu0  ;;  %v774_v14 = vpop.f32.mrf.mxu1  ;;  %v3230_v10 = vld [vmem:[%s2891_s20 + $0x1d8] sm:$0xff] }
 0x136   : > { %917 = vmatmul.f32.gmra.mxu3 %v404_v9  ;;  %v566_v18 = vadd.f32 %v565_v13, %v3053_v11  ;;  %v3227_v9 = vld [vmem:[%s2891_s20 + $0x1d0] sm:$0xff] }
 0x138   : > { %v661_v19 = vpop.f32.mrf.mxu2  ;;  %v775_v20 = vadd.f32 %v774_v14, %v566_v18  ;;  %612 = vmatmul.f32.gmra.mxu0 %v3164_v12  ;;  %821 = vmatmul.f32.gmra.mxu1 %v3168_v15 }
 0x139   : > { %v870_v21 = vpop.f32.mrf.mxu3  ;;  %v662_v22 = vadd.f32 %v661_v19, %v3053_v11  ;;  %v413_v19 = vld [vmem:[%s2891_s20 + $0x3e0] sm:$0xff] }
 0x13a   : > { %1802 = vst [vmem:[%s3063_s7 + $0xd8] sm:$0xff] %v775_v20  ;;  %v414_v20 = vld [vmem:[%s2891_s20 + $0x3e8] sm:$0xff] }
 0x13b   : > { %v871_v25 = vadd.f32 %v870_v21, %v662_v22 }
 0x13d   : > { %1898 = vst [vmem:[%s3063_s7 + $0x3d8] sm:$0xff] %v871_v25  ;;  %711 = vmatmul.f32.gmra.mxu2 %v405_v23  ;;  %v568_v27 = vpop.f32.mrf.mxu0  ;;  %v777_v28 = vpop.f32.mrf.mxu1  ;;  %v3244_v25 = vld [vmem:[%s2891_s20 + $0x1e8] sm:$0xff] }
 0x13e   : > { %920 = vmatmul.f32.gmra.mxu3 %v406_v24  ;;  %v569_v32 = vadd.f32 %v568_v27, %v3053_v11  ;;  %v3241_v24 = vld [vmem:[%s2891_s20 + $0x1e0] sm:$0xff] }
 0x140   : > { %v664_v33 = vpop.f32.mrf.mxu2  ;;  %v778_v34 = vadd.f32 %v777_v28, %v569_v32  ;;  %615 = vmatmul.f32.gmra.mxu0 %v3180_v26  ;;  %824 = vmatmul.f32.gmra.mxu1 %v3184_v29 }
 0x141   : > { %v873_v35 = vpop.f32.mrf.mxu3  ;;  %v665_v37 = vadd.f32 %v664_v33, %v3053_v11  ;;  %v415_v33 = vld [vmem:[%s2891_s20 + $0x3f0] sm:$0xff] }
 0x142   : > { %1805 = vst [vmem:[%s3063_s7 + $0xf0] sm:$0xff] %v778_v34  ;;  %v416_v34 = vld [vmem:[%s2891_s20 + $0x3f8] sm:$0xff] }
 0x143   : > { %v874_v40 = vadd.f32 %v873_v35, %v665_v37 }
 0x145   : > { %1901 = vst [vmem:[%s3063_s7 + $0x3f0] sm:$0xff] %v874_v40  ;;  %714 = vmatmul.f32.gmra.mxu2 %v407_v38  ;;  %v571_v42 = vpop.f32.mrf.mxu0  ;;  %v780_v43 = vpop.f32.mrf.mxu1  ;;  %v3258_v40 = vld [vmem:[%s2891_s20 + $0x1f8] sm:$0xff] }
 0x146   : > { %923 = vmatmul.f32.gmra.mxu3 %v408_v39  ;;  %v572_v48 = vadd.f32 %v571_v42, %v3053_v11  ;;  %v3255_v39 = vld [vmem:[%s2891_s20 + $0x1f0] sm:$0xff] }
 0x148   : > { %v667_v49 = vpop.f32.mrf.mxu2  ;;  %v781_v51 = vadd.f32 %v780_v43, %v572_v48  ;;  %618 = vmatmul.f32.gmra.mxu0 %v3196_v41  ;;  %827 = vmatmul.f32.gmra.mxu1 %v3200_v44 }
 0x149   : > { %v876_v52 = vpop.f32.mrf.mxu3  ;;  %v668_v53 = vadd.f32 %v667_v49, %v3053_v11 }
 0x14a   : > { %1808 = vst [vmem:[%s3063_s7 + $0x108] sm:$0xff] %v781_v51  ;;  %v2317_v51 = vld [vmem:[%s2891_s20] sm:$0xff] }
 0x14b   : > { %v877_v56 = vadd.f32 %v876_v52, %v668_v53  ;;  %v2318_v52 = vld [vmem:[%s2891_s20 + $0x8] sm:$0xff] }
 0x14d   : > { %1904 = vst [vmem:[%s3063_s7 + $0x408] sm:$0xff] %v877_v56  ;;  %717 = vmatmul.f32.gmra.mxu2 %v409_v54  ;;  %v574_v57 = vpop.f32.mrf.mxu0  ;;  %v783_v58 = vpop.f32.mrf.mxu1 }
 0x14e   : > { %926 = vmatmul.f32.gmra.mxu3 %v410_v55  ;;  %v575_v62 = vadd.f32 %v574_v57, %v3053_v11 }
 0x150   : > { %v670_v63 = vpop.f32.mrf.mxu2  ;;  %v784_v1 = vadd.f32 %v783_v58, %v575_v62  ;;  %621 = vmatmul.f32.gmra.mxu0 %v3213_v59  ;;  %830 = vmatmul.f32.gmra.mxu1 %v3216_v60 }
 0x151   : > { %v879_v2 = vpop.f32.mrf.mxu3  ;;  %v671_v3 = vadd.f32 %v670_v63, %v3053_v11 }
 0x152   : > { %1811 = vst [vmem:[%s3063_s7 + $0x120] sm:$0xff] %v784_v1  ;;  %v2319_v1 = vld [vmem:[%s2891_s20 + $0x10] sm:$0xff] }
 0x153   : > { %v880_v6 = vadd.f32 %v879_v2, %v671_v3  ;;  %v2320_v2 = vld [vmem:[%s2891_s20 + $0x18] sm:$0xff] }
 0x155   : > { %1907 = vst [vmem:[%s3063_s7 + $0x420] sm:$0xff] %v880_v6  ;;  %720 = vmatmul.f32.gmra.mxu2 %v411_v4  ;;  %v577_v7 = vpop.f32.mrf.mxu0  ;;  %v786_v8 = vpop.f32.mrf.mxu1 }
 0x156   : > { %929 = vmatmul.f32.gmra.mxu3 %v412_v5  ;;  %v578_v13 = vadd.f32 %v577_v7, %v3053_v11 }
 0x158   : > { %v673_v14 = vpop.f32.mrf.mxu2  ;;  %v787_v16 = vadd.f32 %v786_v8, %v578_v13  ;;  %624 = vmatmul.f32.gmra.mxu0 %v3227_v9  ;;  %833 = vmatmul.f32.gmra.mxu1 %v3230_v10 }
 0x159   : > { %v882_v17 = vpop.f32.mrf.mxu3  ;;  %v674_v18 = vadd.f32 %v673_v14, %v3053_v11 }
 0x15a   : > { %1814 = vst [vmem:[%s3063_s7 + $0x138] sm:$0xff] %v787_v16  ;;  %v2321_v16 = vld [vmem:[%s2891_s20 + $0x20] sm:$0xff] }
 0x15b   : > { %v883_v21 = vadd.f32 %v882_v17, %v674_v18  ;;  %v2322_v17 = vld [vmem:[%s2891_s20 + $0x28] sm:$0xff] }
 0x15d   : > { %1910 = vst [vmem:[%s3063_s7 + $0x438] sm:$0xff] %v883_v21  ;;  %723 = vmatmul.f32.gmra.mxu2 %v413_v19  ;;  %v580_v22 = vpop.f32.mrf.mxu0  ;;  %v789_v23 = vpop.f32.mrf.mxu1 }
 0x15e   : > { %932 = vmatmul.f32.gmra.mxu3 %v414_v20  ;;  %v581_v27 = vadd.f32 %v580_v22, %v3053_v11 }
 0x160   : > { %v676_v28 = vpop.f32.mrf.mxu2  ;;  %v790_v30 = vadd.f32 %v789_v23, %v581_v27  ;;  %627 = vmatmul.f32.gmra.mxu0 %v3241_v24  ;;  %836 = vmatmul.f32.gmra.mxu1 %v3244_v25 }
 0x161   : > { %v885_v31 = vpop.f32.mrf.mxu3  ;;  %v677_v32 = vadd.f32 %v676_v28, %v3053_v11 }
 0x162   : > { %1817 = vst [vmem:[%s3063_s7 + $0x150] sm:$0xff] %v790_v30  ;;  %v2323_v30 = vld [vmem:[%s2891_s20 + $0x30] sm:$0xff] }
 0x163   : > { %v886_v35 = vadd.f32 %v885_v31, %v677_v32  ;;  %v2324_v31 = vld [vmem:[%s2891_s20 + $0x38] sm:$0xff] }
 0x165   : > { %1913 = vst [vmem:[%s3063_s7 + $0x450] sm:$0xff] %v886_v35  ;;  %726 = vmatmul.f32.gmra.mxu2 %v415_v33  ;;  %v583_v37 = vpop.f32.mrf.mxu0  ;;  %v792_v38 = vpop.f32.mrf.mxu1 }
 0x166   : > { %935 = vmatmul.f32.gmra.mxu3 %v416_v34  ;;  %v584_v42 = vadd.f32 %v583_v37, %v3053_v11 }
 0x168   : > { %v679_v43 = vpop.f32.mrf.mxu2  ;;  %v793_v45 = vadd.f32 %v792_v38, %v584_v42  ;;  %630 = vmatmul.f32.gmra.mxu0 %v3255_v39  ;;  %839 = vmatmul.f32.gmra.mxu1 %v3258_v40 }
 0x169   : > { %v888_v46 = vpop.f32.mrf.mxu3  ;;  %v680_v48 = vadd.f32 %v679_v43, %v3053_v11 }
 0x16a   : > { %1820 = vst [vmem:[%s3063_s7 + $0x168] sm:$0xff] %v793_v45  ;;  %v2325_v45 = vld [vmem:[%s2891_s20 + $0x40] sm:$0xff] }
 0x16b   : > { %v889_v49 = vadd.f32 %v888_v46, %v680_v48  ;;  %v2326_v46 = vld [vmem:[%s2891_s20 + $0x48] sm:$0xff] }
 0x16d   : > { %1916 = vst [vmem:[%s3063_s7 + $0x468] sm:$0xff] %v889_v49  ;;  %955 = vmatmul.f32.vlgmr.msrb.gmra.mxu2 %v2317_v51  ;;  %v586_v53 = vpop.f32.mrf.mxu0  ;;  %v795_v54 = vpop.f32.mrf.mxu1 }
 0x16e   : > { %1164 = vmatmul.f32.vlgmr.msrb.gmra.mxu3 %v2318_v52  ;;  %v587_v55 = vadd.f32 %v586_v53, %v3053_v11 }
 0x170   : > { %v682_v56 = vpop.f32.mrf.mxu2  ;;  %v796_v57 = vadd.f32 %v795_v54, %v587_v55  ;;  %1373 = vmatmul.f32.vlgmr.msrb.gmra.mxu0 %v2317_v51  ;;  %1582 = vmatmul.f32.vlgmr.msrb.gmra.mxu1 %v2318_v52 }
 0x171   : > { %v891_v58 = vpop.f32.mrf.mxu3  ;;  %v683_v62 = vadd.f32 %v682_v56, %v3053_v11 }
 0x172   : > { %1823 = vst [vmem:[%s3063_s7 + $0x180] sm:$0xff] %v796_v57  ;;  %v2327_v57 = vld [vmem:[%s2891_s20 + $0x50] sm:$0xff] }
 0x173   : > { %v892_v63 = vadd.f32 %v891_v58, %v683_v62  ;;  %v2328_v58 = vld [vmem:[%s2891_s20 + $0x58] sm:$0xff] }
 0x175   : > { %1919 = vst [vmem:[%s3063_s7 + $0x480] sm:$0xff] %v892_v63  ;;  %958 = vmatmul.f32.gmra.mxu2 %v2319_v1  ;;  %v589_v3 = vpop.f32.mrf.mxu0  ;;  %v798_v4 = vpop.f32.mrf.mxu1 }
 0x176   : > { %1167 = vmatmul.f32.gmra.mxu3 %v2320_v2  ;;  %v590_v5 = vadd.f32 %v589_v3, %v3053_v11 }
 0x178   : > { %v685_v6 = vpop.f32.mrf.mxu2  ;;  %v799_v7 = vadd.f32 %v798_v4, %v590_v5  ;;  %1376 = vmatmul.f32.gmra.mxu0 %v2319_v1  ;;  %1585 = vmatmul.f32.gmra.mxu1 %v2320_v2 }
 0x179   : > { %v894_v8 = vpop.f32.mrf.mxu3  ;;  %v686_v13 = vadd.f32 %v685_v6, %v3053_v11 }
 0x17a   : > { %1826 = vst [vmem:[%s3063_s7 + $0x198] sm:$0xff] %v799_v7  ;;  %v2329_v7 = vld [vmem:[%s2891_s20 + $0x60] sm:$0xff] }
 0x17b   : > { %v895_v14 = vadd.f32 %v894_v8, %v686_v13  ;;  %v2330_v8 = vld [vmem:[%s2891_s20 + $0x68] sm:$0xff] }
 0x17d   : > { %1922 = vst [vmem:[%s3063_s7 + $0x498] sm:$0xff] %v895_v14  ;;  %961 = vmatmul.f32.gmra.mxu2 %v2321_v16  ;;  %v592_v18 = vpop.f32.mrf.mxu0  ;;  %v801_v19 = vpop.f32.mrf.mxu1 }
 0x17e   : > { %1170 = vmatmul.f32.gmra.mxu3 %v2322_v17  ;;  %v593_v20 = vadd.f32 %v592_v18, %v3053_v11 }
 0x180   : > { %v688_v21 = vpop.f32.mrf.mxu2  ;;  %v802_v22 = vadd.f32 %v801_v19, %v593_v20  ;;  %1379 = vmatmul.f32.gmra.mxu0 %v2321_v16  ;;  %1588 = vmatmul.f32.gmra.mxu1 %v2322_v17 }
 0x181   : > { %v897_v23 = vpop.f32.mrf.mxu3  ;;  %v689_v27 = vadd.f32 %v688_v21, %v3053_v11 }
 0x182   : > { %1829 = vst [vmem:[%s3063_s7 + $0x1b0] sm:$0xff] %v802_v22  ;;  %v2331_v22 = vld [vmem:[%s2891_s20 + $0x70] sm:$0xff] }
 0x183   : > { %v898_v28 = vadd.f32 %v897_v23, %v689_v27  ;;  %v2332_v23 = vld [vmem:[%s2891_s20 + $0x78] sm:$0xff] }
 0x185   : > { %1925 = vst [vmem:[%s3063_s7 + $0x4b0] sm:$0xff] %v898_v28  ;;  %964 = vmatmul.f32.gmra.mxu2 %v2323_v30  ;;  %v595_v32 = vpop.f32.mrf.mxu0  ;;  %v804_v33 = vpop.f32.mrf.mxu1 }
 0x186   : > { %1173 = vmatmul.f32.gmra.mxu3 %v2324_v31  ;;  %v596_v34 = vadd.f32 %v595_v32, %v3053_v11 }
 0x188   : > { %v691_v35 = vpop.f32.mrf.mxu2  ;;  %v805_v37 = vadd.f32 %v804_v33, %v596_v34  ;;  %1382 = vmatmul.f32.gmra.mxu0 %v2323_v30  ;;  %1591 = vmatmul.f32.gmra.mxu1 %v2324_v31 }
 0x189   : > { %v900_v38 = vpop.f32.mrf.mxu3  ;;  %v692_v42 = vadd.f32 %v691_v35, %v3053_v11 }
 0x18a   : > { %1832 = vst [vmem:[%s3063_s7 + $0x1c8] sm:$0xff] %v805_v37  ;;  %v2333_v37 = vld [vmem:[%s2891_s20 + $0x80] sm:$0xff] }
 0x18b   : > { %v901_v43 = vadd.f32 %v900_v38, %v692_v42  ;;  %v2334_v38 = vld [vmem:[%s2891_s20 + $0x88] sm:$0xff] }
 0x18d   : > { %1928 = vst [vmem:[%s3063_s7 + $0x4c8] sm:$0xff] %v901_v43  ;;  %967 = vmatmul.f32.gmra.mxu2 %v2325_v45  ;;  %v598_v48 = vpop.f32.mrf.mxu0  ;;  %v807_v49 = vpop.f32.mrf.mxu1 }
 0x18e   : > { %1176 = vmatmul.f32.gmra.mxu3 %v2326_v46  ;;  %v599_v51 = vadd.f32 %v598_v48, %v3053_v11 }
 0x190   : > { %v694_v52 = vpop.f32.mrf.mxu2  ;;  %v808_v53 = vadd.f32 %v807_v49, %v599_v51  ;;  %1385 = vmatmul.f32.gmra.mxu0 %v2325_v45  ;;  %1594 = vmatmul.f32.gmra.mxu1 %v2326_v46 }
 0x191   : > { %v903_v54 = vpop.f32.mrf.mxu3  ;;  %v695_v55 = vadd.f32 %v694_v52, %v3053_v11 }
 0x192   : > { %1835 = vst [vmem:[%s3063_s7 + $0x1e0] sm:$0xff] %v808_v53  ;;  %v2335_v53 = vld [vmem:[%s2891_s20 + $0x90] sm:$0xff] }
 0x193   : > { %v904_v56 = vadd.f32 %v903_v54, %v695_v55  ;;  %v2336_v54 = vld [vmem:[%s2891_s20 + $0x98] sm:$0xff] }
 0x195   : > { %1931 = vst [vmem:[%s3063_s7 + $0x4e0] sm:$0xff] %v904_v56  ;;  %970 = vmatmul.f32.gmra.mxu2 %v2327_v57  ;;  %v601_v62 = vpop.f32.mrf.mxu0  ;;  %v810_v63 = vpop.f32.mrf.mxu1 }
 0x196   : > { %1179 = vmatmul.f32.gmra.mxu3 %v2328_v58  ;;  %v602_v1 = vadd.f32 %v601_v62, %v3053_v11 }
 0x198   : > { %v697_v2 = vpop.f32.mrf.mxu2  ;;  %v811_v3 = vadd.f32 %v810_v63, %v602_v1  ;;  %1388 = vmatmul.f32.gmra.mxu0 %v2327_v57  ;;  %1597 = vmatmul.f32.gmra.mxu1 %v2328_v58 }
 0x199   : > { %v906_v4 = vpop.f32.mrf.mxu3  ;;  %v698_v5 = vadd.f32 %v697_v2, %v3053_v11 }
 0x19a   : > { %1838 = vst [vmem:[%s3063_s7 + $0x1f8] sm:$0xff] %v811_v3  ;;  %v2337_v3 = vld [vmem:[%s2891_s20 + $0xa0] sm:$0xff] }
 0x19b   : > { %v907_v6 = vadd.f32 %v906_v4, %v698_v5  ;;  %v2338_v4 = vld [vmem:[%s2891_s20 + $0xa8] sm:$0xff] }
 0x19d   : > { %1934 = vst [vmem:[%s3063_s7 + $0x4f8] sm:$0xff] %v907_v6  ;;  %973 = vmatmul.f32.gmra.mxu2 %v2329_v7  ;;  %v604_v13 = vpop.f32.mrf.mxu0  ;;  %v813_v14 = vpop.f32.mrf.mxu1 }
 0x19e   : > { %1182 = vmatmul.f32.gmra.mxu3 %v2330_v8  ;;  %v605_v16 = vadd.f32 %v604_v13, %v3053_v11 }
 0x1a0   : > { %v700_v17 = vpop.f32.mrf.mxu2  ;;  %v814_v18 = vadd.f32 %v813_v14, %v605_v16  ;;  %1391 = vmatmul.f32.gmra.mxu0 %v2329_v7  ;;  %1600 = vmatmul.f32.gmra.mxu1 %v2330_v8 }
 0x1a1   : > { %v909_v19 = vpop.f32.mrf.mxu3  ;;  %v701_v20 = vadd.f32 %v700_v17, %v3053_v11 }
 0x1a2   : > { %1841 = vst [vmem:[%s3063_s7 + $0x210] sm:$0xff] %v814_v18  ;;  %v2339_v18 = vld [vmem:[%s2891_s20 + $0xb0] sm:$0xff] }
 0x1a3   : > { %v910_v21 = vadd.f32 %v909_v19, %v701_v20  ;;  %v2340_v19 = vld [vmem:[%s2891_s20 + $0xb8] sm:$0xff] }
 0x1a5   : > { %1937 = vst [vmem:[%s3063_s7 + $0x510] sm:$0xff] %v910_v21  ;;  %976 = vmatmul.f32.gmra.mxu2 %v2331_v22  ;;  %v607_v27 = vpop.f32.mrf.mxu0  ;;  %v816_v28 = vpop.f32.mrf.mxu1 }
 0x1a6   : > { %1185 = vmatmul.f32.gmra.mxu3 %v2332_v23  ;;  %v608_v30 = vadd.f32 %v607_v27, %v3053_v11 }
 0x1a8   : > { %v703_v31 = vpop.f32.mrf.mxu2  ;;  %v817_v32 = vadd.f32 %v816_v28, %v608_v30  ;;  %1394 = vmatmul.f32.gmra.mxu0 %v2331_v22  ;;  %1603 = vmatmul.f32.gmra.mxu1 %v2332_v23 }
 0x1a9   : > { %v912_v33 = vpop.f32.mrf.mxu3  ;;  %v704_v34 = vadd.f32 %v703_v31, %v3053_v11 }
 0x1aa   : > { %1844 = vst [vmem:[%s3063_s7 + $0x228] sm:$0xff] %v817_v32  ;;  %v2341_v32 = vld [vmem:[%s2891_s20 + $0xc0] sm:$0xff] }
 0x1ab   : > { %v913_v35 = vadd.f32 %v912_v33, %v704_v34  ;;  %v2342_v33 = vld [vmem:[%s2891_s20 + $0xc8] sm:$0xff] }
 0x1ad   : > { %1940 = vst [vmem:[%s3063_s7 + $0x528] sm:$0xff] %v913_v35  ;;  %979 = vmatmul.f32.gmra.mxu2 %v2333_v37  ;;  %v610_v42 = vpop.f32.mrf.mxu0  ;;  %v819_v43 = vpop.f32.mrf.mxu1 }
 0x1ae   : > { %1188 = vmatmul.f32.gmra.mxu3 %v2334_v38  ;;  %v611_v45 = vadd.f32 %v610_v42, %v3053_v11 }
 0x1b0   : > { %v706_v46 = vpop.f32.mrf.mxu2  ;;  %v820_v48 = vadd.f32 %v819_v43, %v611_v45  ;;  %1397 = vmatmul.f32.gmra.mxu0 %v2333_v37  ;;  %1606 = vmatmul.f32.gmra.mxu1 %v2334_v38 }
 0x1b1   : > { %v915_v49 = vpop.f32.mrf.mxu3  ;;  %v707_v51 = vadd.f32 %v706_v46, %v3053_v11 }
 0x1b2   : > { %1847 = vst [vmem:[%s3063_s7 + $0x240] sm:$0xff] %v820_v48  ;;  %v2343_v48 = vld [vmem:[%s2891_s20 + $0xd0] sm:$0xff] }
 0x1b3   : > { %v916_v52 = vadd.f32 %v915_v49, %v707_v51  ;;  %v2344_v49 = vld [vmem:[%s2891_s20 + $0xd8] sm:$0xff] }
 0x1b5   : > { %1943 = vst [vmem:[%s3063_s7 + $0x540] sm:$0xff] %v916_v52  ;;  %982 = vmatmul.f32.gmra.mxu2 %v2335_v53  ;;  %v613_v55 = vpop.f32.mrf.mxu0  ;;  %v822_v56 = vpop.f32.mrf.mxu1 }
 0x1b6   : > { %1191 = vmatmul.f32.gmra.mxu3 %v2336_v54  ;;  %v614_v57 = vadd.f32 %v613_v55, %v3053_v11 }
 0x1b8   : > { %v709_v58 = vpop.f32.mrf.mxu2  ;;  %v823_v62 = vadd.f32 %v822_v56, %v614_v57  ;;  %1400 = vmatmul.f32.gmra.mxu0 %v2335_v53  ;;  %1609 = vmatmul.f32.gmra.mxu1 %v2336_v54 }
 0x1b9   : > { %v918_v63 = vpop.f32.mrf.mxu3  ;;  %v710_v1 = vadd.f32 %v709_v58, %v3053_v11 }
 0x1ba   : > { %1850 = vst [vmem:[%s3063_s7 + $0x258] sm:$0xff] %v823_v62  ;;  %v2345_v62 = vld [vmem:[%s2891_s20 + $0xe0] sm:$0xff] }
 0x1bb   : > { %v919_v2 = vadd.f32 %v918_v63, %v710_v1  ;;  %v2346_v63 = vld [vmem:[%s2891_s20 + $0xe8] sm:$0xff] }
 0x1bd   : > { %1946 = vst [vmem:[%s3063_s7 + $0x558] sm:$0xff] %v919_v2  ;;  %985 = vmatmul.f32.gmra.mxu2 %v2337_v3  ;;  %v616_v5 = vpop.f32.mrf.mxu0  ;;  %v825_v6 = vpop.f32.mrf.mxu1 }
 0x1be   : > { %1194 = vmatmul.f32.gmra.mxu3 %v2338_v4  ;;  %v617_v7 = vadd.f32 %v616_v5, %v3053_v11 }
 0x1c0   : > { %v712_v8 = vpop.f32.mrf.mxu2  ;;  %v826_v13 = vadd.f32 %v825_v6, %v617_v7  ;;  %1403 = vmatmul.f32.gmra.mxu0 %v2337_v3  ;;  %1612 = vmatmul.f32.gmra.mxu1 %v2338_v4 }
 0x1c1   : > { %v921_v14 = vpop.f32.mrf.mxu3  ;;  %v713_v16 = vadd.f32 %v712_v8, %v3053_v11 }
 0x1c2   : > { %1853 = vst [vmem:[%s3063_s7 + $0x270] sm:$0xff] %v826_v13  ;;  %v2347_v13 = vld [vmem:[%s2891_s20 + $0xf0] sm:$0xff] }
 0x1c3   : > { %v922_v17 = vadd.f32 %v921_v14, %v713_v16  ;;  %v2348_v14 = vld [vmem:[%s2891_s20 + $0xf8] sm:$0xff] }
 0x1c5   : > { %1949 = vst [vmem:[%s3063_s7 + $0x570] sm:$0xff] %v922_v17  ;;  %988 = vmatmul.f32.gmra.mxu2 %v2339_v18  ;;  %v619_v20 = vpop.f32.mrf.mxu0  ;;  %v828_v21 = vpop.f32.mrf.mxu1 }
 0x1c6   : > { %1197 = vmatmul.f32.gmra.mxu3 %v2340_v19  ;;  %v620_v22 = vadd.f32 %v619_v20, %v3053_v11 }
 0x1c8   : > { %v715_v23 = vpop.f32.mrf.mxu2  ;;  %v829_v27 = vadd.f32 %v828_v21, %v620_v22  ;;  %1406 = vmatmul.f32.gmra.mxu0 %v2339_v18  ;;  %1615 = vmatmul.f32.gmra.mxu1 %v2340_v19 }
 0x1c9   : > { %v924_v28 = vpop.f32.mrf.mxu3  ;;  %v716_v30 = vadd.f32 %v715_v23, %v3053_v11  ;;  %v2349_v23 = vld [vmem:[%s250_s9] sm:$0x7] }
 0x1ca   : > { %1856 = vst [vmem:[%s3063_s7 + $0x288] sm:$0xff] %v829_v27  ;;  %v3363_v27 = vperm.slane %v2349_v23, 2 }
 0x1cb   : > { %v925_v31 = vadd.f32 %v924_v28, %v716_v30  ;;  %v2350_v30 = vld [vmem:[%s2891_s20 + $0x100] sm:$0xff] }
 0x1cd   : > { %1952 = vst [vmem:[%s3063_s7 + $0x588] sm:$0xff] %v925_v31  ;;  %991 = vmatmul.f32.gmra.mxu2 %v2341_v32  ;;  %v622_v34 = vpop.f32.mrf.mxu0  ;;  %v831_v35 = vpop.f32.mrf.mxu1  ;;  %v2351_v31 = vld [vmem:[%s2891_s20 + $0x108] sm:$0xff] }
 0x1ce   : > { %1200 = vmatmul.f32.gmra.mxu3 %v2342_v33  ;;  %v623_v37 = vadd.f32 %v622_v34, %v3053_v11 }
 0x1d0   : > { %v718_v38 = vpop.f32.mrf.mxu2  ;;  %v832_v42 = vadd.f32 %v831_v35, %v623_v37  ;;  %1409 = vmatmul.f32.gmra.mxu0 %v2341_v32  ;;  %1618 = vmatmul.f32.gmra.mxu1 %v2342_v33  ;;  %v3368_v32 = vperm.slane %v2349_v23, 1  ;;  %v2359_v23 = vld [vmem:[%s2891_s20 + $0x148] sm:$0xff] }
 0x1d1   : > { %v927_v43 = vpop.f32.mrf.mxu3  ;;  %v719_v45 = vadd.f32 %v718_v38, %v3053_v11 }
 0x1d2   : > { %1859 = vst [vmem:[%s3063_s7 + $0x2a0] sm:$0xff] %v832_v42 }
 0x1d3   : > { %v928_v46 = vadd.f32 %v927_v43, %v719_v45  ;;  %v2352_v45 = vld [vmem:[%s2891_s20 + $0x110] sm:$0xff] }
 0x1d5   : > { %1955 = vst [vmem:[%s3063_s7 + $0x5a0] sm:$0xff] %v928_v46  ;;  %994 = vmatmul.f32.gmra.mxu2 %v2343_v48  ;;  %v625_v51 = vpop.f32.mrf.mxu0  ;;  %v834_v52 = vpop.f32.mrf.mxu1  ;;  %v2353_v46 = vld [vmem:[%s2891_s20 + $0x118] sm:$0xff] }
 0x1d6   : > { %1203 = vmatmul.f32.gmra.mxu3 %v2344_v49  ;;  %v626_v53 = vadd.f32 %v625_v51, %v3053_v11 }
 0x1d8   : > { %v721_v54 = vpop.f32.mrf.mxu2  ;;  %v835_v55 = vadd.f32 %v834_v52, %v626_v53  ;;  %1412 = vmatmul.f32.gmra.mxu0 %v2343_v48  ;;  %1621 = vmatmul.f32.gmra.mxu1 %v2344_v49 }
 0x1d9   : > { %v930_v56 = vpop.f32.mrf.mxu3  ;;  %v722_v57 = vadd.f32 %v721_v54, %v3053_v11 }
 0x1da   : > { %1862 = vst [vmem:[%s3063_s7 + $0x2b8] sm:$0xff] %v835_v55 }
 0x1db   : > { %v931_v58 = vadd.f32 %v930_v56, %v722_v57  ;;  %v2354_v57 = vld [vmem:[%s2891_s20 + $0x120] sm:$0xff] }
 0x1dd   : > { %1958 = vst [vmem:[%s3063_s7 + $0x5b8] sm:$0xff] %v931_v58  ;;  %997 = vmatmul.f32.gmra.mxu2 %v2345_v62  ;;  %v628_v1 = vpop.f32.mrf.mxu0  ;;  %v837_v2 = vpop.f32.mrf.mxu1  ;;  %v2355_v58 = vld [vmem:[%s2891_s20 + $0x128] sm:$0xff] }
 0x1de   : > { %1206 = vmatmul.f32.gmra.mxu3 %v2346_v63  ;;  %v629_v3 = vadd.f32 %v628_v1, %v3053_v11 }
 0x1e0   : > { %v724_v4 = vpop.f32.mrf.mxu2  ;;  %v838_v5 = vadd.f32 %v837_v2, %v629_v3  ;;  %1415 = vmatmul.f32.gmra.mxu0 %v2345_v62  ;;  %1624 = vmatmul.f32.gmra.mxu1 %v2346_v63 }
 0x1e1   : > { %v933_v6 = vpop.f32.mrf.mxu3  ;;  %v725_v7 = vadd.f32 %v724_v4, %v3053_v11 }
 0x1e2   : > { %1865 = vst [vmem:[%s3063_s7 + $0x2d0] sm:$0xff] %v838_v5 }
 0x1e3   : > { %v934_v8 = vadd.f32 %v933_v6, %v725_v7  ;;  %v2356_v7 = vld [vmem:[%s2891_s20 + $0x130] sm:$0xff] }
 0x1e5   : > { %1961 = vst [vmem:[%s3063_s7 + $0x5d0] sm:$0xff] %v934_v8  ;;  %1000 = vmatmul.f32.gmra.mxu2 %v2347_v13  ;;  %v631_v16 = vpop.f32.mrf.mxu0  ;;  %v840_v17 = vpop.f32.mrf.mxu1  ;;  %v2357_v8 = vld [vmem:[%s2891_s20 + $0x138] sm:$0xff] }
 0x1e6   : > { %1209 = vmatmul.f32.gmra.mxu3 %v2348_v14  ;;  %v632_v18 = vadd.f32 %v631_v16, %v3053_v11 }
 0x1e8   : > { %v727_v19 = vpop.f32.mrf.mxu2  ;;  %v841_v20 = vadd.f32 %v840_v17, %v632_v18  ;;  %1418 = vmatmul.f32.gmra.mxu0 %v2347_v13  ;;  %1627 = vmatmul.f32.gmra.mxu1 %v2348_v14 }
 0x1e9   : > { %v936_v21 = vpop.f32.mrf.mxu3  ;;  %v728_v22 = vadd.f32 %v727_v19, %v3053_v11 }
 0x1ea   : > { %1868 = vst [vmem:[%s3063_s7 + $0x2e8] sm:$0xff] %v841_v20 }
 0x1eb   : > { %v937_v28 = vadd.f32 %v936_v21, %v728_v22  ;;  %v2358_v22 = vld [vmem:[%s2891_s20 + $0x140] sm:$0xff] }
 0x1ed   : > { %1964 = vst [vmem:[%s3063_s7 + $0x5e8] sm:$0xff] %v937_v28  ;;  %1003 = vmatmul.f32.gmra.mxu2 %v2350_v30  ;;  %v1374_v33 = vpop.f32.mrf.mxu0  ;;  %v1583_v34 = vpop.f32.mrf.mxu1 }
 0x1ee   : > { %1212 = vmatmul.f32.gmra.mxu3 %v2351_v31  ;;  %v1375_v11 = vadd.f32 %v1374_v33, %v3363_v27 }
 0x1f0   : > { %v956_v35 = vpop.f32.mrf.mxu2  ;;  %v1584_v38 = vadd.f32 %v1583_v34, %v1375_v11  ;;  %1421 = vmatmul.f32.gmra.mxu0 %v2350_v30  ;;  %1630 = vmatmul.f32.gmra.mxu1 %v2351_v31 }
 0x1f1   : > { %v1165_v37 = vpop.f32.mrf.mxu3  ;;  %v957_v42 = vadd.f32 %v956_v35, %v3368_v32 }
 0x1f2   : > { %1777 = vst [vmem:[%s3063_s7 + $0x10] sm:$0xff] %v1584_v38  ;;  %v2360_v38 = vld [vmem:[%s2891_s20 + $0x150] sm:$0xff] }
 0x1f3   : > { %v1166_v43 = vadd.f32 %v1165_v37, %v957_v42  ;;  %v2361_v42 = vld [vmem:[%s2891_s20 + $0x158] sm:$0xff] }
 0x1f5   : > { %1776 = vst [vmem:[%s3063_s7 + $0x8] sm:$0xff] %v1166_v43  ;;  %1006 = vmatmul.f32.gmra.mxu2 %v2352_v45  ;;  %v1377_v48 = vpop.f32.mrf.mxu0  ;;  %v1586_v49 = vpop.f32.mrf.mxu1 }
 0x1f6   : > { %1215 = vmatmul.f32.gmra.mxu3 %v2353_v46  ;;  %v1378_v51 = vadd.f32 %v1377_v48, %v3363_v27 }
 0x1f8   : > { %v959_v52 = vpop.f32.mrf.mxu2  ;;  %v1587_v54 = vadd.f32 %v1586_v49, %v1378_v51  ;;  %1424 = vmatmul.f32.gmra.mxu0 %v2352_v45  ;;  %1633 = vmatmul.f32.gmra.mxu1 %v2353_v46 }
 0x1f9   : > { %v1168_v53 = vpop.f32.mrf.mxu3  ;;  %v960_v55 = vadd.f32 %v959_v52, %v3368_v32 }
 0x1fa   : > { %1780 = vst [vmem:[%s3063_s7 + $0x28] sm:$0xff] %v1587_v54  ;;  %v2362_v54 = vld [vmem:[%s2891_s20 + $0x160] sm:$0xff] }
 0x1fb   : > { %v1169_v56 = vadd.f32 %v1168_v53, %v960_v55 }
 0x1fd   : > { %1779 = vst [vmem:[%s3063_s7 + $0x20] sm:$0xff] %v1169_v56  ;;  %1009 = vmatmul.f32.gmra.mxu2 %v2354_v57  ;;  %v1380_v62 = vpop.f32.mrf.mxu0  ;;  %v1589_v63 = vpop.f32.mrf.mxu1 }
 0x1fe   : > { %1218 = vmatmul.f32.gmra.mxu3 %v2355_v58  ;;  %v1381_v1 = vadd.f32 %v1380_v62, %v3363_v27 }
 0x200   : > { %v962_v2 = vpop.f32.mrf.mxu2  ;;  %v1590_v4 = vadd.f32 %v1589_v63, %v1381_v1  ;;  %1427 = vmatmul.f32.gmra.mxu0 %v2354_v57  ;;  %1636 = vmatmul.f32.gmra.mxu1 %v2355_v58  ;;  %v2363_v1 = vld [vmem:[%s2891_s20 + $0x168] sm:$0xff] }
 0x201   : > { %v1171_v3 = vpop.f32.mrf.mxu3  ;;  %v963_v5 = vadd.f32 %v962_v2, %v3368_v32 }
 0x202   : > { %1783 = vst [vmem:[%s3063_s7 + $0x40] sm:$0xff] %v1590_v4 }
 0x203   : > { %v1172_v6 = vadd.f32 %v1171_v3, %v963_v5 }
 0x205   : > { %1782 = vst [vmem:[%s3063_s7 + $0x38] sm:$0xff] %v1172_v6  ;;  %1012 = vmatmul.f32.gmra.mxu2 %v2356_v7  ;;  %v1383_v13 = vpop.f32.mrf.mxu0  ;;  %v1592_v14 = vpop.f32.mrf.mxu1 }
 0x206   : > { %1221 = vmatmul.f32.gmra.mxu3 %v2357_v8  ;;  %v1384_v16 = vadd.f32 %v1383_v13, %v3363_v27  ;;  %v2364_v13 = vld [vmem:[%s2891_s20 + $0x170] sm:$0xff] }
 0x208   : > { %v965_v17 = vpop.f32.mrf.mxu2  ;;  %v1593_v19 = vadd.f32 %v1592_v14, %v1384_v16  ;;  %1430 = vmatmul.f32.gmra.mxu0 %v2356_v7  ;;  %1639 = vmatmul.f32.gmra.mxu1 %v2357_v8 }
 0x209   : > { %v1174_v18 = vpop.f32.mrf.mxu3  ;;  %v966_v20 = vadd.f32 %v965_v17, %v3368_v32 }
 0x20a   : > { %1786 = vst [vmem:[%s3063_s7 + $0x58] sm:$0xff] %v1593_v19 }
 0x20b   : > { %v1175_v21 = vadd.f32 %v1174_v18, %v966_v20 }
 0x20d   : > { %1785 = vst [vmem:[%s3063_s7 + $0x50] sm:$0xff] %v1175_v21  ;;  %1015 = vmatmul.f32.gmra.mxu2 %v2358_v22  ;;  %v1386_v28 = vpop.f32.mrf.mxu0  ;;  %v1595_v30 = vpop.f32.mrf.mxu1 }
 0x20e   : > { %1224 = vmatmul.f32.gmra.mxu3 %v2359_v23  ;;  %v1387_v31 = vadd.f32 %v1386_v28, %v3363_v27 }
 0x210   : > { %v968_v33 = vpop.f32.mrf.mxu2  ;;  %v1596_v11 = vadd.f32 %v1595_v30, %v1387_v31  ;;  %1433 = vmatmul.f32.gmra.mxu0 %v2358_v22  ;;  %1642 = vmatmul.f32.gmra.mxu1 %v2359_v23 }
 0x211   : > { %v1177_v34 = vpop.f32.mrf.mxu3  ;;  %v969_v35 = vadd.f32 %v968_v33, %v3368_v32 }
 0x212   : > { %1789 = vst [vmem:[%s3063_s7 + $0x70] sm:$0xff] %v1596_v11 }
 0x213   : > { %v1178_v37 = vadd.f32 %v1177_v34, %v969_v35 }
 0x215   : > { %1788 = vst [vmem:[%s3063_s7 + $0x68] sm:$0xff] %v1178_v37  ;;  %1018 = vmatmul.f32.gmra.mxu2 %v2360_v38  ;;  %v1389_v43 = vpop.f32.mrf.mxu0  ;;  %v1598_v45 = vpop.f32.mrf.mxu1 }
 0x216   : > { %1227 = vmatmul.f32.gmra.mxu3 %v2361_v42  ;;  %v1390_v46 = vadd.f32 %v1389_v43, %v3363_v27 }
 0x218   : > { %v971_v48 = vpop.f32.mrf.mxu2  ;;  %v1599_v51 = vadd.f32 %v1598_v45, %v1390_v46  ;;  %1436 = vmatmul.f32.gmra.mxu0 %v2360_v38  ;;  %1645 = vmatmul.f32.gmra.mxu1 %v2361_v42 }
 0x219   : > { %v1180_v49 = vpop.f32.mrf.mxu3  ;;  %v972_v52 = vadd.f32 %v971_v48, %v3368_v32 }
 0x21a   : > { %1792 = vst [vmem:[%s3063_s7 + $0x88] sm:$0xff] %v1599_v51 }
 0x21b   : > { %v1181_v53 = vadd.f32 %v1180_v49, %v972_v52 }
 0x21d   : > { %1791 = vst [vmem:[%s3063_s7 + $0x80] sm:$0xff] %v1181_v53  ;;  %1021 = vmatmul.f32.gmra.mxu2 %v2362_v54  ;;  %v1392_v55 = vpop.f32.mrf.mxu0  ;;  %v1601_v56 = vpop.f32.mrf.mxu1 }
 0x21e   : > { %1230 = vmatmul.f32.gmra.mxu3 %v3121_v36  ;;  %v1393_v57 = vadd.f32 %v1392_v55, %v3363_v27 }
 0x220   : > { %v974_v58 = vpop.f32.mrf.mxu2  ;;  %v1602_v63 = vadd.f32 %v1601_v56, %v1393_v57  ;;  %1439 = vmatmul.f32.gmra.mxu0 %v2362_v54  ;;  %1648 = vmatmul.f32.gmra.mxu1 %v2363_v1 }
 0x221   : > { %v1183_v62 = vpop.f32.mrf.mxu3  ;;  %v975_v2 = vadd.f32 %v974_v58, %v3368_v32 }
 0x222   : > { %1795 = vst [vmem:[%s3063_s7 + $0xa0] sm:$0xff] %v1602_v63 }
 0x223   : > { %v1184_v3 = vadd.f32 %v1183_v62, %v975_v2 }
 0x225   : > { %1794 = vst [vmem:[%s3063_s7 + $0x98] sm:$0xff] %v1184_v3  ;;  %1024 = vmatmul.f32.gmra.mxu2 %v3132_v47  ;;  %v1395_v36 = vpop.f32.mrf.mxu0  ;;  %v1604_v4 = vpop.f32.mrf.mxu1 }
 0x226   : > { %1233 = vmatmul.f32.gmra.mxu3 %v3136_v50  ;;  %v1396_v5 = vadd.f32 %v1395_v36, %v3363_v27 }
 0x228   : > { %v977_v6 = vpop.f32.mrf.mxu2  ;;  %v1605_v8 = vadd.f32 %v1604_v4, %v1396_v5  ;;  %1442 = vmatmul.f32.gmra.mxu0 %v2364_v13  ;;  %1651 = vmatmul.f32.gmra.mxu1 %v3136_v50 }
 0x229   : > { %v1186_v7 = vpop.f32.mrf.mxu3  ;;  %v978_v14 = vadd.f32 %v977_v6, %v3368_v32 }
 0x22a   : > { %1798 = vst [vmem:[%s3063_s7 + $0xb8] sm:$0xff] %v1605_v8 }
 0x22b   : > { %v1187_v16 = vadd.f32 %v1186_v7, %v978_v14 }
 0x22d   : > { %1797 = vst [vmem:[%s3063_s7 + $0xb0] sm:$0xff] %v1187_v16  ;;  %1027 = vmatmul.f32.gmra.mxu2 %v3148_v61  ;;  %v1398_v47 = vpop.f32.mrf.mxu0  ;;  %v1607_v17 = vpop.f32.mrf.mxu1 }
 0x22e   : > { %1236 = vmatmul.f32.gmra.mxu3 %v3152_v0  ;;  %v1399_v18 = vadd.f32 %v1398_v47, %v3363_v27 }
 0x230   : > { %v980_v19 = vpop.f32.mrf.mxu2  ;;  %v1608_v21 = vadd.f32 %v1607_v17, %v1399_v18  ;;  %1445 = vmatmul.f32.gmra.mxu0 %v3148_v61  ;;  %1654 = vmatmul.f32.gmra.mxu1 %v3152_v0 }
 0x231   : > { %v1189_v20 = vpop.f32.mrf.mxu3  ;;  %v981_v50 = vadd.f32 %v980_v19, %v3368_v32 }
 0x232   : > { %1801 = vst [vmem:[%s3063_s7 + $0xd0] sm:$0xff] %v1608_v21  ;;  %v2366_v21 = vld [vmem:[%s2891_s20 + $0x208] sm:$0xff] }
 0x233   : > { %v1190_v22 = vadd.f32 %v1189_v20, %v981_v50  ;;  %v2365_v20 = vld [vmem:[%s2891_s20 + $0x200] sm:$0xff] }
 0x235   : > { %1800 = vst [vmem:[%s3063_s7 + $0xc8] sm:$0xff] %v1190_v22  ;;  %1030 = vmatmul.f32.gmra.mxu2 %v3164_v12  ;;  %v1401_v23 = vpop.f32.mrf.mxu0  ;;  %v1610_v28 = vpop.f32.mrf.mxu1 }
 0x236   : > { %1239 = vmatmul.f32.gmra.mxu3 %v3168_v15  ;;  %v1402_v30 = vadd.f32 %v1401_v23, %v3363_v27 }
 0x238   : > { %v983_v31 = vpop.f32.mrf.mxu2  ;;  %v1611_v61 = vadd.f32 %v1610_v28, %v1402_v30  ;;  %1448 = vmatmul.f32.gmra.mxu0 %v3164_v12  ;;  %1657 = vmatmul.f32.gmra.mxu1 %v3168_v15 }
 0x239   : > { %v1192_v33 = vpop.f32.mrf.mxu3  ;;  %v984_v0 = vadd.f32 %v983_v31, %v3368_v32 }
 0x23a   : > { %1804 = vst [vmem:[%s3063_s7 + $0xe8] sm:$0xff] %v1611_v61  ;;  %v2368_v61 = vld [vmem:[%s2891_s20 + $0x218] sm:$0xff] }
 0x23b   : > { %v1193_v34 = vadd.f32 %v1192_v33, %v984_v0  ;;  %v2367_v33 = vld [vmem:[%s2891_s20 + $0x210] sm:$0xff] }
 0x23d   : > { %1803 = vst [vmem:[%s3063_s7 + $0xe0] sm:$0xff] %v1193_v34  ;;  %1033 = vmatmul.f32.gmra.mxu2 %v3180_v26  ;;  %v1404_v11 = vpop.f32.mrf.mxu0  ;;  %v1613_v35 = vpop.f32.mrf.mxu1 }
 0x23e   : > { %1242 = vmatmul.f32.gmra.mxu3 %v3184_v29  ;;  %v1405_v37 = vadd.f32 %v1404_v11, %v3363_v27 }
 0x240   : > { %v986_v38 = vpop.f32.mrf.mxu2  ;;  %v1614_v12 = vadd.f32 %v1613_v35, %v1405_v37  ;;  %1451 = vmatmul.f32.gmra.mxu0 %v3180_v26  ;;  %1660 = vmatmul.f32.gmra.mxu1 %v3184_v29 }
 0x241   : > { %v1195_v42 = vpop.f32.mrf.mxu3  ;;  %v987_v15 = vadd.f32 %v986_v38, %v3368_v32 }
 0x242   : > { %1807 = vst [vmem:[%s3063_s7 + $0x100] sm:$0xff] %v1614_v12 }
 0x243   : > { %v1196_v43 = vadd.f32 %v1195_v42, %v987_v15  ;;  %v2369_v15 = vld [vmem:[%s2891_s20 + $0x220] sm:$0xff] }
 0x245   : > { %1806 = vst [vmem:[%s3063_s7 + $0xf8] sm:$0xff] %v1196_v43  ;;  %1036 = vmatmul.f32.gmra.mxu2 %v3196_v41  ;;  %v1407_v45 = vpop.f32.mrf.mxu0  ;;  %v1616_v46 = vpop.f32.mrf.mxu1  ;;  %v2370_v43 = vld [vmem:[%s2891_s20 + $0x228] sm:$0xff] }
 0x246   : > { %1245 = vmatmul.f32.gmra.mxu3 %v3200_v44  ;;  %v1408_v48 = vadd.f32 %v1407_v45, %v3363_v27 }
 0x248   : > { %v989_v49 = vpop.f32.mrf.mxu2  ;;  %v1617_v26 = vadd.f32 %v1616_v46, %v1408_v48  ;;  %1454 = vmatmul.f32.gmra.mxu0 %v3196_v41  ;;  %1663 = vmatmul.f32.gmra.mxu1 %v3200_v44 }
 0x249   : > { %v1198_v51 = vpop.f32.mrf.mxu3  ;;  %v990_v29 = vadd.f32 %v989_v49, %v3368_v32 }
 0x24a   : > { %1810 = vst [vmem:[%s3063_s7 + $0x118] sm:$0xff] %v1617_v26 }
 0x24b   : > { %v1199_v52 = vadd.f32 %v1198_v51, %v990_v29 }
 0x24d   : > { %1809 = vst [vmem:[%s3063_s7 + $0x110] sm:$0xff] %v1199_v52  ;;  %1039 = vmatmul.f32.gmra.mxu2 %v3213_v59  ;;  %v1410_v53 = vpop.f32.mrf.mxu0  ;;  %v1619_v54 = vpop.f32.mrf.mxu1 }
 0x24e   : > { %1248 = vmatmul.f32.gmra.mxu3 %v3216_v60  ;;  %v1411_v55 = vadd.f32 %v1410_v53, %v3363_v27  ;;  %v2371_v53 = vld [vmem:[%s2891_s20 + $0x230] sm:$0xff] }
 0x250   : > { %v992_v56 = vpop.f32.mrf.mxu2  ;;  %v1620_v41 = vadd.f32 %v1619_v54, %v1411_v55  ;;  %1457 = vmatmul.f32.gmra.mxu0 %v3213_v59  ;;  %1666 = vmatmul.f32.gmra.mxu1 %v3216_v60  ;;  %v2372_v54 = vld [vmem:[%s2891_s20 + $0x238] sm:$0xff] }
 0x251   : > { %v1201_v57 = vpop.f32.mrf.mxu3  ;;  %v993_v44 = vadd.f32 %v992_v56, %v3368_v32 }
 0x252   : > { %1813 = vst [vmem:[%s3063_s7 + $0x130] sm:$0xff] %v1620_v41 }
 0x253   : > { %v1202_v58 = vadd.f32 %v1201_v57, %v993_v44 }
 0x255   : > { %1812 = vst [vmem:[%s3063_s7 + $0x128] sm:$0xff] %v1202_v58  ;;  %1042 = vmatmul.f32.gmra.mxu2 %v3227_v9  ;;  %v1413_v62 = vpop.f32.mrf.mxu0  ;;  %v1622_v63 = vpop.f32.mrf.mxu1 }
 0x256   : > { %1251 = vmatmul.f32.gmra.mxu3 %v3230_v10  ;;  %v1414_v1 = vadd.f32 %v1413_v62, %v3363_v27 }
 0x258   : > { %v995_v2 = vpop.f32.mrf.mxu2  ;;  %v1623_v59 = vadd.f32 %v1622_v63, %v1414_v1  ;;  %1460 = vmatmul.f32.gmra.mxu0 %v3227_v9  ;;  %1669 = vmatmul.f32.gmra.mxu1 %v3230_v10  ;;  %v2373_v1 = vld [vmem:[%s2891_s20 + $0x240] sm:$0xff] }
 0x259   : > { %v1204_v3 = vpop.f32.mrf.mxu3  ;;  %v996_v60 = vadd.f32 %v995_v2, %v3368_v32  ;;  %v2374_v2 = vld [vmem:[%s2891_s20 + $0x248] sm:$0xff] }
 0x25a   : > { %1816 = vst [vmem:[%s3063_s7 + $0x148] sm:$0xff] %v1623_v59 }
 0x25b   : > { %v1205_v36 = vadd.f32 %v1204_v3, %v996_v60 }
 0x25d   : > { %1815 = vst [vmem:[%s3063_s7 + $0x140] sm:$0xff] %v1205_v36  ;;  %1045 = vmatmul.f32.gmra.mxu2 %v3241_v24  ;;  %v1416_v4 = vpop.f32.mrf.mxu0  ;;  %v1625_v5 = vpop.f32.mrf.mxu1 }
 0x25e   : > { %1254 = vmatmul.f32.gmra.mxu3 %v3244_v25  ;;  %v1417_v6 = vadd.f32 %v1416_v4, %v3363_v27 }
 0x260   : > { %v998_v7 = vpop.f32.mrf.mxu2  ;;  %v1626_v9 = vadd.f32 %v1625_v5, %v1417_v6  ;;  %1463 = vmatmul.f32.gmra.mxu0 %v3241_v24  ;;  %1672 = vmatmul.f32.gmra.mxu1 %v3244_v25 }
 0x261   : > { %v1207_v8 = vpop.f32.mrf.mxu3  ;;  %v999_v10 = vadd.f32 %v998_v7, %v3368_v32 }
 0x262   : > { %1819 = vst [vmem:[%s3063_s7 + $0x160] sm:$0xff] %v1626_v9  ;;  %v2376_v9 = vld [vmem:[%s2891_s20 + $0x258] sm:$0xff] }
 0x263   : > { %v1208_v13 = vadd.f32 %v1207_v8, %v999_v10  ;;  %v2375_v8 = vld [vmem:[%s2891_s20 + $0x250] sm:$0xff] }
 0x265   : > { %1818 = vst [vmem:[%s3063_s7 + $0x158] sm:$0xff] %v1208_v13  ;;  %1048 = vmatmul.f32.gmra.mxu2 %v3255_v39  ;;  %v1419_v14 = vpop.f32.mrf.mxu0  ;;  %v1628_v16 = vpop.f32.mrf.mxu1 }
 0x266   : > { %1257 = vmatmul.f32.gmra.mxu3 %v3258_v40  ;;  %v1420_v47 = vadd.f32 %v1419_v14, %v3363_v27 }
 0x268   : > { %v1001_v24 = vpop.f32.mrf.mxu2  ;;  %v1629_v25 = vadd.f32 %v1628_v16, %v1420_v47  ;;  %1466 = vmatmul.f32.gmra.mxu0 %v3255_v39  ;;  %1675 = vmatmul.f32.gmra.mxu1 %v3258_v40 }
 0x269   : > { %v1210_v17 = vpop.f32.mrf.mxu3  ;;  %v1002_v18 = vadd.f32 %v1001_v24, %v3368_v32 }
 0x26a   : > { %1822 = vst [vmem:[%s3063_s7 + $0x178] sm:$0xff] %v1629_v25 }
 0x26b   : > { %v1211_v19 = vadd.f32 %v1210_v17, %v1002_v18  ;;  %v2377_v18 = vld [vmem:[%s2891_s20 + $0x260] sm:$0xff] }
 0x26d   : > { %1821 = vst [vmem:[%s3063_s7 + $0x170] sm:$0xff] %v1211_v19  ;;  %1051 = vmatmul.f32.gmra.mxu2 %v2365_v20  ;;  %v1422_v50 = vpop.f32.mrf.mxu0  ;;  %v1631_v22 = vpop.f32.mrf.mxu1  ;;  %v2378_v19 = vld [vmem:[%s2891_s20 + $0x268] sm:$0xff] }
 0x26e   : > { %1260 = vmatmul.f32.gmra.mxu3 %v2366_v21  ;;  %v1423_v23 = vadd.f32 %v1422_v50, %v3363_v27 }
 0x270   : > { %v1004_v39 = vpop.f32.mrf.mxu2  ;;  %v1632_v40 = vadd.f32 %v1631_v22, %v1423_v23  ;;  %1469 = vmatmul.f32.gmra.mxu0 %v2365_v20  ;;  %1678 = vmatmul.f32.gmra.mxu1 %v2366_v21 }
 0x271   : > { %v1213_v28 = vpop.f32.mrf.mxu3  ;;  %v1005_v30 = vadd.f32 %v1004_v39, %v3368_v32 }
 0x272   : > { %1825 = vst [vmem:[%s3063_s7 + $0x190] sm:$0xff] %v1632_v40 }
 0x273   : > { %v1214_v31 = vadd.f32 %v1213_v28, %v1005_v30  ;;  %v2379_v30 = vld [vmem:[%s2891_s20 + $0x270] sm:$0xff] }
 0x275   : > { %1824 = vst [vmem:[%s3063_s7 + $0x188] sm:$0xff] %v1214_v31  ;;  %1054 = vmatmul.f32.gmra.mxu2 %v2367_v33  ;;  %v1425_v0 = vpop.f32.mrf.mxu0  ;;  %v1634_v34 = vpop.f32.mrf.mxu1  ;;  %v2380_v31 = vld [vmem:[%s2891_s20 + $0x278] sm:$0xff] }
 0x276   : > { %1263 = vmatmul.f32.gmra.mxu3 %v2368_v61  ;;  %v1426_v11 = vadd.f32 %v1425_v0, %v3363_v27 }
 0x278   : > { %v1007_v35 = vpop.f32.mrf.mxu2  ;;  %v1635_v38 = vadd.f32 %v1634_v34, %v1426_v11  ;;  %1472 = vmatmul.f32.gmra.mxu0 %v2367_v33  ;;  %1681 = vmatmul.f32.gmra.mxu1 %v2368_v61 }
 0x279   : > { %v1216_v37 = vpop.f32.mrf.mxu3  ;;  %v1008_v42 = vadd.f32 %v1007_v35, %v3368_v32 }
 0x27a   : > { %1828 = vst [vmem:[%s3063_s7 + $0x1a8] sm:$0xff] %v1635_v38 }
 0x27b   : > { %v1217_v12 = vadd.f32 %v1216_v37, %v1008_v42  ;;  %v2381_v42 = vld [vmem:[%s2891_s20 + $0x280] sm:$0xff] }
 0x27d   : > { %1827 = vst [vmem:[%s3063_s7 + $0x1a0] sm:$0xff] %v1217_v12  ;;  %1057 = vmatmul.f32.gmra.mxu2 %v2369_v15  ;;  %v1428_v45 = vpop.f32.mrf.mxu0  ;;  %v1637_v46 = vpop.f32.mrf.mxu1  ;;  %v2382_v12 = vld [vmem:[%s2891_s20 + $0x288] sm:$0xff] }
 0x27e   : > { %1266 = vmatmul.f32.gmra.mxu3 %v2370_v43  ;;  %v1429_v48 = vadd.f32 %v1428_v45, %v3363_v27 }
 0x280   : > { %v1010_v49 = vpop.f32.mrf.mxu2  ;;  %v1638_v26 = vadd.f32 %v1637_v46, %v1429_v48  ;;  %1475 = vmatmul.f32.gmra.mxu0 %v2369_v15  ;;  %1684 = vmatmul.f32.gmra.mxu1 %v2370_v43 }
 0x281   : > { %v1219_v51 = vpop.f32.mrf.mxu3  ;;  %v1011_v29 = vadd.f32 %v1010_v49, %v3368_v32 }
 0x282   : > { %1831 = vst [vmem:[%s3063_s7 + $0x1c0] sm:$0xff] %v1638_v26 }
 0x283   : > { %v1220_v52 = vadd.f32 %v1219_v51, %v1011_v29  ;;  %v2383_v29 = vld [vmem:[%s2891_s20 + $0x290] sm:$0xff] }
 0x285   : > { %1830 = vst [vmem:[%s3063_s7 + $0x1b8] sm:$0xff] %v1220_v52  ;;  %1060 = vmatmul.f32.gmra.mxu2 %v2371_v53  ;;  %v1431_v55 = vpop.f32.mrf.mxu0  ;;  %v1640_v56 = vpop.f32.mrf.mxu1  ;;  %v2384_v52 = vld [vmem:[%s2891_s20 + $0x298] sm:$0xff] }
 0x286   : > { %1269 = vmatmul.f32.gmra.mxu3 %v2372_v54  ;;  %v1432_v57 = vadd.f32 %v1431_v55, %v3363_v27 }
 0x288   : > { %v1013_v41 = vpop.f32.mrf.mxu2  ;;  %v1641_v58 = vadd.f32 %v1640_v56, %v1432_v57  ;;  %1478 = vmatmul.f32.gmra.mxu0 %v2371_v53  ;;  %1687 = vmatmul.f32.gmra.mxu1 %v2372_v54 }
 0x289   : > { %v1222_v44 = vpop.f32.mrf.mxu3  ;;  %v1014_v62 = vadd.f32 %v1013_v41, %v3368_v32 }
 0x28a   : > { %1834 = vst [vmem:[%s3063_s7 + $0x1d8] sm:$0xff] %v1641_v58 }
 0x28b   : > { %v1223_v63 = vadd.f32 %v1222_v44, %v1014_v62  ;;  %v2385_v62 = vld [vmem:[%s2891_s20 + $0x2a0] sm:$0xff] }
 0x28d   : > { %1833 = vst [vmem:[%s3063_s7 + $0x1d0] sm:$0xff] %v1223_v63  ;;  %1063 = vmatmul.f32.gmra.mxu2 %v2373_v1  ;;  %v1434_v3 = vpop.f32.mrf.mxu0  ;;  %v1643_v59 = vpop.f32.mrf.mxu1  ;;  %v2386_v63 = vld [vmem:[%s2891_s20 + $0x2a8] sm:$0xff] }
 0x28e   : > { %1272 = vmatmul.f32.gmra.mxu3 %v2374_v2  ;;  %v1435_v60 = vadd.f32 %v1434_v3, %v3363_v27 }
 0x290   : > { %v1016_v36 = vpop.f32.mrf.mxu2  ;;  %v1644_v5 = vadd.f32 %v1643_v59, %v1435_v60  ;;  %1481 = vmatmul.f32.gmra.mxu0 %v2373_v1  ;;  %1690 = vmatmul.f32.gmra.mxu1 %v2374_v2 }
 0x291   : > { %v1225_v4 = vpop.f32.mrf.mxu3  ;;  %v1017_v6 = vadd.f32 %v1016_v36, %v3368_v32 }
 0x292   : > { %1837 = vst [vmem:[%s3063_s7 + $0x1f0] sm:$0xff] %v1644_v5 }
 0x293   : > { %v1226_v7 = vadd.f32 %v1225_v4, %v1017_v6  ;;  %v2387_v6 = vld [vmem:[%s2891_s20 + $0x2b0] sm:$0xff] }
 0x295   : > { %1836 = vst [vmem:[%s3063_s7 + $0x1e8] sm:$0xff] %v1226_v7  ;;  %1066 = vmatmul.f32.gmra.mxu2 %v2375_v8  ;;  %v1437_v10 = vpop.f32.mrf.mxu0  ;;  %v1646_v13 = vpop.f32.mrf.mxu1  ;;  %v2388_v7 = vld [vmem:[%s2891_s20 + $0x2b8] sm:$0xff] }
 0x296   : > { %1275 = vmatmul.f32.gmra.mxu3 %v2376_v9  ;;  %v1438_v14 = vadd.f32 %v1437_v10, %v3363_v27 }
 0x298   : > { %v1019_v16 = vpop.f32.mrf.mxu2  ;;  %v1647_v24 = vadd.f32 %v1646_v13, %v1438_v14  ;;  %1484 = vmatmul.f32.gmra.mxu0 %v2375_v8  ;;  %1693 = vmatmul.f32.gmra.mxu1 %v2376_v9 }
 0x299   : > { %v1228_v47 = vpop.f32.mrf.mxu3  ;;  %v1020_v17 = vadd.f32 %v1019_v16, %v3368_v32 }
 0x29a   : > { %1840 = vst [vmem:[%s3063_s7 + $0x208] sm:$0xff] %v1647_v24 }
 0x29b   : > { %v1229_v25 = vadd.f32 %v1228_v47, %v1020_v17  ;;  %v2389_v17 = vld [vmem:[%s2891_s20 + $0x2c0] sm:$0xff] }
 0x29d   : > { %1839 = vst [vmem:[%s3063_s7 + $0x200] sm:$0xff] %v1229_v25  ;;  %1069 = vmatmul.f32.gmra.mxu2 %v2377_v18  ;;  %v1440_v20 = vpop.f32.mrf.mxu0  ;;  %v1649_v21 = vpop.f32.mrf.mxu1  ;;  %v2390_v25 = vld [vmem:[%s2891_s20 + $0x2c8] sm:$0xff] }
 0x29e   : > { %1278 = vmatmul.f32.gmra.mxu3 %v2378_v19  ;;  %v1441_v50 = vadd.f32 %v1440_v20, %v3363_v27 }
 0x2a0   : > { %v1022_v22 = vpop.f32.mrf.mxu2  ;;  %v1650_v39 = vadd.f32 %v1649_v21, %v1441_v50  ;;  %1487 = vmatmul.f32.gmra.mxu0 %v2377_v18  ;;  %1696 = vmatmul.f32.gmra.mxu1 %v2378_v19 }
 0x2a1   : > { %v1231_v23 = vpop.f32.mrf.mxu3  ;;  %v1023_v28 = vadd.f32 %v1022_v22, %v3368_v32 }
 0x2a2   : > { %1843 = vst [vmem:[%s3063_s7 + $0x220] sm:$0xff] %v1650_v39 }
 0x2a3   : > { %v1232_v40 = vadd.f32 %v1231_v23, %v1023_v28  ;;  %v2391_v28 = vld [vmem:[%s2891_s20 + $0x2d0] sm:$0xff] }
 0x2a5   : > { %1842 = vst [vmem:[%s3063_s7 + $0x218] sm:$0xff] %v1232_v40  ;;  %1072 = vmatmul.f32.gmra.mxu2 %v2379_v30  ;;  %v1443_v33 = vpop.f32.mrf.mxu0  ;;  %v1652_v61 = vpop.f32.mrf.mxu1  ;;  %v2392_v40 = vld [vmem:[%s2891_s20 + $0x2d8] sm:$0xff] }
 0x2a6   : > { %1281 = vmatmul.f32.gmra.mxu3 %v2380_v31  ;;  %v1444_v0 = vadd.f32 %v1443_v33, %v3363_v27 }
 0x2a8   : > { %v1025_v34 = vpop.f32.mrf.mxu2  ;;  %v1653_v35 = vadd.f32 %v1652_v61, %v1444_v0  ;;  %1490 = vmatmul.f32.gmra.mxu0 %v2379_v30  ;;  %1699 = vmatmul.f32.gmra.mxu1 %v2380_v31 }
 0x2a9   : > { %v1234_v11 = vpop.f32.mrf.mxu3  ;;  %v1026_v37 = vadd.f32 %v1025_v34, %v3368_v32 }
 0x2aa   : > { %1846 = vst [vmem:[%s3063_s7 + $0x238] sm:$0xff] %v1653_v35 }
 0x2ab   : > { %v1235_v38 = vadd.f32 %v1234_v11, %v1026_v37  ;;  %v2393_v37 = vld [vmem:[%s2891_s20 + $0x2e0] sm:$0xff] }
 0x2ad   : > { %1845 = vst [vmem:[%s3063_s7 + $0x230] sm:$0xff] %v1235_v38  ;;  %1075 = vmatmul.f32.gmra.mxu2 %v2381_v42  ;;  %v1446_v15 = vpop.f32.mrf.mxu0  ;;  %v1655_v43 = vpop.f32.mrf.mxu1  ;;  %v2394_v38 = vld [vmem:[%s2891_s20 + $0x2e8] sm:$0xff] }
 0x2ae   : > { %1284 = vmatmul.f32.gmra.mxu3 %v2382_v12  ;;  %v1447_v45 = vadd.f32 %v1446_v15, %v3363_v27 }
 0x2b0   : > { %v1028_v46 = vpop.f32.mrf.mxu2  ;;  %v1656_v49 = vadd.f32 %v1655_v43, %v1447_v45  ;;  %1493 = vmatmul.f32.gmra.mxu0 %v2381_v42  ;;  %1702 = vmatmul.f32.gmra.mxu1 %v2382_v12 }
 0x2b1   : > { %v1237_v48 = vpop.f32.mrf.mxu3  ;;  %v1029_v51 = vadd.f32 %v1028_v46, %v3368_v32 }
 0x2b2   : > { %1849 = vst [vmem:[%s3063_s7 + $0x250] sm:$0xff] %v1656_v49 }
 0x2b3   : > { %v1238_v26 = vadd.f32 %v1237_v48, %v1029_v51  ;;  %v2395_v51 = vld [vmem:[%s2891_s20 + $0x2f0] sm:$0xff] }
 0x2b5   : > { %1848 = vst [vmem:[%s3063_s7 + $0x248] sm:$0xff] %v1238_v26  ;;  %1078 = vmatmul.f32.gmra.mxu2 %v2383_v29  ;;  %v1449_v53 = vpop.f32.mrf.mxu0  ;;  %v1658_v54 = vpop.f32.mrf.mxu1  ;;  %v2396_v26 = vld [vmem:[%s2891_s20 + $0x2f8] sm:$0xff] }
 0x2b6   : > { %1287 = vmatmul.f32.gmra.mxu3 %v2384_v52  ;;  %v1450_v55 = vadd.f32 %v1449_v53, %v3363_v27 }
 0x2b8   : > { %v1031_v56 = vpop.f32.mrf.mxu2  ;;  %v1659_v41 = vadd.f32 %v1658_v54, %v1450_v55  ;;  %1496 = vmatmul.f32.gmra.mxu0 %v2383_v29  ;;  %1705 = vmatmul.f32.gmra.mxu1 %v2384_v52 }
 0x2b9   : > { %v1240_v57 = vpop.f32.mrf.mxu3  ;;  %v1032_v44 = vadd.f32 %v1031_v56, %v3368_v32 }
 0x2ba   : > { %1852 = vst [vmem:[%s3063_s7 + $0x268] sm:$0xff] %v1659_v41 }
 0x2bb   : > { %v1241_v58 = vadd.f32 %v1240_v57, %v1032_v44  ;;  %v2397_v44 = vld [vmem:[%s2891_s20 + $0x300] sm:$0xff] }
 0x2bd   : > { %1851 = vst [vmem:[%s3063_s7 + $0x260] sm:$0xff] %v1241_v58  ;;  %1081 = vmatmul.f32.gmra.mxu2 %v2385_v62  ;;  %v1452_v1 = vpop.f32.mrf.mxu0  ;;  %v1661_v2 = vpop.f32.mrf.mxu1  ;;  %v2398_v58 = vld [vmem:[%s2891_s20 + $0x308] sm:$0xff] }
 0x2be   : > { %1290 = vmatmul.f32.gmra.mxu3 %v2386_v63  ;;  %v1453_v3 = vadd.f32 %v1452_v1, %v3363_v27 }
 0x2c0   : > { %v1034_v59 = vpop.f32.mrf.mxu2  ;;  %v1662_v36 = vadd.f32 %v1661_v2, %v1453_v3  ;;  %1499 = vmatmul.f32.gmra.mxu0 %v2385_v62  ;;  %1708 = vmatmul.f32.gmra.mxu1 %v2386_v63 }
 0x2c1   : > { %v1243_v60 = vpop.f32.mrf.mxu3  ;;  %v1035_v4 = vadd.f32 %v1034_v59, %v3368_v32 }
 0x2c2   : > { %1855 = vst [vmem:[%s3063_s7 + $0x280] sm:$0xff] %v1662_v36 }
 0x2c3   : > { %v1244_v5 = vadd.f32 %v1243_v60, %v1035_v4  ;;  %v2399_v4 = vld [vmem:[%s2891_s20 + $0x310] sm:$0xff] }
 0x2c5   : > { %1854 = vst [vmem:[%s3063_s7 + $0x278] sm:$0xff] %v1244_v5  ;;  %1084 = vmatmul.f32.gmra.mxu2 %v2387_v6  ;;  %v1455_v8 = vpop.f32.mrf.mxu0  ;;  %v1664_v9 = vpop.f32.mrf.mxu1  ;;  %v2400_v5 = vld [vmem:[%s2891_s20 + $0x318] sm:$0xff] }
 0x2c6   : > { %1293 = vmatmul.f32.gmra.mxu3 %v2388_v7  ;;  %v1456_v10 = vadd.f32 %v1455_v8, %v3363_v27 }
 0x2c8   : > { %v1037_v13 = vpop.f32.mrf.mxu2  ;;  %v1665_v16 = vadd.f32 %v1664_v9, %v1456_v10  ;;  %1502 = vmatmul.f32.gmra.mxu0 %v2387_v6  ;;  %1711 = vmatmul.f32.gmra.mxu1 %v2388_v7 }
 0x2c9   : > { %v1246_v14 = vpop.f32.mrf.mxu3  ;;  %v1038_v47 = vadd.f32 %v1037_v13, %v3368_v32 }
 0x2ca   : > { %1858 = vst [vmem:[%s3063_s7 + $0x298] sm:$0xff] %v1665_v16 }
 0x2cb   : > { %v1247_v24 = vadd.f32 %v1246_v14, %v1038_v47  ;;  %v2401_v47 = vld [vmem:[%s2891_s20 + $0x320] sm:$0xff] }
 0x2cd   : > { %1857 = vst [vmem:[%s3063_s7 + $0x290] sm:$0xff] %v1247_v24  ;;  %1087 = vmatmul.f32.gmra.mxu2 %v2389_v17  ;;  %v1458_v18 = vpop.f32.mrf.mxu0  ;;  %v1667_v19 = vpop.f32.mrf.mxu1  ;;  %v2402_v24 = vld [vmem:[%s2891_s20 + $0x328] sm:$0xff] }
 0x2ce   : > { %1296 = vmatmul.f32.gmra.mxu3 %v2390_v25  ;;  %v1459_v20 = vadd.f32 %v1458_v18, %v3363_v27 }
 0x2d0   : > { %v1040_v21 = vpop.f32.mrf.mxu2  ;;  %v1668_v22 = vadd.f32 %v1667_v19, %v1459_v20  ;;  %1505 = vmatmul.f32.gmra.mxu0 %v2389_v17  ;;  %1714 = vmatmul.f32.gmra.mxu1 %v2390_v25 }
 0x2d1   : > { %v1249_v50 = vpop.f32.mrf.mxu3  ;;  %v1041_v23 = vadd.f32 %v1040_v21, %v3368_v32 }
 0x2d2   : > { %1861 = vst [vmem:[%s3063_s7 + $0x2b0] sm:$0xff] %v1668_v22 }
 0x2d3   : > { %v1250_v39 = vadd.f32 %v1249_v50, %v1041_v23  ;;  %v2403_v23 = vld [vmem:[%s2891_s20 + $0x330] sm:$0xff] }
 0x2d5   : > { %1860 = vst [vmem:[%s3063_s7 + $0x2a8] sm:$0xff] %v1250_v39  ;;  %1090 = vmatmul.f32.gmra.mxu2 %v2391_v28  ;;  %v1461_v30 = vpop.f32.mrf.mxu0  ;;  %v1670_v31 = vpop.f32.mrf.mxu1  ;;  %v2404_v39 = vld [vmem:[%s2891_s20 + $0x338] sm:$0xff] }
 0x2d6   : > { %1299 = vmatmul.f32.gmra.mxu3 %v2392_v40  ;;  %v1462_v33 = vadd.f32 %v1461_v30, %v3363_v27 }
 0x2d8   : > { %v1043_v61 = vpop.f32.mrf.mxu2  ;;  %v1671_v34 = vadd.f32 %v1670_v31, %v1462_v33  ;;  %1508 = vmatmul.f32.gmra.mxu0 %v2391_v28  ;;  %1717 = vmatmul.f32.gmra.mxu1 %v2392_v40 }
 0x2d9   : > { %v1252_v0 = vpop.f32.mrf.mxu3  ;;  %v1044_v11 = vadd.f32 %v1043_v61, %v3368_v32 }
 0x2da   : > { %1864 = vst [vmem:[%s3063_s7 + $0x2c8] sm:$0xff] %v1671_v34 }
 0x2db   : > { %v1253_v35 = vadd.f32 %v1252_v0, %v1044_v11  ;;  %v2405_v11 = vld [vmem:[%s2891_s20 + $0x340] sm:$0xff] }
 0x2dd   : > { %1863 = vst [vmem:[%s3063_s7 + $0x2c0] sm:$0xff] %v1253_v35  ;;  %1093 = vmatmul.f32.gmra.mxu2 %v2393_v37  ;;  %v1464_v42 = vpop.f32.mrf.mxu0  ;;  %v1673_v12 = vpop.f32.mrf.mxu1  ;;  %v2406_v35 = vld [vmem:[%s2891_s20 + $0x348] sm:$0xff] }
 0x2de   : > { %1302 = vmatmul.f32.gmra.mxu3 %v2394_v38  ;;  %v1465_v15 = vadd.f32 %v1464_v42, %v3363_v27 }
 0x2e0   : > { %v1046_v43 = vpop.f32.mrf.mxu2  ;;  %v1674_v46 = vadd.f32 %v1673_v12, %v1465_v15  ;;  %1511 = vmatmul.f32.gmra.mxu0 %v2393_v37  ;;  %1720 = vmatmul.f32.gmra.mxu1 %v2394_v38 }
 0x2e1   : > { %v1255_v45 = vpop.f32.mrf.mxu3  ;;  %v1047_v48 = vadd.f32 %v1046_v43, %v3368_v32 }
 0x2e2   : > { %1867 = vst [vmem:[%s3063_s7 + $0x2e0] sm:$0xff] %v1674_v46 }
 0x2e3   : > { %v1256_v49 = vadd.f32 %v1255_v45, %v1047_v48  ;;  %v2407_v48 = vld [vmem:[%s2891_s20 + $0x350] sm:$0xff] }
 0x2e5   : > { %1866 = vst [vmem:[%s3063_s7 + $0x2d8] sm:$0xff] %v1256_v49  ;;  %1096 = vmatmul.f32.gmra.mxu2 %v2395_v51  ;;  %v1467_v29 = vpop.f32.mrf.mxu0  ;;  %v1676_v52 = vpop.f32.mrf.mxu1  ;;  %v2408_v49 = vld [vmem:[%s2891_s20 + $0x358] sm:$0xff] }
 0x2e6   : > { %1305 = vmatmul.f32.gmra.mxu3 %v2396_v26  ;;  %v1468_v53 = vadd.f32 %v1467_v29, %v3363_v27 }
 0x2e8   : > { %v1049_v54 = vpop.f32.mrf.mxu2  ;;  %v1677_v56 = vadd.f32 %v1676_v52, %v1468_v53  ;;  %1514 = vmatmul.f32.gmra.mxu0 %v2395_v51  ;;  %1723 = vmatmul.f32.gmra.mxu1 %v2396_v26 }
 0x2e9   : > { %v1258_v55 = vpop.f32.mrf.mxu3  ;;  %v1050_v57 = vadd.f32 %v1049_v54, %v3368_v32 }
 0x2ea   : > { %1870 = vst [vmem:[%s3063_s7 + $0x2f8] sm:$0xff] %v1677_v56 }
 0x2eb   : > { %v1259_v41 = vadd.f32 %v1258_v55, %v1050_v57  ;;  %v2409_v57 = vld [vmem:[%s2891_s20 + $0x360] sm:$0xff] }
 0x2ed   : > { %1869 = vst [vmem:[%s3063_s7 + $0x2f0] sm:$0xff] %v1259_v41  ;;  %1099 = vmatmul.f32.gmra.mxu2 %v2397_v44  ;;  %v1470_v62 = vpop.f32.mrf.mxu0  ;;  %v1679_v63 = vpop.f32.mrf.mxu1  ;;  %v2410_v41 = vld [vmem:[%s2891_s20 + $0x368] sm:$0xff] }
 0x2ee   : > { %1308 = vmatmul.f32.gmra.mxu3 %v2398_v58  ;;  %v1471_v1 = vadd.f32 %v1470_v62, %v3363_v27 }
 0x2f0   : > { %v1052_v2 = vpop.f32.mrf.mxu2  ;;  %v1680_v59 = vadd.f32 %v1679_v63, %v1471_v1  ;;  %1517 = vmatmul.f32.gmra.mxu0 %v2397_v44  ;;  %1726 = vmatmul.f32.gmra.mxu1 %v2398_v58 }
 0x2f1   : > { %v1261_v3 = vpop.f32.mrf.mxu3  ;;  %v1053_v60 = vadd.f32 %v1052_v2, %v3368_v32 }
 0x2f2   : > { %1873 = vst [vmem:[%s3063_s7 + $0x310] sm:$0xff] %v1680_v59 }
 0x2f3   : > { %v1262_v36 = vadd.f32 %v1261_v3, %v1053_v60  ;;  %v2411_v60 = vld [vmem:[%s2891_s20 + $0x370] sm:$0xff] }
 0x2f5   : > { %1872 = vst [vmem:[%s3063_s7 + $0x308] sm:$0xff] %v1262_v36  ;;  %1102 = vmatmul.f32.gmra.mxu2 %v2399_v4  ;;  %v1473_v6 = vpop.f32.mrf.mxu0  ;;  %v1682_v7 = vpop.f32.mrf.mxu1  ;;  %v2412_v36 = vld [vmem:[%s2891_s20 + $0x378] sm:$0xff] }
 0x2f6   : > { %1311 = vmatmul.f32.gmra.mxu3 %v2400_v5  ;;  %v1474_v8 = vadd.f32 %v1473_v6, %v3363_v27 }
 0x2f8   : > { %v1055_v9 = vpop.f32.mrf.mxu2  ;;  %v1683_v13 = vadd.f32 %v1682_v7, %v1474_v8  ;;  %1520 = vmatmul.f32.gmra.mxu0 %v2399_v4  ;;  %1729 = vmatmul.f32.gmra.mxu1 %v2400_v5 }
 0x2f9   : > { %v1264_v10 = vpop.f32.mrf.mxu3  ;;  %v1056_v14 = vadd.f32 %v1055_v9, %v3368_v32 }
 0x2fa   : > { %1876 = vst [vmem:[%s3063_s7 + $0x328] sm:$0xff] %v1683_v13 }
 0x2fb   : > { %v1265_v16 = vadd.f32 %v1264_v10, %v1056_v14  ;;  %v2413_v14 = vld [vmem:[%s2891_s20 + $0x380] sm:$0xff] }
 0x2fd   : > { %1875 = vst [vmem:[%s3063_s7 + $0x320] sm:$0xff] %v1265_v16  ;;  %1105 = vmatmul.f32.gmra.mxu2 %v2401_v47  ;;  %v1476_v17 = vpop.f32.mrf.mxu0  ;;  %v1685_v25 = vpop.f32.mrf.mxu1  ;;  %v2414_v16 = vld [vmem:[%s2891_s20 + $0x388] sm:$0xff] }
 0x2fe   : > { %1314 = vmatmul.f32.gmra.mxu3 %v2402_v24  ;;  %v1477_v18 = vadd.f32 %v1476_v17, %v3363_v27 }
 0x300   : > { %v1058_v19 = vpop.f32.mrf.mxu2  ;;  %v1686_v21 = vadd.f32 %v1685_v25, %v1477_v18  ;;  %1523 = vmatmul.f32.gmra.mxu0 %v2401_v47  ;;  %1732 = vmatmul.f32.gmra.mxu1 %v2402_v24 }
 0x301   : > { %v1267_v20 = vpop.f32.mrf.mxu3  ;;  %v1059_v50 = vadd.f32 %v1058_v19, %v3368_v32 }
 0x302   : > { %1879 = vst [vmem:[%s3063_s7 + $0x340] sm:$0xff] %v1686_v21 }
 0x303   : > { %v1268_v22 = vadd.f32 %v1267_v20, %v1059_v50  ;;  %v2415_v50 = vld [vmem:[%s2891_s20 + $0x390] sm:$0xff] }
 0x305   : > { %1878 = vst [vmem:[%s3063_s7 + $0x338] sm:$0xff] %v1268_v22  ;;  %1108 = vmatmul.f32.gmra.mxu2 %v2403_v23  ;;  %v1479_v28 = vpop.f32.mrf.mxu0  ;;  %v1688_v40 = vpop.f32.mrf.mxu1  ;;  %v2416_v22 = vld [vmem:[%s2891_s20 + $0x398] sm:$0xff] }
 0x306   : > { %1317 = vmatmul.f32.gmra.mxu3 %v2404_v39  ;;  %v1480_v30 = vadd.f32 %v1479_v28, %v3363_v27 }
 0x308   : > { %v1061_v31 = vpop.f32.mrf.mxu2  ;;  %v1689_v61 = vadd.f32 %v1688_v40, %v1480_v30  ;;  %1526 = vmatmul.f32.gmra.mxu0 %v2403_v23  ;;  %1735 = vmatmul.f32.gmra.mxu1 %v2404_v39 }
 0x309   : > { %v1270_v33 = vpop.f32.mrf.mxu3  ;;  %v1062_v0 = vadd.f32 %v1061_v31, %v3368_v32 }
 0x30a   : > { %1882 = vst [vmem:[%s3063_s7 + $0x358] sm:$0xff] %v1689_v61 }
 0x30b   : > { %v1271_v34 = vadd.f32 %v1270_v33, %v1062_v0  ;;  %v2417_v0 = vld [vmem:[%s2891_s20 + $0x3a0] sm:$0xff] }
 0x30d   : > { %1881 = vst [vmem:[%s3063_s7 + $0x350] sm:$0xff] %v1271_v34  ;;  %1111 = vmatmul.f32.gmra.mxu2 %v2405_v11  ;;  %v1482_v37 = vpop.f32.mrf.mxu0  ;;  %v1691_v38 = vpop.f32.mrf.mxu1  ;;  %v2418_v34 = vld [vmem:[%s2891_s20 + $0x3a8] sm:$0xff] }
 0x30e   : > { %1320 = vmatmul.f32.gmra.mxu3 %v2406_v35  ;;  %v1483_v42 = vadd.f32 %v1482_v37, %v3363_v27 }
 0x310   : > { %v1064_v12 = vpop.f32.mrf.mxu2  ;;  %v1692_v43 = vadd.f32 %v1691_v38, %v1483_v42  ;;  %1529 = vmatmul.f32.gmra.mxu0 %v2405_v11  ;;  %1738 = vmatmul.f32.gmra.mxu1 %v2406_v35 }
 0x311   : > { %v1273_v15 = vpop.f32.mrf.mxu3  ;;  %v1065_v45 = vadd.f32 %v1064_v12, %v3368_v32 }
 0x312   : > { %1885 = vst [vmem:[%s3063_s7 + $0x370] sm:$0xff] %v1692_v43 }
 0x313   : > { %v1274_v46 = vadd.f32 %v1273_v15, %v1065_v45  ;;  %v2419_v45 = vld [vmem:[%s2891_s20 + $0x3b0] sm:$0xff] }
 0x315   : > { %1884 = vst [vmem:[%s3063_s7 + $0x368] sm:$0xff] %v1274_v46  ;;  %1114 = vmatmul.f32.gmra.mxu2 %v2407_v48  ;;  %v1485_v51 = vpop.f32.mrf.mxu0  ;;  %v1694_v26 = vpop.f32.mrf.mxu1  ;;  %v2420_v46 = vld [vmem:[%s2891_s20 + $0x3b8] sm:$0xff] }
 0x316   : > { %1323 = vmatmul.f32.gmra.mxu3 %v2408_v49  ;;  %v1486_v29 = vadd.f32 %v1485_v51, %v3363_v27 }
 0x318   : > { %v1067_v52 = vpop.f32.mrf.mxu2  ;;  %v1695_v54 = vadd.f32 %v1694_v26, %v1486_v29  ;;  %1532 = vmatmul.f32.gmra.mxu0 %v2407_v48  ;;  %1741 = vmatmul.f32.gmra.mxu1 %v2408_v49 }
 0x319   : > { %v1276_v53 = vpop.f32.mrf.mxu3  ;;  %v1068_v55 = vadd.f32 %v1067_v52, %v3368_v32 }
 0x31a   : > { %1888 = vst [vmem:[%s3063_s7 + $0x388] sm:$0xff] %v1695_v54 }
 0x31b   : > { %v1277_v56 = vadd.f32 %v1276_v53, %v1068_v55  ;;  %v2421_v55 = vld [vmem:[%s2891_s20 + $0x3c0] sm:$0xff] }
 0x31d   : > { %1887 = vst [vmem:[%s3063_s7 + $0x380] sm:$0xff] %v1277_v56  ;;  %1117 = vmatmul.f32.gmra.mxu2 %v2409_v57  ;;  %v1488_v44 = vpop.f32.mrf.mxu0  ;;  %v1697_v58 = vpop.f32.mrf.mxu1  ;;  %v2422_v56 = vld [vmem:[%s2891_s20 + $0x3c8] sm:$0xff] }
 0x31e   : > { %1326 = vmatmul.f32.gmra.mxu3 %v2410_v41  ;;  %v1489_v62 = vadd.f32 %v1488_v44, %v3363_v27 }
 0x320   : > { %v1070_v63 = vpop.f32.mrf.mxu2  ;;  %v1698_v2 = vadd.f32 %v1697_v58, %v1489_v62  ;;  %1535 = vmatmul.f32.gmra.mxu0 %v2409_v57  ;;  %1744 = vmatmul.f32.gmra.mxu1 %v2410_v41 }
 0x321   : > { %v1279_v1 = vpop.f32.mrf.mxu3  ;;  %v1071_v3 = vadd.f32 %v1070_v63, %v3368_v32 }
 0x322   : > { %1891 = vst [vmem:[%s3063_s7 + $0x3a0] sm:$0xff] %v1698_v2 }
 0x323   : > { %v1280_v59 = vadd.f32 %v1279_v1, %v1071_v3  ;;  %v2423_v3 = vld [vmem:[%s2891_s20 + $0x3d0] sm:$0xff] }
 0x325   : > { %1890 = vst [vmem:[%s3063_s7 + $0x398] sm:$0xff] %v1280_v59  ;;  %1120 = vmatmul.f32.gmra.mxu2 %v2411_v60  ;;  %v1491_v4 = vpop.f32.mrf.mxu0  ;;  %v1700_v5 = vpop.f32.mrf.mxu1  ;;  %v2424_v59 = vld [vmem:[%s2891_s20 + $0x3d8] sm:$0xff] }
 0x326   : > { %1329 = vmatmul.f32.gmra.mxu3 %v2412_v36  ;;  %v1492_v6 = vadd.f32 %v1491_v4, %v3363_v27 }
 0x328   : > { %v1073_v7 = vpop.f32.mrf.mxu2  ;;  %v1701_v9 = vadd.f32 %v1700_v5, %v1492_v6  ;;  %1538 = vmatmul.f32.gmra.mxu0 %v2411_v60  ;;  %1747 = vmatmul.f32.gmra.mxu1 %v2412_v36 }
 0x329   : > { %v1282_v8 = vpop.f32.mrf.mxu3  ;;  %v1074_v10 = vadd.f32 %v1073_v7, %v3368_v32 }
 0x32a   : > { %1894 = vst [vmem:[%s3063_s7 + $0x3b8] sm:$0xff] %v1701_v9 }
 0x32b   : > { %v1283_v13 = vadd.f32 %v1282_v8, %v1074_v10  ;;  %v2425_v10 = vld [vmem:[%s2891_s20 + $0x3e0] sm:$0xff] }
 0x32d   : > { %1893 = vst [vmem:[%s3063_s7 + $0x3b0] sm:$0xff] %v1283_v13  ;;  %1123 = vmatmul.f32.gmra.mxu2 %v2413_v14  ;;  %v1494_v47 = vpop.f32.mrf.mxu0  ;;  %v1703_v24 = vpop.f32.mrf.mxu1  ;;  %v2426_v13 = vld [vmem:[%s2891_s20 + $0x3e8] sm:$0xff] }
 0x32e   : > { %1332 = vmatmul.f32.gmra.mxu3 %v2414_v16  ;;  %v1495_v17 = vadd.f32 %v1494_v47, %v3363_v27 }
 0x330   : > { %v1076_v25 = vpop.f32.mrf.mxu2  ;;  %v1704_v19 = vadd.f32 %v1703_v24, %v1495_v17  ;;  %1541 = vmatmul.f32.gmra.mxu0 %v2413_v14  ;;  %1750 = vmatmul.f32.gmra.mxu1 %v2414_v16 }
 0x331   : > { %v1285_v18 = vpop.f32.mrf.mxu3  ;;  %v1077_v20 = vadd.f32 %v1076_v25, %v3368_v32 }
 0x332   : > { %1897 = vst [vmem:[%s3063_s7 + $0x3d0] sm:$0xff] %v1704_v19 }
 0x333   : > { %v1286_v21 = vadd.f32 %v1285_v18, %v1077_v20  ;;  %v2427_v20 = vld [vmem:[%s2891_s20 + $0x3f0] sm:$0xff] }
 0x335   : > { %1896 = vst [vmem:[%s3063_s7 + $0x3c8] sm:$0xff] %v1286_v21  ;;  %1126 = vmatmul.f32.gmra.mxu2 %v2415_v50  ;;  %v1497_v23 = vpop.f32.mrf.mxu0  ;;  %v1706_v39 = vpop.f32.mrf.mxu1  ;;  %v2428_v21 = vld [vmem:[%s2891_s20 + $0x3f8] sm:$0xff]  ;;  %s2533_s20 = sshra.s32 %s1986_s12, 4  ;;  %s2534_s20 = int_to_ptr.hbm [resolvable:$true] %s2533_s20 }
 0x336   : > { %1335 = vmatmul.f32.gmra.mxu3 %v2416_v22  ;;  %v1498_v28 = vadd.f32 %v1497_v23, %v3363_v27  ;;  %s2535_s0 = scalar_lea.hbm %s2534_s20, 1536  ;;  %p2540_p1 = scmp.lt.s32.totalorder %s2534_s20, %s3851_s26 }
 0x337   : > { %p2536_p4 = scmp.ne.s32.totalorder %s2534_s20, %s2535_s0  ;;  %p2541_p3 = scmp.lt.s32.totalorder %s2539_s5, %s2535_s0 }
 0x338   : > { %v1079_v40 = vpop.f32.mrf.mxu2  ;;  %v1707_v31 = vadd.f32 %v1706_v39, %v1498_v28  ;;  %1544 = vmatmul.f32.gmra.mxu0 %v2415_v50  ;;  %1753 = vmatmul.f32.gmra.mxu1 %v2416_v22 }
 0x339   : > { %v1288_v30 = vpop.f32.mrf.mxu3  ;;  %v1080_v33 = vadd.f32 %v1079_v40, %v3368_v32  ;;  %p2537_p5 = pnand %p2536_p4, %p2860_p2  ;;  %p2542_p7 = por %p2541_p3, %p2540_p1 }
 0x33a   : > { %1900 = vst [vmem:[%s3063_s7 + $0x3e8] sm:$0xff] %v1707_v31 }
 0x33b   : > { %v1289_v61 = vadd.f32 %v1288_v30, %v1080_v33  ;;  %p2538_p8 = pneg %p2537_p5 }
 0x33d   : > { %1899 = vst [vmem:[%s3063_s7 + $0x3e0] sm:$0xff] %v1289_v61  ;;  %1129 = vmatmul.f32.gmra.mxu2 %v2417_v0  ;;  %v1500_v11 = vpop.f32.mrf.mxu0  ;;  %v1709_v35 = vpop.f32.mrf.mxu1  ;;  %p2543_p9 = pnand %p2542_p7, %p2538_p8 }
 0x33e   : > { %1338 = vmatmul.f32.gmra.mxu3 %v2418_v34  ;;  %v1501_v37 = vadd.f32 %v1500_v11, %v3363_v27 }
 0x340   : > { %v1082_v38 = vpop.f32.mrf.mxu2  ;;  %v1710_v12 = vadd.f32 %v1709_v35, %v1501_v37  ;;  %1547 = vmatmul.f32.gmra.mxu0 %v2417_v0  ;;  %1756 = vmatmul.f32.gmra.mxu1 %v2418_v34 }
 0x341   : > { %v1291_v42 = vpop.f32.mrf.mxu3  ;;  %v1083_v15 = vadd.f32 %v1082_v38, %v3368_v32 }
 0x342   : > { %1903 = vst [vmem:[%s3063_s7 + $0x400] sm:$0xff] %v1710_v12 }
 0x343   : > { %v1292_v43 = vadd.f32 %v1291_v42, %v1083_v15 }
 0x345   : > { %1902 = vst [vmem:[%s3063_s7 + $0x3f8] sm:$0xff] %v1292_v43  ;;  %1132 = vmatmul.f32.gmra.mxu2 %v2419_v45  ;;  %v1503_v48 = vpop.f32.mrf.mxu0  ;;  %v1712_v49 = vpop.f32.mrf.mxu1 }
 0x346   : > { %1341 = vmatmul.f32.gmra.mxu3 %v2420_v46  ;;  %v1504_v51 = vadd.f32 %v1503_v48, %v3363_v27 }
 0x348   : > { %v1085_v26 = vpop.f32.mrf.mxu2  ;;  %v1713_v52 = vadd.f32 %v1712_v49, %v1504_v51  ;;  %1550 = vmatmul.f32.gmra.mxu0 %v2419_v45  ;;  %1759 = vmatmul.f32.gmra.mxu1 %v2420_v46 }
 0x349   : > { %v1294_v29 = vpop.f32.mrf.mxu3  ;;  %v1086_v53 = vadd.f32 %v1085_v26, %v3368_v32 }
 0x34a   : > { %1906 = vst [vmem:[%s3063_s7 + $0x418] sm:$0xff] %v1713_v52 }
 0x34b   : > { %v1295_v54 = vadd.f32 %v1294_v29, %v1086_v53 }
 0x34d   : > { %1905 = vst [vmem:[%s3063_s7 + $0x410] sm:$0xff] %v1295_v54  ;;  %1135 = vmatmul.f32.gmra.mxu2 %v2421_v55  ;;  %v1506_v57 = vpop.f32.mrf.mxu0  ;;  %v1715_v41 = vpop.f32.mrf.mxu1 }
 0x34e   : > { %1344 = vmatmul.f32.gmra.mxu3 %v2422_v56  ;;  %v1507_v44 = vadd.f32 %v1506_v57, %v3363_v27 }
 0x350   : > { %v1088_v58 = vpop.f32.mrf.mxu2  ;;  %v1716_v63 = vadd.f32 %v1715_v41, %v1507_v44  ;;  %1553 = vmatmul.f32.gmra.mxu0 %v2421_v55  ;;  %1762 = vmatmul.f32.gmra.mxu1 %v2422_v56 }
 0x351   : > { %v1297_v62 = vpop.f32.mrf.mxu3  ;;  %v1089_v1 = vadd.f32 %v1088_v58, %v3368_v32 }
 0x352   : > { %1909 = vst [vmem:[%s3063_s7 + $0x430] sm:$0xff] %v1716_v63 }
 0x353   : > { %v1298_v2 = vadd.f32 %v1297_v62, %v1089_v1 }
 0x355   : > { %1908 = vst [vmem:[%s3063_s7 + $0x428] sm:$0xff] %v1298_v2  ;;  %1138 = vmatmul.f32.gmra.mxu2 %v2423_v3  ;;  %v1509_v60 = vpop.f32.mrf.mxu0  ;;  %v1718_v36 = vpop.f32.mrf.mxu1 }
 0x356   : > { %1347 = vmatmul.f32.gmra.mxu3 %v2424_v59  ;;  %v1510_v4 = vadd.f32 %v1509_v60, %v3363_v27 }
 0x358   : > { %v1091_v5 = vpop.f32.mrf.mxu2  ;;  %v1719_v7 = vadd.f32 %v1718_v36, %v1510_v4  ;;  %1556 = vmatmul.f32.gmra.mxu0 %v2423_v3  ;;  %1765 = vmatmul.f32.gmra.mxu1 %v2424_v59 }
 0x359   : > { %v1300_v6 = vpop.f32.mrf.mxu3  ;;  %v1092_v8 = vadd.f32 %v1091_v5, %v3368_v32 }
 0x35a   : > { %1912 = vst [vmem:[%s3063_s7 + $0x448] sm:$0xff] %v1719_v7 }
 0x35b   : > { %v1301_v9 = vadd.f32 %v1300_v6, %v1092_v8 }
 0x35d   : > { %1911 = vst [vmem:[%s3063_s7 + $0x440] sm:$0xff] %v1301_v9  ;;  %1141 = vmatmul.f32.gmra.mxu2 %v2425_v10  ;;  %v1512_v14 = vpop.f32.mrf.mxu0  ;;  %v1721_v16 = vpop.f32.mrf.mxu1 }
 0x35e   : > { %1350 = vmatmul.f32.gmra.mxu3 %v2426_v13  ;;  %v1513_v47 = vadd.f32 %v1512_v14, %v3363_v27 }
 0x360   : > { %v1094_v24 = vpop.f32.mrf.mxu2  ;;  %v1722_v25 = vadd.f32 %v1721_v16, %v1513_v47  ;;  %1559 = vmatmul.f32.gmra.mxu0 %v2425_v10  ;;  %1768 = vmatmul.f32.gmra.mxu1 %v2426_v13 }
 0x361   : > { %v1303_v17 = vpop.f32.mrf.mxu3  ;;  %v1095_v18 = vadd.f32 %v1094_v24, %v3368_v32 }
 0x362   : > { %1915 = vst [vmem:[%s3063_s7 + $0x460] sm:$0xff] %v1722_v25 }
 0x363   : > { %v1304_v19 = vadd.f32 %v1303_v17, %v1095_v18 }
 0x365   : > { %1914 = vst [vmem:[%s3063_s7 + $0x458] sm:$0xff] %v1304_v19  ;;  %1144 = vmatmul.f32.gmra.mxu2 %v2427_v20  ;;  %v1515_v50 = vpop.f32.mrf.mxu0  ;;  %v1724_v22 = vpop.f32.mrf.mxu1 }
 0x366   : > { %1353 = vmatmul.f32.gmra.mxu3 %v2428_v21  ;;  %v1516_v23 = vadd.f32 %v1515_v50, %v3363_v27 }
 0x368   : > { %v1097_v39 = vpop.f32.mrf.mxu2  ;;  %v1725_v40 = vadd.f32 %v1724_v22, %v1516_v23  ;;  %1562 = vmatmul.f32.gmra.mxu0 %v2427_v20  ;;  %1771 = vmatmul.f32.gmra.mxu1 %v2428_v21 }
 0x369   : > { %v1306_v28 = vpop.f32.mrf.mxu3  ;;  %v1098_v30 = vadd.f32 %v1097_v39, %v3368_v32 }
 0x36a   : > { %1918 = vst [vmem:[%s3063_s7 + $0x478] sm:$0xff] %v1725_v40 }
 0x36b   : > { %v1307_v31 = vadd.f32 %v1306_v28, %v1098_v30 }
 0x36d   : > { %1917 = vst [vmem:[%s3063_s7 + $0x470] sm:$0xff] %v1307_v31  ;;  %v1518_v33 = vpop.f32.mrf.mxu0  ;;  %v1727_v61 = vpop.f32.mrf.mxu1 }
 0x36e   : > { %v1519_v0 = vadd.f32 %v1518_v33, %v3363_v27 }
 0x370   : > { %v1100_v34 = vpop.f32.mrf.mxu2  ;;  %v1728_v35 = vadd.f32 %v1727_v61, %v1519_v0 }
 0x371   : > { %v1309_v11 = vpop.f32.mrf.mxu3  ;;  %v1101_v37 = vadd.f32 %v1100_v34, %v3368_v32 }
 0x372   : > { %1921 = vst [vmem:[%s3063_s7 + $0x490] sm:$0xff] %v1728_v35 }
 0x373   : > { %v1310_v38 = vadd.f32 %v1309_v11, %v1101_v37 }
 0x375   : > { %1920 = vst [vmem:[%s3063_s7 + $0x488] sm:$0xff] %v1310_v38  ;;  %v1521_v42 = vpop.f32.mrf.mxu0  ;;  %v1730_v12 = vpop.f32.mrf.mxu1 }
 0x376   : > { %v1522_v15 = vadd.f32 %v1521_v42, %v3363_v27 }
 0x378   : > { %v1103_v43 = vpop.f32.mrf.mxu2  ;;  %v1731_v46 = vadd.f32 %v1730_v12, %v1522_v15 }
 0x379   : > { %v1312_v45 = vpop.f32.mrf.mxu3  ;;  %v1104_v48 = vadd.f32 %v1103_v43, %v3368_v32 }
 0x37a   : > { %1924 = vst [vmem:[%s3063_s7 + $0x4a8] sm:$0xff] %v1731_v46 }
 0x37b   : > { %v1313_v49 = vadd.f32 %v1312_v45, %v1104_v48 }
 0x37d   : > { %1923 = vst [vmem:[%s3063_s7 + $0x4a0] sm:$0xff] %v1313_v49  ;;  %v1524_v51 = vpop.f32.mrf.mxu0  ;;  %v1733_v26 = vpop.f32.mrf.mxu1 }
 0x37e   : > { %v1525_v29 = vadd.f32 %v1524_v51, %v3363_v27 }
 0x380   : > { %v1106_v52 = vpop.f32.mrf.mxu2  ;;  %v1734_v54 = vadd.f32 %v1733_v26, %v1525_v29 }
 0x381   : > { %v1315_v53 = vpop.f32.mrf.mxu3  ;;  %v1107_v55 = vadd.f32 %v1106_v52, %v3368_v32 }
 0x382   : > { %1927 = vst [vmem:[%s3063_s7 + $0x4c0] sm:$0xff] %v1734_v54 }
 0x383   : > { %v1316_v56 = vadd.f32 %v1315_v53, %v1107_v55 }
 0x385   : > { %1926 = vst [vmem:[%s3063_s7 + $0x4b8] sm:$0xff] %v1316_v56  ;;  %v1527_v57 = vpop.f32.mrf.mxu0  ;;  %v1736_v41 = vpop.f32.mrf.mxu1 }
 0x386   : > { %v1528_v44 = vadd.f32 %v1527_v57, %v3363_v27 }
 0x388   : > { %v1109_v58 = vpop.f32.mrf.mxu2  ;;  %v1737_v63 = vadd.f32 %v1736_v41, %v1528_v44 }
 0x389   : > { %v1318_v62 = vpop.f32.mrf.mxu3  ;;  %v1110_v1 = vadd.f32 %v1109_v58, %v3368_v32 }
 0x38a   : > { %1930 = vst [vmem:[%s3063_s7 + $0x4d8] sm:$0xff] %v1737_v63 }
 0x38b   : > { %v1319_v2 = vadd.f32 %v1318_v62, %v1110_v1 }
 0x38d   : > { %1929 = vst [vmem:[%s3063_s7 + $0x4d0] sm:$0xff] %v1319_v2  ;;  %v1530_v3 = vpop.f32.mrf.mxu0  ;;  %v1739_v59 = vpop.f32.mrf.mxu1 }
 0x38e   : > { %v1531_v60 = vadd.f32 %v1530_v3, %v3363_v27 }
 0x390   : > { %v1112_v36 = vpop.f32.mrf.mxu2  ;;  %v1740_v5 = vadd.f32 %v1739_v59, %v1531_v60 }
 0x391   : > { %v1321_v4 = vpop.f32.mrf.mxu3  ;;  %v1113_v6 = vadd.f32 %v1112_v36, %v3368_v32 }
 0x392   : > { %1933 = vst [vmem:[%s3063_s7 + $0x4f0] sm:$0xff] %v1740_v5 }
 0x393   : > { %v1322_v7 = vadd.f32 %v1321_v4, %v1113_v6 }
 0x395   : > { %1932 = vst [vmem:[%s3063_s7 + $0x4e8] sm:$0xff] %v1322_v7  ;;  %v1533_v8 = vpop.f32.mrf.mxu0  ;;  %v1742_v9 = vpop.f32.mrf.mxu1 }
 0x396   : > { %v1534_v10 = vadd.f32 %v1533_v8, %v3363_v27 }
 0x398   : > { %v1115_v13 = vpop.f32.mrf.mxu2  ;;  %v1743_v16 = vadd.f32 %v1742_v9, %v1534_v10 }
 0x399   : > { %v1324_v14 = vpop.f32.mrf.mxu3  ;;  %v1116_v47 = vadd.f32 %v1115_v13, %v3368_v32 }
 0x39a   : > { %1936 = vst [vmem:[%s3063_s7 + $0x508] sm:$0xff] %v1743_v16 }
 0x39b   : > { %v1325_v24 = vadd.f32 %v1324_v14, %v1116_v47 }
 0x39d   : > { %1935 = vst [vmem:[%s3063_s7 + $0x500] sm:$0xff] %v1325_v24  ;;  %v1536_v17 = vpop.f32.mrf.mxu0  ;;  %v1745_v25 = vpop.f32.mrf.mxu1 }
 0x39e   : > { %v1537_v18 = vadd.f32 %v1536_v17, %v3363_v27 }
 0x3a0   : > { %v1118_v19 = vpop.f32.mrf.mxu2  ;;  %v1746_v21 = vadd.f32 %v1745_v25, %v1537_v18 }
 0x3a1   : > { %v1327_v20 = vpop.f32.mrf.mxu3  ;;  %v1119_v50 = vadd.f32 %v1118_v19, %v3368_v32 }
 0x3a2   : > { %1939 = vst [vmem:[%s3063_s7 + $0x520] sm:$0xff] %v1746_v21 }
 0x3a3   : > { %v1328_v22 = vadd.f32 %v1327_v20, %v1119_v50 }
 0x3a5   : > { %1938 = vst [vmem:[%s3063_s7 + $0x518] sm:$0xff] %v1328_v22  ;;  %v1539_v23 = vpop.f32.mrf.mxu0  ;;  %v1748_v39 = vpop.f32.mrf.mxu1 }
 0x3a6   : > { %v1540_v28 = vadd.f32 %v1539_v23, %v3363_v27 }
 0x3a8   : > { %v1121_v40 = vpop.f32.mrf.mxu2  ;;  %v1749_v31 = vadd.f32 %v1748_v39, %v1540_v28 }
 0x3a9   : > { %v1330_v30 = vpop.f32.mrf.mxu3  ;;  %v1122_v33 = vadd.f32 %v1121_v40, %v3368_v32 }
 0x3aa   : > { %1942 = vst [vmem:[%s3063_s7 + $0x538] sm:$0xff] %v1749_v31 }
 0x3ab   : > { %v1331_v61 = vadd.f32 %v1330_v30, %v1122_v33 }
 0x3ad   : > { %1941 = vst [vmem:[%s3063_s7 + $0x530] sm:$0xff] %v1331_v61  ;;  %v1542_v0 = vpop.f32.mrf.mxu0  ;;  %v1751_v34 = vpop.f32.mrf.mxu1 }
 0x3ae   : > { %v1543_v11 = vadd.f32 %v1542_v0, %v3363_v27 }
 0x3b0   : > { %v1124_v35 = vpop.f32.mrf.mxu2  ;;  %v1752_v38 = vadd.f32 %v1751_v34, %v1543_v11 }
 0x3b1   : > { %v1333_v37 = vpop.f32.mrf.mxu3  ;;  %v1125_v42 = vadd.f32 %v1124_v35, %v3368_v32 }
 0x3b2   : > { %1945 = vst [vmem:[%s3063_s7 + $0x550] sm:$0xff] %v1752_v38 }
 0x3b3   : > { %v1334_v12 = vadd.f32 %v1333_v37, %v1125_v42 }
 0x3b5   : > { %1944 = vst [vmem:[%s3063_s7 + $0x548] sm:$0xff] %v1334_v12  ;;  %v1545_v15 = vpop.f32.mrf.mxu0  ;;  %v1754_v43 = vpop.f32.mrf.mxu1 }
 0x3b6   : > { %v1546_v45 = vadd.f32 %v1545_v15, %v3363_v27 }
 0x3b8   : > { %v1127_v46 = vpop.f32.mrf.mxu2  ;;  %v1755_v49 = vadd.f32 %v1754_v43, %v1546_v45 }
 0x3b9   : > { %v1336_v48 = vpop.f32.mrf.mxu3  ;;  %v1128_v51 = vadd.f32 %v1127_v46, %v3368_v32 }
 0x3ba   : > { %1948 = vst [vmem:[%s3063_s7 + $0x568] sm:$0xff] %v1755_v49 }
 0x3bb   : > { %v1337_v26 = vadd.f32 %v1336_v48, %v1128_v51 }
 0x3bd   : > { %1947 = vst [vmem:[%s3063_s7 + $0x560] sm:$0xff] %v1337_v26  ;;  %v1548_v29 = vpop.f32.mrf.mxu0  ;;  %v1757_v52 = vpop.f32.mrf.mxu1 }
 0x3be   : > { %v1549_v53 = vadd.f32 %v1548_v29, %v3363_v27 }
 0x3c0   : > { %v1130_v54 = vpop.f32.mrf.mxu2  ;;  %v1758_v56 = vadd.f32 %v1757_v52, %v1549_v53 }
 0x3c1   : > { %v1339_v55 = vpop.f32.mrf.mxu3  ;;  %v1131_v57 = vadd.f32 %v1130_v54, %v3368_v32 }
 0x3c2   : > { %1951 = vst [vmem:[%s3063_s7 + $0x580] sm:$0xff] %v1758_v56 }
 0x3c3   : > { %v1340_v41 = vadd.f32 %v1339_v55, %v1131_v57 }
 0x3c5   : > { %1950 = vst [vmem:[%s3063_s7 + $0x578] sm:$0xff] %v1340_v41  ;;  %v1551_v44 = vpop.f32.mrf.mxu0  ;;  %v1760_v58 = vpop.f32.mrf.mxu1 }
 0x3c6   : > { %v1552_v62 = vadd.f32 %v1551_v44, %v3363_v27 }
 0x3c8   : > { %v1133_v63 = vpop.f32.mrf.mxu2  ;;  %v1761_v2 = vadd.f32 %v1760_v58, %v1552_v62 }
 0x3c9   : > { %v1342_v1 = vpop.f32.mrf.mxu3  ;;  %v1134_v3 = vadd.f32 %v1133_v63, %v3368_v32 }
 0x3ca   : > { %1954 = vst [vmem:[%s3063_s7 + $0x598] sm:$0xff] %v1761_v2 }
 0x3cb   : > { %v1343_v59 = vadd.f32 %v1342_v1, %v1134_v3 }
 0x3cd   : > { %1953 = vst [vmem:[%s3063_s7 + $0x590] sm:$0xff] %v1343_v59  ;;  %v1554_v60 = vpop.f32.mrf.mxu0  ;;  %v1763_v36 = vpop.f32.mrf.mxu1 }
 0x3ce   : > { %v1555_v4 = vadd.f32 %v1554_v60, %v3363_v27 }
 0x3d0   : > { %v1136_v5 = vpop.f32.mrf.mxu2  ;;  %v1764_v7 = vadd.f32 %v1763_v36, %v1555_v4 }
 0x3d1   : > { %v1345_v6 = vpop.f32.mrf.mxu3  ;;  %v1137_v8 = vadd.f32 %v1136_v5, %v3368_v32 }
 0x3d2   : > { %1957 = vst [vmem:[%s3063_s7 + $0x5b0] sm:$0xff] %v1764_v7 }
 0x3d3   : > { %v1346_v9 = vadd.f32 %v1345_v6, %v1137_v8 }
 0x3d5   : > { %1956 = vst [vmem:[%s3063_s7 + $0x5a8] sm:$0xff] %v1346_v9  ;;  %v1557_v10 = vpop.f32.mrf.mxu0  ;;  %v1766_v13 = vpop.f32.mrf.mxu1 }
 0x3d6   : > { %v1558_v14 = vadd.f32 %v1557_v10, %v3363_v27 }
 0x3d8   : > { %v1139_v16 = vpop.f32.mrf.mxu2  ;;  %v1767_v24 = vadd.f32 %v1766_v13, %v1558_v14 }
 0x3d9   : > { %v1348_v47 = vpop.f32.mrf.mxu3  ;;  %v1140_v17 = vadd.f32 %v1139_v16, %v3368_v32 }
 0x3da   : > { %1960 = vst [vmem:[%s3063_s7 + $0x5c8] sm:$0xff] %v1767_v24 }
 0x3db   : > { %v1349_v25 = vadd.f32 %v1348_v47, %v1140_v17 }
 0x3dd   : > { %1959 = vst [vmem:[%s3063_s7 + $0x5c0] sm:$0xff] %v1349_v25  ;;  %v1560_v18 = vpop.f32.mrf.mxu0  ;;  %v1769_v19 = vpop.f32.mrf.mxu1 }
 0x3de   : > { %v1561_v20 = vadd.f32 %v1560_v18, %v3363_v27 }
 0x3e0   : > { %v1142_v21 = vpop.f32.mrf.mxu2  ;;  %v1770_v22 = vadd.f32 %v1769_v19, %v1561_v20 }
 0x3e1   : > { %v1351_v50 = vpop.f32.mrf.mxu3  ;;  %v1143_v23 = vadd.f32 %v1142_v21, %v3368_v32 }
 0x3e2   : > { %1963 = vst [vmem:[%s3063_s7 + $0x5e0] sm:$0xff] %v1770_v22 }
 0x3e3   : > { %v1352_v39 = vadd.f32 %v1351_v50, %v1143_v23 }
 0x3e5   : > { %1962 = vst [vmem:[%s3063_s7 + $0x5d8] sm:$0xff] %v1352_v39  ;;  %v1563_v28 = vpop.f32.mrf.mxu0  ;;  %v1772_v40 = vpop.f32.mrf.mxu1 }
 0x3e6   : > { %v1564_v30 = vadd.f32 %v1563_v28, %v3363_v27 }
 0x3e8   : > { %v1145_v31 = vpop.f32.mrf.mxu2  ;;  %v1773_v61 = vadd.f32 %v1772_v40, %v1564_v30 }
 0x3e9   : > { %v1354_v33 = vpop.f32.mrf.mxu3  ;;  %v1146_v0 = vadd.f32 %v1145_v31, %v3368_v32 }
 0x3ea   : > { %1966 = vst [vmem:[%s3063_s7 + $0x5f8] sm:$0xff] %v1773_v61 }
 0x3eb   : > { %v1355_v34 = vadd.f32 %v1354_v33, %v1146_v0 }
 0x3ed   : > { %1965 = vst [vmem:[%s3063_s7 + $0x5f0] sm:$0xff] %v1355_v34 }
 0x3ee   : > { %2546 = shalt.err (!%p2543_p9)
}
 0x3ef   : > { %s2676_s9 = smov 384   ;;  %s2677_s10 = smov 768  }
 0x3f0   : > { %s2678_s6 = smov 24  }
 0x3f1   : > { %2179 = dma.vmem_to_hbm [thread:$0]  (%p2860_p2), %s1984_s22, 24576, %s1986_s12, %s1968_s14, %s2676_s9, %s2677_s10, %s2678_s6  }
 0x3f2 PF: > { %s3853_s7 = sld [smem:[#allocation12_spill]]  ;;  %p2196_p10 = scmp.ge.s32.totalorder %s2669_s25, 2 }
 0x3f4   : > { %p2192_p11 = pnand %p2196_p10, %p2867_p6 }
 0x3f6   : > { %p2193_p12 = pneg %p2192_p11 }
 0x3f8   : > { %s2000_s11 = sand.u32 1, %s3853_s7  }
 0x3f9   : > { %s2001_s27 = scalar_lea.sflag [#allocation4], %s2000_s11 }
 0x3fa   : > { %2612 = dma.done.wait (%p2193_p12), %s2001_s27, 24576  }
 0x3fb   : > { %2614 = vsyncadd (%p2193_p12), %s2001_s27, 4294942720  ;;  %s22_s25 = sadd.s32 1, %s2669_s25   ;;  %s3856_s1 = sld [smem:[#allocation13_spill]] }
 0x3fc   : > { %p3762_p13 = scmp.ge.s32.totalorder %s22_s25, 6   ;;  %s3857_s14 = sld [smem:[#allocation21_spill]] }
 0x3fd   : > { %s3858_s21 = sld [smem:[#allocation19_spill]]  ;;  %s3864_s12 = smov %s2621_s13 }
 0x3fe   : > { %s3859_s4 = sld [smem:[#allocation14_spill]]  ;;  %s3866_s15 = smov %s2633_s16 }
 0x3ff   : > { %s3860_s20 = sld [smem:[#allocation20_spill]]  ;;  %s3867_s16 = smov %s2637_s17 }
 0x400   : > { %s3861_s22 = sld [smem:[#allocation16_spill]]  ;;  %s3869_s18 = smov %s2645_s19 }
 0x401   : > { %s3862_s3 = sld [smem:[#allocation17_spill]]  ;;  %s3865_s13 = smov %s3856_s1 }
 0x402   : > { %s3863_s24 = sld [smem:[#allocation18_spill]] }
 0x403   : > { %s3868_s17 = smov %s3858_s21  ;;  %s3871_s21 = smov %s2661_s23 }
 0x404   : > { %s3870_s19 = smov %s3859_s4  ;;  %21 = sbr.rel (!%p3762_p13) target bundleno = 16 (0x10), region = 101 }
 0x407   : > { %s3872_s23 = smov %s3862_s3 }
 0x409   :  { %2007 = vsyncpa [#allocation3], 1 }
 0x40a   :  { %2009 = vsyncpa [#allocation3 + $0x1], 1 }
 0x40b   :  { %2010 = vsyncpa [#allocation6], 1 }
 0x40c   :  { %2012 = vsyncpa [#allocation6 + $0x1], 1 }
 0x40d   :  { %2013 = vsyncpa [#allocation4], 1 }
 0x40e   :  { %2015 = vsyncpa [#allocation4 + $0x1], 1 }

</bundles_post_ra>
